<compile_context>
chip_gen: v7x
topology: tpu7x:2x2x1
jax: 0.10.0
libtpu: 0.0.40
codegen_flags: <defaults>
</compile_context>

<pallas_src>
import math
import jax
import jax.numpy as jnp
from jax.experimental import pallas as pl
from jax.experimental.pallas import tpu as pltpu

# ----------------------- model config (small, synthetic) -----------------------
D_MODEL = 32
N_LAYER = 2
VOCAB = 40                                      # already a multiple of 8
D_STATE = 16
EXPAND = 2
D_CONV = 4
D_INNER = EXPAND * D_MODEL                      # 64
DT_RANK = math.ceil(D_MODEL / 16)               # 2
B = 2
L = 8
EPS = 1e-5
VOCAB_PAD = 128                                 # lane-dense logits; sliced to VOCAB in wrapper


# ------------------------------- fused Pallas kernel ---------------------------
def mamba_fused_kernel(x_ref, normw_ref, win_ref, convw_ref, convb_ref,
                       wxc_ref, bdt_ref, at_ref, dvec_ref, wout_ref,
                       shift_ref, normf_ref, etp_ref, o_ref, y_sc):
    """Full Mamba forward for one batch element: N_LAYER residual blocks + head."""
    x = x_ref[0]                                              # (L, D_MODEL) f32

    for layer in range(N_LAYER):                              # static unroll; weights stay VMEM-resident
        # ---- RMSNorm ----
        var = jnp.mean(x * x, axis=-1, keepdims=True)
        xn = x * jax.lax.rsqrt(var + EPS) * normw_ref[layer]  # (L, D_MODEL)

        # ---- in_proj: (L, D_MODEL) @ (D_MODEL, 2*D_INNER) -> 128 lanes (dense) ----
        xr = jnp.dot(xn, win_ref[layer], preferred_element_type=jnp.float32)
        xin = xr[:, :D_INNER]                                 # (L, D_INNER)
        res = xr[:, D_INNER:]                                 # (L, D_INNER)

        # ---- depthwise causal conv1d: each tap is a banded (L,L) shift matrix on the MXU ----
        convw = convw_ref[layer]                              # (D_CONV, D_INNER)
        acc = convb_ref[layer]                                # (1, D_INNER) bias (broadcasts)
        for j in range(D_CONV):
            # shift_ref[j] @ xin == rows of xin shifted down by (D_CONV-1-j), zero-filled
            shifted = jnp.dot(shift_ref[j], xin, preferred_element_type=jnp.float32)
            acc = acc + convw[j:j + 1, :] * shifted
        xc = acc * jax.nn.sigmoid(acc)                        # SiLU, (L, D_INNER)

        # ---- x_proj with dt_proj folded in (done host-side): one (L,64)@(64,96) matmul ----
        xdbl = jnp.dot(xc, wxc_ref[layer], preferred_element_type=jnp.float32)
        delta = jax.nn.softplus(xdbl[:, :D_INNER] + bdt_ref[layer])      # (L, D_INNER)
        bcols = xdbl[:, D_INNER:D_INNER + D_STATE][:, :, None]           # (L, D_STATE, 1)
        ccols = xdbl[:, D_INNER + D_STATE:][:, :, None]                  # (L, D_STATE, 1)

        # ---- selective scan; state layout (D_STATE, D_INNER): D_INNER on the lane axis ----
        a_t = at_ref[layer]                                   # (D_STATE, D_INNER) = (-exp(A_log))^T
        du = delta * xc                                       # (L, D_INNER)
        h = jnp.zeros((D_STATE, D_INNER), jnp.float32)
        for t in range(L):                                    # sequential recurrence, static unroll
            da = jnp.exp(delta[t:t + 1, :] * a_t)             # (D_STATE, D_INNER), EUP
            h = da * h + du[t:t + 1, :] * bcols[t]            # (D_STATE, D_INNER)
            # y_t[d] = sum_n h[n,d] * C_t[n]  -> sublane reduce, direct row store (no concat)
            y_sc[t, :] = jnp.sum(h * ccols[t], axis=0)

        y = y_sc[...]                                         # (L, D_INNER)
        y = y + xc * dvec_ref[layer]                          # + u * D
        y = y * (res * jax.nn.sigmoid(res))                   # gate with SiLU(res)

        # ---- out_proj + residual ----
        x = x + jnp.dot(y, wout_ref[layer], preferred_element_type=jnp.float32)

    # ---- final RMSNorm + tied lm_head (lane-dense, padded to VOCAB_PAD=128) ----
    var = jnp.mean(x * x, axis=-1, keepdims=True)
    xn = x * jax.lax.rsqrt(var + EPS) * normf_ref[...]
    o_ref[0] = jnp.dot(xn, etp_ref[...], preferred_element_type=jnp.float32)


# ------------------------------- wrapper ----------------------------------------
def _const_spec(shape):
    zeros = (0,) * len(shape)
    return pl.BlockSpec(shape, lambda b, _z=zeros: _z)


def mamba_forward(x_emb, layer_weights, shift_mats, norm_f_w, emb_t_pad):
    """x_emb: (B, L, D_MODEL) embeddings. Returns logits (B, L, VOCAB)."""
    weights = list(layer_weights) + [shift_mats, norm_f_w, emb_t_pad]

    in_specs = [pl.BlockSpec((1, L, D_MODEL), lambda b: (b, 0, 0))]
    in_specs += [_const_spec(w.shape) for w in weights]

    # Advisory cost estimate so XLA can schedule around the custom call.
    flops_layer = (2 * L * D_MODEL * 2 * D_INNER                       # in_proj
                   + D_CONV * (2 * L * L * D_INNER + 2 * L * D_INNER)  # conv shifts
                   + 2 * L * D_INNER * (D_INNER + 2 * D_STATE)         # x_proj (dt folded)
                   + 8 * L * D_STATE * D_INNER                         # scan elementwise
                   + 2 * L * D_INNER * D_MODEL)                        # out_proj
    flops = B * (N_LAYER * flops_layer + 2 * L * D_MODEL * VOCAB_PAD)
    transcendentals = B * N_LAYER * (L * D_STATE * D_INNER + 4 * L * D_INNER)
    bytes_accessed = int(x_emb.size) * 4 + sum(int(w.size) * 4 for w in weights) \
        + B * L * VOCAB_PAD * 4

    logits_pad = pl.pallas_call(
        mamba_fused_kernel,
        out_shape=jax.ShapeDtypeStruct((B, L, VOCAB_PAD), jnp.float32),
        grid=(B,),
        in_specs=in_specs,
        out_specs=pl.BlockSpec((1, L, VOCAB_PAD), lambda b: (b, 0, 0)),
        scratch_shapes=[pltpu.VMEM((L, D_INNER), jnp.float32)],        # scan output rows
        compiler_params=pltpu.CompilerParams(dimension_semantics=("parallel",)),
        cost_estimate=pl.CostEstimate(flops=flops,
                                      transcendentals=transcendentals,
                                      bytes_accessed=bytes_accessed),
    )(x_emb, *weights)
    return logits_pad[:, :, :VOCAB]


# ------------------------------- pure-JAX reference ------------------------------
def mamba_reference(x_emb, layer_weights, shift_mats, norm_f_w, emb_t_pad):
    """Same math as the kernel (and as the PyTorch module, with dt_proj folded)."""
    normw, win, convw, convb, wxc, bdt, a_t, dvec, wout = layer_weights
    x = x_emb
    for layer in range(N_LAYER):
        var = jnp.mean(x * x, axis=-1, keepdims=True)
        xn = x * jax.lax.rsqrt(var + EPS) * normw[layer]
        xr = jnp.einsum('bld,de->ble', xn, win[layer])
        xin, res = xr[..., :D_INNER], xr[..., D_INNER:]
        acc = jnp.zeros_like(xin) + convb[layer]
        for j in range(D_CONV):
            shifted = jnp.einsum('ts,bsd->btd', shift_mats[j], xin)
            acc = acc + convw[layer, j] * shifted
        xc = acc * jax.nn.sigmoid(acc)
        xdbl = jnp.einsum('bld,de->ble', xc, wxc[layer])
        delta = jax.nn.softplus(xdbl[..., :D_INNER] + bdt[layer])
        Bm = xdbl[..., D_INNER:D_INNER + D_STATE]
        Cm = xdbl[..., D_INNER + D_STATE:]
        du = delta * xc
        h = jnp.zeros((B, D_STATE, D_INNER), jnp.float32)
        ys = []
        for t in range(L):
            da = jnp.exp(delta[:, t, None, :] * a_t[layer][None])
            h = da * h + du[:, t, None, :] * Bm[:, t, :, None]
            ys.append(jnp.einsum('bnd,bn->bd', h, Cm[:, t]))
        y = jnp.stack(ys, axis=1)
        y = y + xc * dvec[layer]
        y = y * (res * jax.nn.sigmoid(res))
        x = x + jnp.einsum('bld,de->ble', y, wout[layer])
    var = jnp.mean(x * x, axis=-1, keepdims=True)
    xn = x * jax.lax.rsqrt(var + EPS) * norm_f_w
    return jnp.einsum('bld,dv->blv', xn, emb_t_pad)[:, :, :VOCAB]


# ------------------------------- param init -------------------------------------
def _linear_w(key, fan_in, fan_out):
    bound = 1.0 / math.sqrt(fan_in)
    return jax.random.uniform(key, (fan_in, fan_out), jnp.float32, -bound, bound)


def init_layer_params(key):
    """Returns [normw, win, convw, convb, wxc, bdt, a_t, dvec, wout] (kernel order)."""
    ks = jax.random.split(key, 6)
    normw = jnp.ones((1, D_MODEL), jnp.float32)
    win = _linear_w(ks[0], D_MODEL, 2 * D_INNER)
    # PyTorch depthwise conv weight is (D_INNER, 1, D_CONV); stored here as (D_CONV, D_INNER)
    cbound = 1.0 / math.sqrt(D_CONV)
    convw = jax.random.uniform(ks[1], (D_CONV, D_INNER), jnp.float32, -cbound, cbound)
    convb = jax.random.uniform(ks[2], (1, D_INNER), jnp.float32, -cbound, cbound)
    wx = _linear_w(ks[3], D_INNER, DT_RANK + 2 * D_STATE)
    wdt = _linear_w(ks[4], DT_RANK, D_INNER)
    dbound = 1.0 / math.sqrt(DT_RANK)
    bdt = jax.random.uniform(ks[5], (1, D_INNER), jnp.float32, -dbound, dbound)
    # Fold dt_proj into x_proj:  softplus((xc @ wx_dt) @ wdt + bdt) == softplus(xc @ (wx_dt@wdt) + bdt)
    w_delta = wx[:, :DT_RANK] @ wdt                                    # (D_INNER, D_INNER)
    wxc = jnp.concatenate([w_delta, wx[:, DT_RANK:]], axis=1)          # (D_INNER, D_INNER + 2*D_STATE)
    # A = -exp(A_log), precomputed host-side and transposed to (D_STATE, D_INNER)
    a_log = jnp.log(jnp.broadcast_to(
        jnp.arange(1, D_STATE + 1, dtype=jnp.float32)[None, :], (D_INNER, D_STATE)))
    a_t = (-jnp.exp(a_log)).T
    dvec = jnp.ones((1, D_INNER), jnp.float32)
    wout = _linear_w(jax.random.fold_in(key, 99), D_INNER, D_MODEL)
    return [normw, win, convw, convb, wxc, bdt, a_t, dvec, wout]


def make_shift_mats():
    """shift_mats[j] @ x == rows of x shifted down by (D_CONV-1-j), zero fill (causal taps)."""
    return jnp.stack([jnp.eye(L, k=-(D_CONV - 1 - j), dtype=jnp.float32)
                      for j in range(D_CONV)], axis=0)                 # (D_CONV, L, L)


# ---------------------------------- main -----------------------------------------
if __name__ == "__main__":
    key = jax.random.PRNGKey(0)
    k_emb, k_ids, k_layers = jax.random.split(key, 3)

    embedding = 0.02 * jax.random.normal(k_emb, (VOCAB, D_MODEL), jnp.float32)
    input_ids = jax.random.randint(k_ids, (B, L), 0, VOCAB)

    layer_keys = jax.random.split(k_layers, N_LAYER)
    per_layer = [init_layer_params(k) for k in layer_keys]
    # Stack per-layer weights with a leading N_LAYER axis (indexed statically in-kernel).
    stacked = [jnp.stack([lp[i] for lp in per_layer], axis=0) for i in range(len(per_layer[0]))]

    norm_f_w = jnp.ones((1, D_MODEL), jnp.float32)
    emb_t_pad = jnp.pad(embedding.T, ((0, 0), (0, VOCAB_PAD - VOCAB)))  # (D_MODEL, VOCAB_PAD)
    shift_mats = make_shift_mats()

    # Embedding lookup (token-id gather) kept as plain-JAX glue.
    # TODO(synk): the tiny (40x32) embedding gather has no clean single-kernel Pallas
    # equivalent at this scale; it stays as one XLA gather feeding the fused kernel.
    x_emb = jnp.take(embedding, input_ids, axis=0)                      # (B, L, D_MODEL)

    logits = mamba_forward(x_emb, stacked, shift_mats, norm_f_w, emb_t_pad)
    jax.block_until_ready(logits)

    assert logits.shape == (B, L, VOCAB)
    assert bool(jnp.all(jnp.isfinite(logits)))

    # Pure-JAX reference check (same folded weights; loose tol for MXU bf16-pass rounding).
    ref = mamba_reference(x_emb, stacked, shift_mats, norm_f_w, emb_t_pad)
    jax.block_until_ready(ref)
    max_err = float(jnp.max(jnp.abs(logits - ref)))
    assert max_err < 2e-2, f"kernel/reference mismatch: max abs err {max_err}"

    print("KERNEL_OK")
</pallas_src>

<mosaic_0001>
module attributes {stable_mosaic.version = 11 : i64} {
  func.func @mamba_fused_kernel(%arg0: i32, %arg1: memref<1x8x32xf32, #tpu.memory_space<vmem>>, %arg2: memref<2x1x32xf32, #tpu.memory_space<vmem>>, %arg3: memref<2x32x128xf32, #tpu.memory_space<vmem>>, %arg4: memref<2x4x64xf32, #tpu.memory_space<vmem>>, %arg5: memref<2x1x64xf32, #tpu.memory_space<vmem>>, %arg6: memref<2x64x96xf32, #tpu.memory_space<vmem>>, %arg7: memref<2x1x64xf32, #tpu.memory_space<vmem>>, %arg8: memref<2x16x64xf32, #tpu.memory_space<vmem>>, %arg9: memref<2x1x64xf32, #tpu.memory_space<vmem>>, %arg10: memref<2x64x32xf32, #tpu.memory_space<vmem>>, %arg11: memref<4x8x8xf32, #tpu.memory_space<vmem>>, %arg12: memref<1x32xf32, #tpu.memory_space<vmem>>, %arg13: memref<32x128xf32, #tpu.memory_space<vmem>>, %arg14: memref<1x8x128xf32, #tpu.memory_space<vmem>>, %arg15: memref<8x64xf32, #tpu.memory_space<vmem>>) attributes {dimension_semantics = [#tpu.dimension_semantics<parallel>], iteration_bounds = array<i64: 2>, scalar_prefetch = 0 : i64, scratch_operands = 1 : i64, tpu.core_type = #tpu.core_type<tc>, window_params = [{transform_indices = @transform_0, window_bounds = array<i64: 1, 8, 32>}, {pipeline_mode = #tpu.pipeline_mode<synchronous>, transform_indices = @transform_1, window_bounds = array<i64: 2, 1, 32>}, {pipeline_mode = #tpu.pipeline_mode<synchronous>, transform_indices = @transform_2, window_bounds = array<i64: 2, 32, 128>}, {pipeline_mode = #tpu.pipeline_mode<synchronous>, transform_indices = @transform_3, window_bounds = array<i64: 2, 4, 64>}, {pipeline_mode = #tpu.pipeline_mode<synchronous>, transform_indices = @transform_4, window_bounds = array<i64: 2, 1, 64>}, {pipeline_mode = #tpu.pipeline_mode<synchronous>, transform_indices = @transform_5, window_bounds = array<i64: 2, 64, 96>}, {pipeline_mode = #tpu.pipeline_mode<synchronous>, transform_indices = @transform_6, window_bounds = array<i64: 2, 1, 64>}, {pipeline_mode = #tpu.pipeline_mode<synchronous>, transform_indices = @transform_7, window_bounds = array<i64: 2, 16, 64>}, {pipeline_mode = #tpu.pipeline_mode<synchronous>, transform_indices = @transform_8, window_bounds = array<i64: 2, 1, 64>}, {pipeline_mode = #tpu.pipeline_mode<synchronous>, transform_indices = @transform_9, window_bounds = array<i64: 2, 64, 32>}, {pipeline_mode = #tpu.pipeline_mode<synchronous>, transform_indices = @transform_10, window_bounds = array<i64: 4, 8, 8>}, {pipeline_mode = #tpu.pipeline_mode<synchronous>, transform_indices = @transform_11, window_bounds = array<i64: 1, 32>}, {pipeline_mode = #tpu.pipeline_mode<synchronous>, transform_indices = @transform_12, window_bounds = array<i64: 32, 128>}, {transform_indices = @transform_13, window_bounds = array<i64: 1, 8, 128>}]} {
    %c0 = arith.constant 0 : index
    %c0_0 = arith.constant 0 : index
    %c0_1 = arith.constant 0 : index
    %0 = vector.load %arg1[%c0, %c0_0, %c0_1] : memref<1x8x32xf32, #tpu.memory_space<vmem>>, vector<1x8x32xf32>
    %1 = vector.shape_cast %0 : vector<1x8x32xf32> to vector<8x32xf32>
    %2 = arith.mulf %1, %1 : vector<8x32xf32>
    %cst = arith.constant dense<0.000000e+00> : vector<8xf32>
    %3 = vector.multi_reduction <add>, %2, %cst [1] : vector<8x32xf32> to vector<8xf32>
    %4 = vector.shape_cast %3 : vector<8xf32> to vector<8x1xf32>
    %cst_2 = arith.constant 3.200000e+01 : f32
    %5 = vector.broadcast %cst_2 : f32 to vector<8x1xf32>
    %6 = arith.divf %4, %5 : vector<8x1xf32>
    %cst_3 = arith.constant 9.99999974E-6 : f32
    %7 = vector.broadcast %cst_3 : f32 to vector<8x1xf32>
    %8 = arith.addf %6, %7 : vector<8x1xf32>
    %9 = math.rsqrt %8 : vector<8x1xf32>
    %10 = vector.broadcast %9 : vector<8x1xf32> to vector<8x32xf32>
    %11 = arith.mulf %1, %10 : vector<8x32xf32>
    %c0_4 = arith.constant 0 : index
    %c0_5 = arith.constant 0 : index
    %c0_6 = arith.constant 0 : index
    %12 = vector.load %arg2[%c0_4, %c0_5, %c0_6] : memref<2x1x32xf32, #tpu.memory_space<vmem>>, vector<1x1x32xf32>
    %13 = vector.shape_cast %12 : vector<1x1x32xf32> to vector<1x32xf32>
    %14 = vector.broadcast %13 : vector<1x32xf32> to vector<8x32xf32>
    %15 = arith.mulf %11, %14 : vector<8x32xf32>
    %c0_7 = arith.constant 0 : index
    %c0_8 = arith.constant 0 : index
    %c0_9 = arith.constant 0 : index
    %16 = vector.load %arg3[%c0_7, %c0_8, %c0_9] : memref<2x32x128xf32, #tpu.memory_space<vmem>>, vector<1x32x128xf32>
    %17 = vector.shape_cast %16 : vector<1x32x128xf32> to vector<32x128xf32>
    %cst_10 = arith.constant dense<0.000000e+00> : vector<8x128xf32>
    %18 = tpu.matmul %15, %17, %cst_10 {dimension_numbers = #tpu.dot_dimension_numbers<[1], [0], [0], [1], [0, 0, 1, 1], [], []>} : vector<8x32xf32>, vector<32x128xf32>, vector<8x128xf32> -> vector<8x128xf32>
    %19 = vector.extract_strided_slice %18 {offsets = [0, 0], sizes = [8, 64], strides = [1, 1]} : vector<8x128xf32> to vector<8x64xf32>
    %20 = vector.extract_strided_slice %18 {offsets = [0, 64], sizes = [8, 64], strides = [1, 1]} : vector<8x128xf32> to vector<8x64xf32>
    %c0_11 = arith.constant 0 : index
    %c0_12 = arith.constant 0 : index
    %c0_13 = arith.constant 0 : index
    %21 = vector.load %arg4[%c0_11, %c0_12, %c0_13] : memref<2x4x64xf32, #tpu.memory_space<vmem>>, vector<1x4x64xf32>
    %22 = vector.shape_cast %21 : vector<1x4x64xf32> to vector<4x64xf32>
    %c0_14 = arith.constant 0 : index
    %c0_15 = arith.constant 0 : index
    %c0_16 = arith.constant 0 : index
    %23 = vector.load %arg5[%c0_14, %c0_15, %c0_16] : memref<2x1x64xf32, #tpu.memory_space<vmem>>, vector<1x1x64xf32>
    %24 = vector.shape_cast %23 : vector<1x1x64xf32> to vector<1x64xf32>
    %c0_17 = arith.constant 0 : index
    %c0_18 = arith.constant 0 : index
    %c0_19 = arith.constant 0 : index
    %25 = vector.load %arg11[%c0_17, %c0_18, %c0_19] : memref<4x8x8xf32, #tpu.memory_space<vmem>>, vector<1x8x8xf32>
    %26 = vector.shape_cast %25 : vector<1x8x8xf32> to vector<8x8xf32>
    %cst_20 = arith.constant dense<0.000000e+00> : vector<8x64xf32>
    %27 = tpu.matmul %26, %19, %cst_20 {dimension_numbers = #tpu.dot_dimension_numbers<[1], [0], [0], [1], [0, 0, 1, 1], [], []>} : vector<8x8xf32>, vector<8x64xf32>, vector<8x64xf32> -> vector<8x64xf32>
    %28 = vector.extract_strided_slice %22 {offsets = [0, 0], sizes = [1, 64], strides = [1, 1]} : vector<4x64xf32> to vector<1x64xf32>
    %29 = vector.broadcast %28 : vector<1x64xf32> to vector<8x64xf32>
    %30 = arith.mulf %29, %27 : vector<8x64xf32>
    %31 = vector.broadcast %24 : vector<1x64xf32> to vector<8x64xf32>
    %32 = arith.addf %31, %30 : vector<8x64xf32>
    %c1 = arith.constant 1 : index
    %c0_21 = arith.constant 0 : index
    %c0_22 = arith.constant 0 : index
    %33 = vector.load %arg11[%c1, %c0_21, %c0_22] : memref<4x8x8xf32, #tpu.memory_space<vmem>>, vector<1x8x8xf32>
    %34 = vector.shape_cast %33 : vector<1x8x8xf32> to vector<8x8xf32>
    %cst_23 = arith.constant dense<0.000000e+00> : vector<8x64xf32>
    %35 = tpu.matmul %34, %19, %cst_23 {dimension_numbers = #tpu.dot_dimension_numbers<[1], [0], [0], [1], [0, 0, 1, 1], [], []>} : vector<8x8xf32>, vector<8x64xf32>, vector<8x64xf32> -> vector<8x64xf32>
    %36 = vector.extract_strided_slice %22 {offsets = [1, 0], sizes = [1, 64], strides = [1, 1]} : vector<4x64xf32> to vector<1x64xf32>
    %37 = vector.broadcast %36 : vector<1x64xf32> to vector<8x64xf32>
    %38 = arith.mulf %37, %35 : vector<8x64xf32>
    %39 = arith.addf %32, %38 : vector<8x64xf32>
    %c2 = arith.constant 2 : index
    %c0_24 = arith.constant 0 : index
    %c0_25 = arith.constant 0 : index
    %40 = vector.load %arg11[%c2, %c0_24, %c0_25] : memref<4x8x8xf32, #tpu.memory_space<vmem>>, vector<1x8x8xf32>
    %41 = vector.shape_cast %40 : vector<1x8x8xf32> to vector<8x8xf32>
    %cst_26 = arith.constant dense<0.000000e+00> : vector<8x64xf32>
    %42 = tpu.matmul %41, %19, %cst_26 {dimension_numbers = #tpu.dot_dimension_numbers<[1], [0], [0], [1], [0, 0, 1, 1], [], []>} : vector<8x8xf32>, vector<8x64xf32>, vector<8x64xf32> -> vector<8x64xf32>
    %43 = vector.extract_strided_slice %22 {offsets = [2, 0], sizes = [1, 64], strides = [1, 1]} : vector<4x64xf32> to vector<1x64xf32>
    %44 = vector.broadcast %43 : vector<1x64xf32> to vector<8x64xf32>
    %45 = arith.mulf %44, %42 : vector<8x64xf32>
    %46 = arith.addf %39, %45 : vector<8x64xf32>
    %c3 = arith.constant 3 : index
    %c0_27 = arith.constant 0 : index
    %c0_28 = arith.constant 0 : index
    %47 = vector.load %arg11[%c3, %c0_27, %c0_28] : memref<4x8x8xf32, #tpu.memory_space<vmem>>, vector<1x8x8xf32>
    %48 = vector.shape_cast %47 : vector<1x8x8xf32> to vector<8x8xf32>
    %cst_29 = arith.constant dense<0.000000e+00> : vector<8x64xf32>
    %49 = tpu.matmul %48, %19, %cst_29 {dimension_numbers = #tpu.dot_dimension_numbers<[1], [0], [0], [1], [0, 0, 1, 1], [], []>} : vector<8x8xf32>, vector<8x64xf32>, vector<8x64xf32> -> vector<8x64xf32>
    %50 = vector.extract_strided_slice %22 {offsets = [3, 0], sizes = [1, 64], strides = [1, 1]} : vector<4x64xf32> to vector<1x64xf32>
    %51 = vector.broadcast %50 : vector<1x64xf32> to vector<8x64xf32>
    %52 = arith.mulf %51, %49 : vector<8x64xf32>
    %53 = arith.addf %46, %52 : vector<8x64xf32>
    %54 = arith.negf %53 : vector<8x64xf32>
    %55 = math.exp %54 : vector<8x64xf32>
    %cst_30 = arith.constant 1.000000e+00 : f32
    %56 = vector.broadcast %cst_30 : f32 to vector<8x64xf32>
    %57 = arith.addf %56, %55 : vector<8x64xf32>
    %58 = arith.divf %56, %57 : vector<8x64xf32>
    %59 = arith.mulf %53, %58 : vector<8x64xf32>
    %c0_31 = arith.constant 0 : index
    %c0_32 = arith.constant 0 : index
    %c0_33 = arith.constant 0 : index
    %60 = vector.load %arg6[%c0_31, %c0_32, %c0_33] : memref<2x64x96xf32, #tpu.memory_space<vmem>>, vector<1x64x96xf32>
    %61 = vector.shape_cast %60 : vector<1x64x96xf32> to vector<64x96xf32>
    %cst_34 = arith.constant dense<0.000000e+00> : vector<8x96xf32>
    %62 = tpu.matmul %59, %61, %cst_34 {dimension_numbers = #tpu.dot_dimension_numbers<[1], [0], [0], [1], [0, 0, 1, 1], [], []>} : vector<8x64xf32>, vector<64x96xf32>, vector<8x96xf32> -> vector<8x96xf32>
    %63 = vector.extract_strided_slice %62 {offsets = [0, 0], sizes = [8, 64], strides = [1, 1]} : vector<8x96xf32> to vector<8x64xf32>
    %c0_35 = arith.constant 0 : index
    %c0_36 = arith.constant 0 : index
    %c0_37 = arith.constant 0 : index
    %64 = vector.load %arg7[%c0_35, %c0_36, %c0_37] : memref<2x1x64xf32, #tpu.memory_space<vmem>>, vector<1x1x64xf32>
    %65 = vector.shape_cast %64 : vector<1x1x64xf32> to vector<1x64xf32>
    %66 = vector.broadcast %65 : vector<1x64xf32> to vector<8x64xf32>
    %67 = arith.addf %63, %66 : vector<8x64xf32>
    %cst_38 = arith.constant 0.000000e+00 : f32
    %68 = vector.broadcast %cst_38 : f32 to vector<8x64xf32>
    %69 = arith.maximumf %67, %68 : vector<8x64xf32>
    %70 = vector.broadcast %cst_38 : f32 to vector<8x64xf32>
    %71 = arith.subf %67, %70 : vector<8x64xf32>
    %72 = arith.cmpf one, %71, %71 : vector<8x64xf32>
    %73 = vector.broadcast %cst_38 : f32 to vector<8x64xf32>
    %74 = arith.addf %67, %73 : vector<8x64xf32>
    %75 = math.absf %71 : vector<8x64xf32>
    %cst_39 = arith.constant 0.000000e+00 : f32
    %76 = vector.broadcast %cst_39 : f32 to vector<8x64xf32>
    %77 = arith.subf %76, %75 : vector<8x64xf32>
    %78 = math.exp %77 : vector<8x64xf32>
    %79 = math.log1p %78 : vector<8x64xf32>
    %80 = arith.addf %69, %79 : vector<8x64xf32>
    %81 = arith.select %72, %74, %80 : vector<8x64xi1>, vector<8x64xf32>
    %82 = vector.extract_strided_slice %62 {offsets = [0, 64], sizes = [8, 16], strides = [1, 1]} : vector<8x96xf32> to vector<8x16xf32>
    %83 = vector.shape_cast %82 : vector<8x16xf32> to vector<8x16x1xf32>
    %84 = vector.extract_strided_slice %62 {offsets = [0, 80], sizes = [8, 16], strides = [1, 1]} : vector<8x96xf32> to vector<8x16xf32>
    %85 = vector.shape_cast %84 : vector<8x16xf32> to vector<8x16x1xf32>
    %c0_40 = arith.constant 0 : index
    %c0_41 = arith.constant 0 : index
    %c0_42 = arith.constant 0 : index
    %86 = vector.load %arg8[%c0_40, %c0_41, %c0_42] : memref<2x16x64xf32, #tpu.memory_space<vmem>>, vector<1x16x64xf32>
    %87 = vector.shape_cast %86 : vector<1x16x64xf32> to vector<16x64xf32>
    %88 = arith.mulf %81, %59 : vector<8x64xf32>
    %cst_43 = arith.constant 0.000000e+00 : f32
    %89 = vector.broadcast %cst_43 : f32 to vector<16x64xf32>
    %90 = vector.extract_strided_slice %81 {offsets = [0, 0], sizes = [1, 64], strides = [1, 1]} : vector<8x64xf32> to vector<1x64xf32>
    %91 = vector.broadcast %90 : vector<1x64xf32> to vector<16x64xf32>
    %92 = arith.mulf %91, %87 : vector<16x64xf32>
    %93 = math.exp %92 : vector<16x64xf32>
    %94 = arith.mulf %93, %89 : vector<16x64xf32>
    %95 = vector.extract_strided_slice %88 {offsets = [0, 0], sizes = [1, 64], strides = [1, 1]} : vector<8x64xf32> to vector<1x64xf32>
    %96 = vector.extract_strided_slice %83 {offsets = [0, 0, 0], sizes = [1, 16, 1], strides = [1, 1, 1]} : vector<8x16x1xf32> to vector<1x16x1xf32>
    %97 = vector.shape_cast %96 : vector<1x16x1xf32> to vector<16x1xf32>
    %98 = vector.broadcast %95 : vector<1x64xf32> to vector<16x64xf32>
    %99 = vector.broadcast %97 : vector<16x1xf32> to vector<16x64xf32>
    %100 = arith.mulf %98, %99 : vector<16x64xf32>
    %101 = arith.addf %94, %100 : vector<16x64xf32>
    %102 = vector.extract_strided_slice %85 {offsets = [0, 0, 0], sizes = [1, 16, 1], strides = [1, 1, 1]} : vector<8x16x1xf32> to vector<1x16x1xf32>
    %103 = vector.shape_cast %102 : vector<1x16x1xf32> to vector<16x1xf32>
    %104 = vector.broadcast %103 : vector<16x1xf32> to vector<16x64xf32>
    %105 = arith.mulf %101, %104 : vector<16x64xf32>
    %cst_44 = arith.constant dense<0.000000e+00> : vector<64xf32>
    %106 = vector.multi_reduction <add>, %105, %cst_44 [0] : vector<16x64xf32> to vector<64xf32>
    %c0_45 = arith.constant 0 : index
    %c0_46 = arith.constant 0 : index
    %107 = vector.load %arg15[%c0_45, %c0_46] : memref<8x64xf32, #tpu.memory_space<vmem>>, vector<1x64xf32>
    %108 = vector.shape_cast %107 : vector<1x64xf32> to vector<64xf32>
    %109 = vector.shape_cast %106 : vector<64xf32> to vector<1x64xf32>
    tpu.vector_store %arg15[%c0_45, %c0_46], %109 {strides = array<i32>} : memref<8x64xf32, #tpu.memory_space<vmem>>, vector<1x64xf32>,
    %110 = vector.extract_strided_slice %81 {offsets = [1, 0], sizes = [1, 64], strides = [1, 1]} : vector<8x64xf32> to vector<1x64xf32>
    %111 = vector.broadcast %110 : vector<1x64xf32> to vector<16x64xf32>
    %112 = arith.mulf %111, %87 : vector<16x64xf32>
    %113 = math.exp %112 : vector<16x64xf32>
    %114 = arith.mulf %113, %101 : vector<16x64xf32>
    %115 = vector.extract_strided_slice %88 {offsets = [1, 0], sizes = [1, 64], strides = [1, 1]} : vector<8x64xf32> to vector<1x64xf32>
    %116 = vector.extract_strided_slice %83 {offsets = [1, 0, 0], sizes = [1, 16, 1], strides = [1, 1, 1]} : vector<8x16x1xf32> to vector<1x16x1xf32>
    %117 = vector.shape_cast %116 : vector<1x16x1xf32> to vector<16x1xf32>
    %118 = vector.broadcast %115 : vector<1x64xf32> to vector<16x64xf32>
    %119 = vector.broadcast %117 : vector<16x1xf32> to vector<16x64xf32>
    %120 = arith.mulf %118, %119 : vector<16x64xf32>
    %121 = arith.addf %114, %120 : vector<16x64xf32>
    %122 = vector.extract_strided_slice %85 {offsets = [1, 0, 0], sizes = [1, 16, 1], strides = [1, 1, 1]} : vector<8x16x1xf32> to vector<1x16x1xf32>
    %123 = vector.shape_cast %122 : vector<1x16x1xf32> to vector<16x1xf32>
    %124 = vector.broadcast %123 : vector<16x1xf32> to vector<16x64xf32>
    %125 = arith.mulf %121, %124 : vector<16x64xf32>
    %cst_47 = arith.constant dense<0.000000e+00> : vector<64xf32>
    %126 = vector.multi_reduction <add>, %125, %cst_47 [0] : vector<16x64xf32> to vector<64xf32>
    %c1_48 = arith.constant 1 : index
    %c0_49 = arith.constant 0 : index
    %127 = vector.load %arg15[%c1_48, %c0_49] : memref<8x64xf32, #tpu.memory_space<vmem>>, vector<1x64xf32>
    %128 = vector.shape_cast %127 : vector<1x64xf32> to vector<64xf32>
    %129 = vector.shape_cast %126 : vector<64xf32> to vector<1x64xf32>
    tpu.vector_store %arg15[%c1_48, %c0_49], %129 {strides = array<i32>} : memref<8x64xf32, #tpu.memory_space<vmem>>, vector<1x64xf32>,
    %130 = vector.extract_strided_slice %81 {offsets = [2, 0], sizes = [1, 64], strides = [1, 1]} : vector<8x64xf32> to vector<1x64xf32>
    %131 = vector.broadcast %130 : vector<1x64xf32> to vector<16x64xf32>
    %132 = arith.mulf %131, %87 : vector<16x64xf32>
    %133 = math.exp %132 : vector<16x64xf32>
    %134 = arith.mulf %133, %121 : vector<16x64xf32>
    %135 = vector.extract_strided_slice %88 {offsets = [2, 0], sizes = [1, 64], strides = [1, 1]} : vector<8x64xf32> to vector<1x64xf32>
    %136 = vector.extract_strided_slice %83 {offsets = [2, 0, 0], sizes = [1, 16, 1], strides = [1, 1, 1]} : vector<8x16x1xf32> to vector<1x16x1xf32>
    %137 = vector.shape_cast %136 : vector<1x16x1xf32> to vector<16x1xf32>
    %138 = vector.broadcast %135 : vector<1x64xf32> to vector<16x64xf32>
    %139 = vector.broadcast %137 : vector<16x1xf32> to vector<16x64xf32>
    %140 = arith.mulf %138, %139 : vector<16x64xf32>
    %141 = arith.addf %134, %140 : vector<16x64xf32>
    %142 = vector.extract_strided_slice %85 {offsets = [2, 0, 0], sizes = [1, 16, 1], strides = [1, 1, 1]} : vector<8x16x1xf32> to vector<1x16x1xf32>
    %143 = vector.shape_cast %142 : vector<1x16x1xf32> to vector<16x1xf32>
    %144 = vector.broadcast %143 : vector<16x1xf32> to vector<16x64xf32>
    %145 = arith.mulf %141, %144 : vector<16x64xf32>
    %cst_50 = arith.constant dense<0.000000e+00> : vector<64xf32>
    %146 = vector.multi_reduction <add>, %145, %cst_50 [0] : vector<16x64xf32> to vector<64xf32>
    %c2_51 = arith.constant 2 : index
    %c0_52 = arith.constant 0 : index
    %147 = vector.load %arg15[%c2_51, %c0_52] : memref<8x64xf32, #tpu.memory_space<vmem>>, vector<1x64xf32>
    %148 = vector.shape_cast %147 : vector<1x64xf32> to vector<64xf32>
    %149 = vector.shape_cast %146 : vector<64xf32> to vector<1x64xf32>
    tpu.vector_store %arg15[%c2_51, %c0_52], %149 {strides = array<i32>} : memref<8x64xf32, #tpu.memory_space<vmem>>, vector<1x64xf32>,
    %150 = vector.extract_strided_slice %81 {offsets = [3, 0], sizes = [1, 64], strides = [1, 1]} : vector<8x64xf32> to vector<1x64xf32>
    %151 = vector.broadcast %150 : vector<1x64xf32> to vector<16x64xf32>
    %152 = arith.mulf %151, %87 : vector<16x64xf32>
    %153 = math.exp %152 : vector<16x64xf32>
    %154 = arith.mulf %153, %141 : vector<16x64xf32>
    %155 = vector.extract_strided_slice %88 {offsets = [3, 0], sizes = [1, 64], strides = [1, 1]} : vector<8x64xf32> to vector<1x64xf32>
    %156 = vector.extract_strided_slice %83 {offsets = [3, 0, 0], sizes = [1, 16, 1], strides = [1, 1, 1]} : vector<8x16x1xf32> to vector<1x16x1xf32>
    %157 = vector.shape_cast %156 : vector<1x16x1xf32> to vector<16x1xf32>
    %158 = vector.broadcast %155 : vector<1x64xf32> to vector<16x64xf32>
    %159 = vector.broadcast %157 : vector<16x1xf32> to vector<16x64xf32>
    %160 = arith.mulf %158, %159 : vector<16x64xf32>
    %161 = arith.addf %154, %160 : vector<16x64xf32>
    %162 = vector.extract_strided_slice %85 {offsets = [3, 0, 0], sizes = [1, 16, 1], strides = [1, 1, 1]} : vector<8x16x1xf32> to vector<1x16x1xf32>
    %163 = vector.shape_cast %162 : vector<1x16x1xf32> to vector<16x1xf32>
    %164 = vector.broadcast %163 : vector<16x1xf32> to vector<16x64xf32>
    %165 = arith.mulf %161, %164 : vector<16x64xf32>
    %cst_53 = arith.constant dense<0.000000e+00> : vector<64xf32>
    %166 = vector.multi_reduction <add>, %165, %cst_53 [0] : vector<16x64xf32> to vector<64xf32>
    %c3_54 = arith.constant 3 : index
    %c0_55 = arith.constant 0 : index
    %167 = vector.load %arg15[%c3_54, %c0_55] : memref<8x64xf32, #tpu.memory_space<vmem>>, vector<1x64xf32>
    %168 = vector.shape_cast %167 : vector<1x64xf32> to vector<64xf32>
    %169 = vector.shape_cast %166 : vector<64xf32> to vector<1x64xf32>
    tpu.vector_store %arg15[%c3_54, %c0_55], %169 {strides = array<i32>} : memref<8x64xf32, #tpu.memory_space<vmem>>, vector<1x64xf32>,
    %170 = vector.extract_strided_slice %81 {offsets = [4, 0], sizes = [1, 64], strides = [1, 1]} : vector<8x64xf32> to vector<1x64xf32>
    %171 = vector.broadcast %170 : vector<1x64xf32> to vector<16x64xf32>
    %172 = arith.mulf %171, %87 : vector<16x64xf32>
    %173 = math.exp %172 : vector<16x64xf32>
    %174 = arith.mulf %173, %161 : vector<16x64xf32>
    %175 = vector.extract_strided_slice %88 {offsets = [4, 0], sizes = [1, 64], strides = [1, 1]} : vector<8x64xf32> to vector<1x64xf32>
    %176 = vector.extract_strided_slice %83 {offsets = [4, 0, 0], sizes = [1, 16, 1], strides = [1, 1, 1]} : vector<8x16x1xf32> to vector<1x16x1xf32>
    %177 = vector.shape_cast %176 : vector<1x16x1xf32> to vector<16x1xf32>
    %178 = vector.broadcast %175 : vector<1x64xf32> to vector<16x64xf32>
    %179 = vector.broadcast %177 : vector<16x1xf32> to vector<16x64xf32>
    %180 = arith.mulf %178, %179 : vector<16x64xf32>
    %181 = arith.addf %174, %180 : vector<16x64xf32>
    %182 = vector.extract_strided_slice %85 {offsets = [4, 0, 0], sizes = [1, 16, 1], strides = [1, 1, 1]} : vector<8x16x1xf32> to vector<1x16x1xf32>
    %183 = vector.shape_cast %182 : vector<1x16x1xf32> to vector<16x1xf32>
    %184 = vector.broadcast %183 : vector<16x1xf32> to vector<16x64xf32>
    %185 = arith.mulf %181, %184 : vector<16x64xf32>
    %cst_56 = arith.constant dense<0.000000e+00> : vector<64xf32>
    %186 = vector.multi_reduction <add>, %185, %cst_56 [0] : vector<16x64xf32> to vector<64xf32>
    %c4 = arith.constant 4 : index
    %c0_57 = arith.constant 0 : index
    %187 = vector.load %arg15[%c4, %c0_57] : memref<8x64xf32, #tpu.memory_space<vmem>>, vector<1x64xf32>
    %188 = vector.shape_cast %187 : vector<1x64xf32> to vector<64xf32>
    %189 = vector.shape_cast %186 : vector<64xf32> to vector<1x64xf32>
    tpu.vector_store %arg15[%c4, %c0_57], %189 {strides = array<i32>} : memref<8x64xf32, #tpu.memory_space<vmem>>, vector<1x64xf32>,
    %190 = vector.extract_strided_slice %81 {offsets = [5, 0], sizes = [1, 64], strides = [1, 1]} : vector<8x64xf32> to vector<1x64xf32>
    %191 = vector.broadcast %190 : vector<1x64xf32> to vector<16x64xf32>
    %192 = arith.mulf %191, %87 : vector<16x64xf32>
    %193 = math.exp %192 : vector<16x64xf32>
    %194 = arith.mulf %193, %181 : vector<16x64xf32>
    %195 = vector.extract_strided_slice %88 {offsets = [5, 0], sizes = [1, 64], strides = [1, 1]} : vector<8x64xf32> to vector<1x64xf32>
    %196 = vector.extract_strided_slice %83 {offsets = [5, 0, 0], sizes = [1, 16, 1], strides = [1, 1, 1]} : vector<8x16x1xf32> to vector<1x16x1xf32>
    %197 = vector.shape_cast %196 : vector<1x16x1xf32> to vector<16x1xf32>
    %198 = vector.broadcast %195 : vector<1x64xf32> to vector<16x64xf32>
    %199 = vector.broadcast %197 : vector<16x1xf32> to vector<16x64xf32>
    %200 = arith.mulf %198, %199 : vector<16x64xf32>
    %201 = arith.addf %194, %200 : vector<16x64xf32>
    %202 = vector.extract_strided_slice %85 {offsets = [5, 0, 0], sizes = [1, 16, 1], strides = [1, 1, 1]} : vector<8x16x1xf32> to vector<1x16x1xf32>
    %203 = vector.shape_cast %202 : vector<1x16x1xf32> to vector<16x1xf32>
    %204 = vector.broadcast %203 : vector<16x1xf32> to vector<16x64xf32>
    %205 = arith.mulf %201, %204 : vector<16x64xf32>
    %cst_58 = arith.constant dense<0.000000e+00> : vector<64xf32>
    %206 = vector.multi_reduction <add>, %205, %cst_58 [0] : vector<16x64xf32> to vector<64xf32>
    %c5 = arith.constant 5 : index
    %c0_59 = arith.constant 0 : index
    %207 = vector.load %arg15[%c5, %c0_59] : memref<8x64xf32, #tpu.memory_space<vmem>>, vector<1x64xf32>
    %208 = vector.shape_cast %207 : vector<1x64xf32> to vector<64xf32>
    %209 = vector.shape_cast %206 : vector<64xf32> to vector<1x64xf32>
    tpu.vector_store %arg15[%c5, %c0_59], %209 {strides = array<i32>} : memref<8x64xf32, #tpu.memory_space<vmem>>, vector<1x64xf32>,
    %210 = vector.extract_strided_slice %81 {offsets = [6, 0], sizes = [1, 64], strides = [1, 1]} : vector<8x64xf32> to vector<1x64xf32>
    %211 = vector.broadcast %210 : vector<1x64xf32> to vector<16x64xf32>
    %212 = arith.mulf %211, %87 : vector<16x64xf32>
    %213 = math.exp %212 : vector<16x64xf32>
    %214 = arith.mulf %213, %201 : vector<16x64xf32>
    %215 = vector.extract_strided_slice %88 {offsets = [6, 0], sizes = [1, 64], strides = [1, 1]} : vector<8x64xf32> to vector<1x64xf32>
    %216 = vector.extract_strided_slice %83 {offsets = [6, 0, 0], sizes = [1, 16, 1], strides = [1, 1, 1]} : vector<8x16x1xf32> to vector<1x16x1xf32>
    %217 = vector.shape_cast %216 : vector<1x16x1xf32> to vector<16x1xf32>
    %218 = vector.broadcast %215 : vector<1x64xf32> to vector<16x64xf32>
    %219 = vector.broadcast %217 : vector<16x1xf32> to vector<16x64xf32>
    %220 = arith.mulf %218, %219 : vector<16x64xf32>
    %221 = arith.addf %214, %220 : vector<16x64xf32>
    %222 = vector.extract_strided_slice %85 {offsets = [6, 0, 0], sizes = [1, 16, 1], strides = [1, 1, 1]} : vector<8x16x1xf32> to vector<1x16x1xf32>
    %223 = vector.shape_cast %222 : vector<1x16x1xf32> to vector<16x1xf32>
    %224 = vector.broadcast %223 : vector<16x1xf32> to vector<16x64xf32>
    %225 = arith.mulf %221, %224 : vector<16x64xf32>
    %cst_60 = arith.constant dense<0.000000e+00> : vector<64xf32>
    %226 = vector.multi_reduction <add>, %225, %cst_60 [0] : vector<16x64xf32> to vector<64xf32>
    %c6 = arith.constant 6 : index
    %c0_61 = arith.constant 0 : index
    %227 = vector.load %arg15[%c6, %c0_61] : memref<8x64xf32, #tpu.memory_space<vmem>>, vector<1x64xf32>
    %228 = vector.shape_cast %227 : vector<1x64xf32> to vector<64xf32>
    %229 = vector.shape_cast %226 : vector<64xf32> to vector<1x64xf32>
    tpu.vector_store %arg15[%c6, %c0_61], %229 {strides = array<i32>} : memref<8x64xf32, #tpu.memory_space<vmem>>, vector<1x64xf32>,
    %230 = vector.extract_strided_slice %81 {offsets = [7, 0], sizes = [1, 64], strides = [1, 1]} : vector<8x64xf32> to vector<1x64xf32>
    %231 = vector.broadcast %230 : vector<1x64xf32> to vector<16x64xf32>
    %232 = arith.mulf %231, %87 : vector<16x64xf32>
    %233 = math.exp %232 : vector<16x64xf32>
    %234 = arith.mulf %233, %221 : vector<16x64xf32>
    %235 = vector.extract_strided_slice %88 {offsets = [7, 0], sizes = [1, 64], strides = [1, 1]} : vector<8x64xf32> to vector<1x64xf32>
    %236 = vector.extract_strided_slice %83 {offsets = [7, 0, 0], sizes = [1, 16, 1], strides = [1, 1, 1]} : vector<8x16x1xf32> to vector<1x16x1xf32>
    %237 = vector.shape_cast %236 : vector<1x16x1xf32> to vector<16x1xf32>
    %238 = vector.broadcast %235 : vector<1x64xf32> to vector<16x64xf32>
    %239 = vector.broadcast %237 : vector<16x1xf32> to vector<16x64xf32>
    %240 = arith.mulf %238, %239 : vector<16x64xf32>
    %241 = arith.addf %234, %240 : vector<16x64xf32>
    %242 = vector.extract_strided_slice %85 {offsets = [7, 0, 0], sizes = [1, 16, 1], strides = [1, 1, 1]} : vector<8x16x1xf32> to vector<1x16x1xf32>
    %243 = vector.shape_cast %242 : vector<1x16x1xf32> to vector<16x1xf32>
    %244 = vector.broadcast %243 : vector<16x1xf32> to vector<16x64xf32>
    %245 = arith.mulf %241, %244 : vector<16x64xf32>
    %cst_62 = arith.constant dense<0.000000e+00> : vector<64xf32>
    %246 = vector.multi_reduction <add>, %245, %cst_62 [0] : vector<16x64xf32> to vector<64xf32>
    %c7 = arith.constant 7 : index
    %c0_63 = arith.constant 0 : index
    %247 = vector.load %arg15[%c7, %c0_63] : memref<8x64xf32, #tpu.memory_space<vmem>>, vector<1x64xf32>
    %248 = vector.shape_cast %247 : vector<1x64xf32> to vector<64xf32>
    %249 = vector.shape_cast %246 : vector<64xf32> to vector<1x64xf32>
    tpu.vector_store %arg15[%c7, %c0_63], %249 {strides = array<i32>} : memref<8x64xf32, #tpu.memory_space<vmem>>, vector<1x64xf32>,
    %c0_64 = arith.constant 0 : index
    %c0_65 = arith.constant 0 : index
    %250 = vector.load %arg15[%c0_64, %c0_65] : memref<8x64xf32, #tpu.memory_space<vmem>>, vector<8x64xf32>
    %c0_66 = arith.constant 0 : index
    %c0_67 = arith.constant 0 : index
    %c0_68 = arith.constant 0 : index
    %251 = vector.load %arg9[%c0_66, %c0_67, %c0_68] : memref<2x1x64xf32, #tpu.memory_space<vmem>>, vector<1x1x64xf32>
    %252 = vector.shape_cast %251 : vector<1x1x64xf32> to vector<1x64xf32>
    %253 = vector.broadcast %252 : vector<1x64xf32> to vector<8x64xf32>
    %254 = arith.mulf %59, %253 : vector<8x64xf32>
    %255 = arith.addf %250, %254 : vector<8x64xf32>
    %256 = arith.negf %20 : vector<8x64xf32>
    %257 = math.exp %256 : vector<8x64xf32>
    %cst_69 = arith.constant 1.000000e+00 : f32
    %258 = vector.broadcast %cst_69 : f32 to vector<8x64xf32>
    %259 = arith.addf %258, %257 : vector<8x64xf32>
    %260 = arith.divf %258, %259 : vector<8x64xf32>
    %261 = arith.mulf %20, %260 : vector<8x64xf32>
    %262 = arith.mulf %255, %261 : vector<8x64xf32>
    %c0_70 = arith.constant 0 : index
    %c0_71 = arith.constant 0 : index
    %c0_72 = arith.constant 0 : index
    %263 = vector.load %arg10[%c0_70, %c0_71, %c0_72] : memref<2x64x32xf32, #tpu.memory_space<vmem>>, vector<1x64x32xf32>
    %264 = vector.shape_cast %263 : vector<1x64x32xf32> to vector<64x32xf32>
    %cst_73 = arith.constant dense<0.000000e+00> : vector<8x32xf32>
    %265 = tpu.matmul %262, %264, %cst_73 {dimension_numbers = #tpu.dot_dimension_numbers<[1], [0], [0], [1], [0, 0, 1, 1], [], []>} : vector<8x64xf32>, vector<64x32xf32>, vector<8x32xf32> -> vector<8x32xf32>
    %266 = arith.addf %1, %265 : vector<8x32xf32>
    %267 = arith.mulf %266, %266 : vector<8x32xf32>
    %cst_74 = arith.constant dense<0.000000e+00> : vector<8xf32>
    %268 = vector.multi_reduction <add>, %267, %cst_74 [1] : vector<8x32xf32> to vector<8xf32>
    %269 = vector.shape_cast %268 : vector<8xf32> to vector<8x1xf32>
    %cst_75 = arith.constant 3.200000e+01 : f32
    %270 = vector.broadcast %cst_75 : f32 to vector<8x1xf32>
    %271 = arith.divf %269, %270 : vector<8x1xf32>
    %cst_76 = arith.constant 9.99999974E-6 : f32
    %272 = vector.broadcast %cst_76 : f32 to vector<8x1xf32>
    %273 = arith.addf %271, %272 : vector<8x1xf32>
    %274 = math.rsqrt %273 : vector<8x1xf32>
    %275 = vector.broadcast %274 : vector<8x1xf32> to vector<8x32xf32>
    %276 = arith.mulf %266, %275 : vector<8x32xf32>
    %c1_77 = arith.constant 1 : index
    %c0_78 = arith.constant 0 : index
    %c0_79 = arith.constant 0 : index
    %277 = vector.load %arg2[%c1_77, %c0_78, %c0_79] : memref<2x1x32xf32, #tpu.memory_space<vmem>>, vector<1x1x32xf32>
    %278 = vector.shape_cast %277 : vector<1x1x32xf32> to vector<1x32xf32>
    %279 = vector.broadcast %278 : vector<1x32xf32> to vector<8x32xf32>
    %280 = arith.mulf %276, %279 : vector<8x32xf32>
    %c1_80 = arith.constant 1 : index
    %c0_81 = arith.constant 0 : index
    %c0_82 = arith.constant 0 : index
    %281 = vector.load %arg3[%c1_80, %c0_81, %c0_82] : memref<2x32x128xf32, #tpu.memory_space<vmem>>, vector<1x32x128xf32>
    %282 = vector.shape_cast %281 : vector<1x32x128xf32> to vector<32x128xf32>
    %cst_83 = arith.constant dense<0.000000e+00> : vector<8x128xf32>
    %283 = tpu.matmul %280, %282, %cst_83 {dimension_numbers = #tpu.dot_dimension_numbers<[1], [0], [0], [1], [0, 0, 1, 1], [], []>} : vector<8x32xf32>, vector<32x128xf32>, vector<8x128xf32> -> vector<8x128xf32>
    %284 = vector.extract_strided_slice %283 {offsets = [0, 0], sizes = [8, 64], strides = [1, 1]} : vector<8x128xf32> to vector<8x64xf32>
    %285 = vector.extract_strided_slice %283 {offsets = [0, 64], sizes = [8, 64], strides = [1, 1]} : vector<8x128xf32> to vector<8x64xf32>
    %c1_84 = arith.constant 1 : index
    %c0_85 = arith.constant 0 : index
    %c0_86 = arith.constant 0 : index
    %286 = vector.load %arg4[%c1_84, %c0_85, %c0_86] : memref<2x4x64xf32, #tpu.memory_space<vmem>>, vector<1x4x64xf32>
    %287 = vector.shape_cast %286 : vector<1x4x64xf32> to vector<4x64xf32>
    %c1_87 = arith.constant 1 : index
    %c0_88 = arith.constant 0 : index
    %c0_89 = arith.constant 0 : index
    %288 = vector.load %arg5[%c1_87, %c0_88, %c0_89] : memref<2x1x64xf32, #tpu.memory_space<vmem>>, vector<1x1x64xf32>
    %289 = vector.shape_cast %288 : vector<1x1x64xf32> to vector<1x64xf32>
    %c0_90 = arith.constant 0 : index
    %c0_91 = arith.constant 0 : index
    %c0_92 = arith.constant 0 : index
    %290 = vector.load %arg11[%c0_90, %c0_91, %c0_92] : memref<4x8x8xf32, #tpu.memory_space<vmem>>, vector<1x8x8xf32>
    %291 = vector.shape_cast %290 : vector<1x8x8xf32> to vector<8x8xf32>
    %cst_93 = arith.constant dense<0.000000e+00> : vector<8x64xf32>
    %292 = tpu.matmul %291, %284, %cst_93 {dimension_numbers = #tpu.dot_dimension_numbers<[1], [0], [0], [1], [0, 0, 1, 1], [], []>} : vector<8x8xf32>, vector<8x64xf32>, vector<8x64xf32> -> vector<8x64xf32>
    %293 = vector.extract_strided_slice %287 {offsets = [0, 0], sizes = [1, 64], strides = [1, 1]} : vector<4x64xf32> to vector<1x64xf32>
    %294 = vector.broadcast %293 : vector<1x64xf32> to vector<8x64xf32>
    %295 = arith.mulf %294, %292 : vector<8x64xf32>
    %296 = vector.broadcast %289 : vector<1x64xf32> to vector<8x64xf32>
    %297 = arith.addf %296, %295 : vector<8x64xf32>
    %c1_94 = arith.constant 1 : index
    %c0_95 = arith.constant 0 : index
    %c0_96 = arith.constant 0 : index
    %298 = vector.load %arg11[%c1_94, %c0_95, %c0_96] : memref<4x8x8xf32, #tpu.memory_space<vmem>>, vector<1x8x8xf32>
    %299 = vector.shape_cast %298 : vector<1x8x8xf32> to vector<8x8xf32>
    %cst_97 = arith.constant dense<0.000000e+00> : vector<8x64xf32>
    %300 = tpu.matmul %299, %284, %cst_97 {dimension_numbers = #tpu.dot_dimension_numbers<[1], [0], [0], [1], [0, 0, 1, 1], [], []>} : vector<8x8xf32>, vector<8x64xf32>, vector<8x64xf32> -> vector<8x64xf32>
    %301 = vector.extract_strided_slice %287 {offsets = [1, 0], sizes = [1, 64], strides = [1, 1]} : vector<4x64xf32> to vector<1x64xf32>
    %302 = vector.broadcast %301 : vector<1x64xf32> to vector<8x64xf32>
    %303 = arith.mulf %302, %300 : vector<8x64xf32>
    %304 = arith.addf %297, %303 : vector<8x64xf32>
    %c2_98 = arith.constant 2 : index
    %c0_99 = arith.constant 0 : index
    %c0_100 = arith.constant 0 : index
    %305 = vector.load %arg11[%c2_98, %c0_99, %c0_100] : memref<4x8x8xf32, #tpu.memory_space<vmem>>, vector<1x8x8xf32>
    %306 = vector.shape_cast %305 : vector<1x8x8xf32> to vector<8x8xf32>
    %cst_101 = arith.constant dense<0.000000e+00> : vector<8x64xf32>
    %307 = tpu.matmul %306, %284, %cst_101 {dimension_numbers = #tpu.dot_dimension_numbers<[1], [0], [0], [1], [0, 0, 1, 1], [], []>} : vector<8x8xf32>, vector<8x64xf32>, vector<8x64xf32> -> vector<8x64xf32>
    %308 = vector.extract_strided_slice %287 {offsets = [2, 0], sizes = [1, 64], strides = [1, 1]} : vector<4x64xf32> to vector<1x64xf32>
    %309 = vector.broadcast %308 : vector<1x64xf32> to vector<8x64xf32>
    %310 = arith.mulf %309, %307 : vector<8x64xf32>
    %311 = arith.addf %304, %310 : vector<8x64xf32>
    %c3_102 = arith.constant 3 : index
    %c0_103 = arith.constant 0 : index
    %c0_104 = arith.constant 0 : index
    %312 = vector.load %arg11[%c3_102, %c0_103, %c0_104] : memref<4x8x8xf32, #tpu.memory_space<vmem>>, vector<1x8x8xf32>
    %313 = vector.shape_cast %312 : vector<1x8x8xf32> to vector<8x8xf32>
    %cst_105 = arith.constant dense<0.000000e+00> : vector<8x64xf32>
    %314 = tpu.matmul %313, %284, %cst_105 {dimension_numbers = #tpu.dot_dimension_numbers<[1], [0], [0], [1], [0, 0, 1, 1], [], []>} : vector<8x8xf32>, vector<8x64xf32>, vector<8x64xf32> -> vector<8x64xf32>
    %315 = vector.extract_strided_slice %287 {offsets = [3, 0], sizes = [1, 64], strides = [1, 1]} : vector<4x64xf32> to vector<1x64xf32>
    %316 = vector.broadcast %315 : vector<1x64xf32> to vector<8x64xf32>
    %317 = arith.mulf %316, %314 : vector<8x64xf32>
    %318 = arith.addf %311, %317 : vector<8x64xf32>
    %319 = arith.negf %318 : vector<8x64xf32>
    %320 = math.exp %319 : vector<8x64xf32>
    %cst_106 = arith.constant 1.000000e+00 : f32
    %321 = vector.broadcast %cst_106 : f32 to vector<8x64xf32>
    %322 = arith.addf %321, %320 : vector<8x64xf32>
    %323 = arith.divf %321, %322 : vector<8x64xf32>
    %324 = arith.mulf %318, %323 : vector<8x64xf32>
    %c1_107 = arith.constant 1 : index
    %c0_108 = arith.constant 0 : index
    %c0_109 = arith.constant 0 : index
    %325 = vector.load %arg6[%c1_107, %c0_108, %c0_109] : memref<2x64x96xf32, #tpu.memory_space<vmem>>, vector<1x64x96xf32>
    %326 = vector.shape_cast %325 : vector<1x64x96xf32> to vector<64x96xf32>
    %cst_110 = arith.constant dense<0.000000e+00> : vector<8x96xf32>
    %327 = tpu.matmul %324, %326, %cst_110 {dimension_numbers = #tpu.dot_dimension_numbers<[1], [0], [0], [1], [0, 0, 1, 1], [], []>} : vector<8x64xf32>, vector<64x96xf32>, vector<8x96xf32> -> vector<8x96xf32>
    %328 = vector.extract_strided_slice %327 {offsets = [0, 0], sizes = [8, 64], strides = [1, 1]} : vector<8x96xf32> to vector<8x64xf32>
    %c1_111 = arith.constant 1 : index
    %c0_112 = arith.constant 0 : index
    %c0_113 = arith.constant 0 : index
    %329 = vector.load %arg7[%c1_111, %c0_112, %c0_113] : memref<2x1x64xf32, #tpu.memory_space<vmem>>, vector<1x1x64xf32>
    %330 = vector.shape_cast %329 : vector<1x1x64xf32> to vector<1x64xf32>
    %331 = vector.broadcast %330 : vector<1x64xf32> to vector<8x64xf32>
    %332 = arith.addf %328, %331 : vector<8x64xf32>
    %cst_114 = arith.constant 0.000000e+00 : f32
    %333 = vector.broadcast %cst_114 : f32 to vector<8x64xf32>
    %334 = arith.maximumf %332, %333 : vector<8x64xf32>
    %335 = vector.broadcast %cst_114 : f32 to vector<8x64xf32>
    %336 = arith.subf %332, %335 : vector<8x64xf32>
    %337 = arith.cmpf one, %336, %336 : vector<8x64xf32>
    %338 = vector.broadcast %cst_114 : f32 to vector<8x64xf32>
    %339 = arith.addf %332, %338 : vector<8x64xf32>
    %340 = math.absf %336 : vector<8x64xf32>
    %cst_115 = arith.constant 0.000000e+00 : f32
    %341 = vector.broadcast %cst_115 : f32 to vector<8x64xf32>
    %342 = arith.subf %341, %340 : vector<8x64xf32>
    %343 = math.exp %342 : vector<8x64xf32>
    %344 = math.log1p %343 : vector<8x64xf32>
    %345 = arith.addf %334, %344 : vector<8x64xf32>
    %346 = arith.select %337, %339, %345 : vector<8x64xi1>, vector<8x64xf32>
    %347 = vector.extract_strided_slice %327 {offsets = [0, 64], sizes = [8, 16], strides = [1, 1]} : vector<8x96xf32> to vector<8x16xf32>
    %348 = vector.shape_cast %347 : vector<8x16xf32> to vector<8x16x1xf32>
    %349 = vector.extract_strided_slice %327 {offsets = [0, 80], sizes = [8, 16], strides = [1, 1]} : vector<8x96xf32> to vector<8x16xf32>
    %350 = vector.shape_cast %349 : vector<8x16xf32> to vector<8x16x1xf32>
    %c1_116 = arith.constant 1 : index
    %c0_117 = arith.constant 0 : index
    %c0_118 = arith.constant 0 : index
    %351 = vector.load %arg8[%c1_116, %c0_117, %c0_118] : memref<2x16x64xf32, #tpu.memory_space<vmem>>, vector<1x16x64xf32>
    %352 = vector.shape_cast %351 : vector<1x16x64xf32> to vector<16x64xf32>
    %353 = arith.mulf %346, %324 : vector<8x64xf32>
    %cst_119 = arith.constant 0.000000e+00 : f32
    %354 = vector.broadcast %cst_119 : f32 to vector<16x64xf32>
    %355 = vector.extract_strided_slice %346 {offsets = [0, 0], sizes = [1, 64], strides = [1, 1]} : vector<8x64xf32> to vector<1x64xf32>
    %356 = vector.broadcast %355 : vector<1x64xf32> to vector<16x64xf32>
    %357 = arith.mulf %356, %352 : vector<16x64xf32>
    %358 = math.exp %357 : vector<16x64xf32>
    %359 = arith.mulf %358, %354 : vector<16x64xf32>
    %360 = vector.extract_strided_slice %353 {offsets = [0, 0], sizes = [1, 64], strides = [1, 1]} : vector<8x64xf32> to vector<1x64xf32>
    %361 = vector.extract_strided_slice %348 {offsets = [0, 0, 0], sizes = [1, 16, 1], strides = [1, 1, 1]} : vector<8x16x1xf32> to vector<1x16x1xf32>
    %362 = vector.shape_cast %361 : vector<1x16x1xf32> to vector<16x1xf32>
    %363 = vector.broadcast %360 : vector<1x64xf32> to vector<16x64xf32>
    %364 = vector.broadcast %362 : vector<16x1xf32> to vector<16x64xf32>
    %365 = arith.mulf %363, %364 : vector<16x64xf32>
    %366 = arith.addf %359, %365 : vector<16x64xf32>
    %367 = vector.extract_strided_slice %350 {offsets = [0, 0, 0], sizes = [1, 16, 1], strides = [1, 1, 1]} : vector<8x16x1xf32> to vector<1x16x1xf32>
    %368 = vector.shape_cast %367 : vector<1x16x1xf32> to vector<16x1xf32>
    %369 = vector.broadcast %368 : vector<16x1xf32> to vector<16x64xf32>
    %370 = arith.mulf %366, %369 : vector<16x64xf32>
    %cst_120 = arith.constant dense<0.000000e+00> : vector<64xf32>
    %371 = vector.multi_reduction <add>, %370, %cst_120 [0] : vector<16x64xf32> to vector<64xf32>
    %c0_121 = arith.constant 0 : index
    %c0_122 = arith.constant 0 : index
    %372 = vector.load %arg15[%c0_121, %c0_122] : memref<8x64xf32, #tpu.memory_space<vmem>>, vector<1x64xf32>
    %373 = vector.shape_cast %372 : vector<1x64xf32> to vector<64xf32>
    %374 = vector.shape_cast %371 : vector<64xf32> to vector<1x64xf32>
    tpu.vector_store %arg15[%c0_121, %c0_122], %374 {strides = array<i32>} : memref<8x64xf32, #tpu.memory_space<vmem>>, vector<1x64xf32>,
    %375 = vector.extract_strided_slice %346 {offsets = [1, 0], sizes = [1, 64], strides = [1, 1]} : vector<8x64xf32> to vector<1x64xf32>
    %376 = vector.broadcast %375 : vector<1x64xf32> to vector<16x64xf32>
    %377 = arith.mulf %376, %352 : vector<16x64xf32>
    %378 = math.exp %377 : vector<16x64xf32>
    %379 = arith.mulf %378, %366 : vector<16x64xf32>
    %380 = vector.extract_strided_slice %353 {offsets = [1, 0], sizes = [1, 64], strides = [1, 1]} : vector<8x64xf32> to vector<1x64xf32>
    %381 = vector.extract_strided_slice %348 {offsets = [1, 0, 0], sizes = [1, 16, 1], strides = [1, 1, 1]} : vector<8x16x1xf32> to vector<1x16x1xf32>
    %382 = vector.shape_cast %381 : vector<1x16x1xf32> to vector<16x1xf32>
    %383 = vector.broadcast %380 : vector<1x64xf32> to vector<16x64xf32>
    %384 = vector.broadcast %382 : vector<16x1xf32> to vector<16x64xf32>
    %385 = arith.mulf %383, %384 : vector<16x64xf32>
    %386 = arith.addf %379, %385 : vector<16x64xf32>
    %387 = vector.extract_strided_slice %350 {offsets = [1, 0, 0], sizes = [1, 16, 1], strides = [1, 1, 1]} : vector<8x16x1xf32> to vector<1x16x1xf32>
    %388 = vector.shape_cast %387 : vector<1x16x1xf32> to vector<16x1xf32>
    %389 = vector.broadcast %388 : vector<16x1xf32> to vector<16x64xf32>
    %390 = arith.mulf %386, %389 : vector<16x64xf32>
    %cst_123 = arith.constant dense<0.000000e+00> : vector<64xf32>
    %391 = vector.multi_reduction <add>, %390, %cst_123 [0] : vector<16x64xf32> to vector<64xf32>
    %c1_124 = arith.constant 1 : index
    %c0_125 = arith.constant 0 : index
    %392 = vector.load %arg15[%c1_124, %c0_125] : memref<8x64xf32, #tpu.memory_space<vmem>>, vector<1x64xf32>
    %393 = vector.shape_cast %392 : vector<1x64xf32> to vector<64xf32>
    %394 = vector.shape_cast %391 : vector<64xf32> to vector<1x64xf32>
    tpu.vector_store %arg15[%c1_124, %c0_125], %394 {strides = array<i32>} : memref<8x64xf32, #tpu.memory_space<vmem>>, vector<1x64xf32>,
    %395 = vector.extract_strided_slice %346 {offsets = [2, 0], sizes = [1, 64], strides = [1, 1]} : vector<8x64xf32> to vector<1x64xf32>
    %396 = vector.broadcast %395 : vector<1x64xf32> to vector<16x64xf32>
    %397 = arith.mulf %396, %352 : vector<16x64xf32>
    %398 = math.exp %397 : vector<16x64xf32>
    %399 = arith.mulf %398, %386 : vector<16x64xf32>
    %400 = vector.extract_strided_slice %353 {offsets = [2, 0], sizes = [1, 64], strides = [1, 1]} : vector<8x64xf32> to vector<1x64xf32>
    %401 = vector.extract_strided_slice %348 {offsets = [2, 0, 0], sizes = [1, 16, 1], strides = [1, 1, 1]} : vector<8x16x1xf32> to vector<1x16x1xf32>
    %402 = vector.shape_cast %401 : vector<1x16x1xf32> to vector<16x1xf32>
    %403 = vector.broadcast %400 : vector<1x64xf32> to vector<16x64xf32>
    %404 = vector.broadcast %402 : vector<16x1xf32> to vector<16x64xf32>
    %405 = arith.mulf %403, %404 : vector<16x64xf32>
    %406 = arith.addf %399, %405 : vector<16x64xf32>
    %407 = vector.extract_strided_slice %350 {offsets = [2, 0, 0], sizes = [1, 16, 1], strides = [1, 1, 1]} : vector<8x16x1xf32> to vector<1x16x1xf32>
    %408 = vector.shape_cast %407 : vector<1x16x1xf32> to vector<16x1xf32>
    %409 = vector.broadcast %408 : vector<16x1xf32> to vector<16x64xf32>
    %410 = arith.mulf %406, %409 : vector<16x64xf32>
    %cst_126 = arith.constant dense<0.000000e+00> : vector<64xf32>
    %411 = vector.multi_reduction <add>, %410, %cst_126 [0] : vector<16x64xf32> to vector<64xf32>
    %c2_127 = arith.constant 2 : index
    %c0_128 = arith.constant 0 : index
    %412 = vector.load %arg15[%c2_127, %c0_128] : memref<8x64xf32, #tpu.memory_space<vmem>>, vector<1x64xf32>
    %413 = vector.shape_cast %412 : vector<1x64xf32> to vector<64xf32>
    %414 = vector.shape_cast %411 : vector<64xf32> to vector<1x64xf32>
    tpu.vector_store %arg15[%c2_127, %c0_128], %414 {strides = array<i32>} : memref<8x64xf32, #tpu.memory_space<vmem>>, vector<1x64xf32>,
    %415 = vector.extract_strided_slice %346 {offsets = [3, 0], sizes = [1, 64], strides = [1, 1]} : vector<8x64xf32> to vector<1x64xf32>
    %416 = vector.broadcast %415 : vector<1x64xf32> to vector<16x64xf32>
    %417 = arith.mulf %416, %352 : vector<16x64xf32>
    %418 = math.exp %417 : vector<16x64xf32>
    %419 = arith.mulf %418, %406 : vector<16x64xf32>
    %420 = vector.extract_strided_slice %353 {offsets = [3, 0], sizes = [1, 64], strides = [1, 1]} : vector<8x64xf32> to vector<1x64xf32>
    %421 = vector.extract_strided_slice %348 {offsets = [3, 0, 0], sizes = [1, 16, 1], strides = [1, 1, 1]} : vector<8x16x1xf32> to vector<1x16x1xf32>
    %422 = vector.shape_cast %421 : vector<1x16x1xf32> to vector<16x1xf32>
    %423 = vector.broadcast %420 : vector<1x64xf32> to vector<16x64xf32>
    %424 = vector.broadcast %422 : vector<16x1xf32> to vector<16x64xf32>
    %425 = arith.mulf %423, %424 : vector<16x64xf32>
    %426 = arith.addf %419, %425 : vector<16x64xf32>
    %427 = vector.extract_strided_slice %350 {offsets = [3, 0, 0], sizes = [1, 16, 1], strides = [1, 1, 1]} : vector<8x16x1xf32> to vector<1x16x1xf32>
    %428 = vector.shape_cast %427 : vector<1x16x1xf32> to vector<16x1xf32>
    %429 = vector.broadcast %428 : vector<16x1xf32> to vector<16x64xf32>
    %430 = arith.mulf %426, %429 : vector<16x64xf32>
    %cst_129 = arith.constant dense<0.000000e+00> : vector<64xf32>
    %431 = vector.multi_reduction <add>, %430, %cst_129 [0] : vector<16x64xf32> to vector<64xf32>
    %c3_130 = arith.constant 3 : index
    %c0_131 = arith.constant 0 : index
    %432 = vector.load %arg15[%c3_130, %c0_131] : memref<8x64xf32, #tpu.memory_space<vmem>>, vector<1x64xf32>
    %433 = vector.shape_cast %432 : vector<1x64xf32> to vector<64xf32>
    %434 = vector.shape_cast %431 : vector<64xf32> to vector<1x64xf32>
    tpu.vector_store %arg15[%c3_130, %c0_131], %434 {strides = array<i32>} : memref<8x64xf32, #tpu.memory_space<vmem>>, vector<1x64xf32>,
    %435 = vector.extract_strided_slice %346 {offsets = [4, 0], sizes = [1, 64], strides = [1, 1]} : vector<8x64xf32> to vector<1x64xf32>
    %436 = vector.broadcast %435 : vector<1x64xf32> to vector<16x64xf32>
    %437 = arith.mulf %436, %352 : vector<16x64xf32>
    %438 = math.exp %437 : vector<16x64xf32>
    %439 = arith.mulf %438, %426 : vector<16x64xf32>
    %440 = vector.extract_strided_slice %353 {offsets = [4, 0], sizes = [1, 64], strides = [1, 1]} : vector<8x64xf32> to vector<1x64xf32>
    %441 = vector.extract_strided_slice %348 {offsets = [4, 0, 0], sizes = [1, 16, 1], strides = [1, 1, 1]} : vector<8x16x1xf32> to vector<1x16x1xf32>
    %442 = vector.shape_cast %441 : vector<1x16x1xf32> to vector<16x1xf32>
    %443 = vector.broadcast %440 : vector<1x64xf32> to vector<16x64xf32>
    %444 = vector.broadcast %442 : vector<16x1xf32> to vector<16x64xf32>
    %445 = arith.mulf %443, %444 : vector<16x64xf32>
    %446 = arith.addf %439, %445 : vector<16x64xf32>
    %447 = vector.extract_strided_slice %350 {offsets = [4, 0, 0], sizes = [1, 16, 1], strides = [1, 1, 1]} : vector<8x16x1xf32> to vector<1x16x1xf32>
    %448 = vector.shape_cast %447 : vector<1x16x1xf32> to vector<16x1xf32>
    %449 = vector.broadcast %448 : vector<16x1xf32> to vector<16x64xf32>
    %450 = arith.mulf %446, %449 : vector<16x64xf32>
    %cst_132 = arith.constant dense<0.000000e+00> : vector<64xf32>
    %451 = vector.multi_reduction <add>, %450, %cst_132 [0] : vector<16x64xf32> to vector<64xf32>
    %c4_133 = arith.constant 4 : index
    %c0_134 = arith.constant 0 : index
    %452 = vector.load %arg15[%c4_133, %c0_134] : memref<8x64xf32, #tpu.memory_space<vmem>>, vector<1x64xf32>
    %453 = vector.shape_cast %452 : vector<1x64xf32> to vector<64xf32>
    %454 = vector.shape_cast %451 : vector<64xf32> to vector<1x64xf32>
    tpu.vector_store %arg15[%c4_133, %c0_134], %454 {strides = array<i32>} : memref<8x64xf32, #tpu.memory_space<vmem>>, vector<1x64xf32>,
    %455 = vector.extract_strided_slice %346 {offsets = [5, 0], sizes = [1, 64], strides = [1, 1]} : vector<8x64xf32> to vector<1x64xf32>
    %456 = vector.broadcast %455 : vector<1x64xf32> to vector<16x64xf32>
    %457 = arith.mulf %456, %352 : vector<16x64xf32>
    %458 = math.exp %457 : vector<16x64xf32>
    %459 = arith.mulf %458, %446 : vector<16x64xf32>
    %460 = vector.extract_strided_slice %353 {offsets = [5, 0], sizes = [1, 64], strides = [1, 1]} : vector<8x64xf32> to vector<1x64xf32>
    %461 = vector.extract_strided_slice %348 {offsets = [5, 0, 0], sizes = [1, 16, 1], strides = [1, 1, 1]} : vector<8x16x1xf32> to vector<1x16x1xf32>
    %462 = vector.shape_cast %461 : vector<1x16x1xf32> to vector<16x1xf32>
    %463 = vector.broadcast %460 : vector<1x64xf32> to vector<16x64xf32>
    %464 = vector.broadcast %462 : vector<16x1xf32> to vector<16x64xf32>
    %465 = arith.mulf %463, %464 : vector<16x64xf32>
    %466 = arith.addf %459, %465 : vector<16x64xf32>
    %467 = vector.extract_strided_slice %350 {offsets = [5, 0, 0], sizes = [1, 16, 1], strides = [1, 1, 1]} : vector<8x16x1xf32> to vector<1x16x1xf32>
    %468 = vector.shape_cast %467 : vector<1x16x1xf32> to vector<16x1xf32>
    %469 = vector.broadcast %468 : vector<16x1xf32> to vector<16x64xf32>
    %470 = arith.mulf %466, %469 : vector<16x64xf32>
    %cst_135 = arith.constant dense<0.000000e+00> : vector<64xf32>
    %471 = vector.multi_reduction <add>, %470, %cst_135 [0] : vector<16x64xf32> to vector<64xf32>
    %c5_136 = arith.constant 5 : index
    %c0_137 = arith.constant 0 : index
    %472 = vector.load %arg15[%c5_136, %c0_137] : memref<8x64xf32, #tpu.memory_space<vmem>>, vector<1x64xf32>
    %473 = vector.shape_cast %472 : vector<1x64xf32> to vector<64xf32>
    %474 = vector.shape_cast %471 : vector<64xf32> to vector<1x64xf32>
    tpu.vector_store %arg15[%c5_136, %c0_137], %474 {strides = array<i32>} : memref<8x64xf32, #tpu.memory_space<vmem>>, vector<1x64xf32>,
    %475 = vector.extract_strided_slice %346 {offsets = [6, 0], sizes = [1, 64], strides = [1, 1]} : vector<8x64xf32> to vector<1x64xf32>
    %476 = vector.broadcast %475 : vector<1x64xf32> to vector<16x64xf32>
    %477 = arith.mulf %476, %352 : vector<16x64xf32>
    %478 = math.exp %477 : vector<16x64xf32>
    %479 = arith.mulf %478, %466 : vector<16x64xf32>
    %480 = vector.extract_strided_slice %353 {offsets = [6, 0], sizes = [1, 64], strides = [1, 1]} : vector<8x64xf32> to vector<1x64xf32>
    %481 = vector.extract_strided_slice %348 {offsets = [6, 0, 0], sizes = [1, 16, 1], strides = [1, 1, 1]} : vector<8x16x1xf32> to vector<1x16x1xf32>
    %482 = vector.shape_cast %481 : vector<1x16x1xf32> to vector<16x1xf32>
    %483 = vector.broadcast %480 : vector<1x64xf32> to vector<16x64xf32>
    %484 = vector.broadcast %482 : vector<16x1xf32> to vector<16x64xf32>
    %485 = arith.mulf %483, %484 : vector<16x64xf32>
    %486 = arith.addf %479, %485 : vector<16x64xf32>
    %487 = vector.extract_strided_slice %350 {offsets = [6, 0, 0], sizes = [1, 16, 1], strides = [1, 1, 1]} : vector<8x16x1xf32> to vector<1x16x1xf32>
    %488 = vector.shape_cast %487 : vector<1x16x1xf32> to vector<16x1xf32>
    %489 = vector.broadcast %488 : vector<16x1xf32> to vector<16x64xf32>
    %490 = arith.mulf %486, %489 : vector<16x64xf32>
    %cst_138 = arith.constant dense<0.000000e+00> : vector<64xf32>
    %491 = vector.multi_reduction <add>, %490, %cst_138 [0] : vector<16x64xf32> to vector<64xf32>
    %c6_139 = arith.constant 6 : index
    %c0_140 = arith.constant 0 : index
    %492 = vector.load %arg15[%c6_139, %c0_140] : memref<8x64xf32, #tpu.memory_space<vmem>>, vector<1x64xf32>
    %493 = vector.shape_cast %492 : vector<1x64xf32> to vector<64xf32>
    %494 = vector.shape_cast %491 : vector<64xf32> to vector<1x64xf32>
    tpu.vector_store %arg15[%c6_139, %c0_140], %494 {strides = array<i32>} : memref<8x64xf32, #tpu.memory_space<vmem>>, vector<1x64xf32>,
    %495 = vector.extract_strided_slice %346 {offsets = [7, 0], sizes = [1, 64], strides = [1, 1]} : vector<8x64xf32> to vector<1x64xf32>
    %496 = vector.broadcast %495 : vector<1x64xf32> to vector<16x64xf32>
    %497 = arith.mulf %496, %352 : vector<16x64xf32>
    %498 = math.exp %497 : vector<16x64xf32>
    %499 = arith.mulf %498, %486 : vector<16x64xf32>
    %500 = vector.extract_strided_slice %353 {offsets = [7, 0], sizes = [1, 64], strides = [1, 1]} : vector<8x64xf32> to vector<1x64xf32>
    %501 = vector.extract_strided_slice %348 {offsets = [7, 0, 0], sizes = [1, 16, 1], strides = [1, 1, 1]} : vector<8x16x1xf32> to vector<1x16x1xf32>
    %502 = vector.shape_cast %501 : vector<1x16x1xf32> to vector<16x1xf32>
    %503 = vector.broadcast %500 : vector<1x64xf32> to vector<16x64xf32>
    %504 = vector.broadcast %502 : vector<16x1xf32> to vector<16x64xf32>
    %505 = arith.mulf %503, %504 : vector<16x64xf32>
    %506 = arith.addf %499, %505 : vector<16x64xf32>
    %507 = vector.extract_strided_slice %350 {offsets = [7, 0, 0], sizes = [1, 16, 1], strides = [1, 1, 1]} : vector<8x16x1xf32> to vector<1x16x1xf32>
    %508 = vector.shape_cast %507 : vector<1x16x1xf32> to vector<16x1xf32>
    %509 = vector.broadcast %508 : vector<16x1xf32> to vector<16x64xf32>
    %510 = arith.mulf %506, %509 : vector<16x64xf32>
    %cst_141 = arith.constant dense<0.000000e+00> : vector<64xf32>
    %511 = vector.multi_reduction <add>, %510, %cst_141 [0] : vector<16x64xf32> to vector<64xf32>
    %c7_142 = arith.constant 7 : index
    %c0_143 = arith.constant 0 : index
    %512 = vector.load %arg15[%c7_142, %c0_143] : memref<8x64xf32, #tpu.memory_space<vmem>>, vector<1x64xf32>
    %513 = vector.shape_cast %512 : vector<1x64xf32> to vector<64xf32>
    %514 = vector.shape_cast %511 : vector<64xf32> to vector<1x64xf32>
    tpu.vector_store %arg15[%c7_142, %c0_143], %514 {strides = array<i32>} : memref<8x64xf32, #tpu.memory_space<vmem>>, vector<1x64xf32>,
    %c0_144 = arith.constant 0 : index
    %c0_145 = arith.constant 0 : index
    %515 = vector.load %arg15[%c0_144, %c0_145] : memref<8x64xf32, #tpu.memory_space<vmem>>, vector<8x64xf32>
    %c1_146 = arith.constant 1 : index
    %c0_147 = arith.constant 0 : index
    %c0_148 = arith.constant 0 : index
    %516 = vector.load %arg9[%c1_146, %c0_147, %c0_148] : memref<2x1x64xf32, #tpu.memory_space<vmem>>, vector<1x1x64xf32>
    %517 = vector.shape_cast %516 : vector<1x1x64xf32> to vector<1x64xf32>
    %518 = vector.broadcast %517 : vector<1x64xf32> to vector<8x64xf32>
    %519 = arith.mulf %324, %518 : vector<8x64xf32>
    %520 = arith.addf %515, %519 : vector<8x64xf32>
    %521 = arith.negf %285 : vector<8x64xf32>
    %522 = math.exp %521 : vector<8x64xf32>
    %cst_149 = arith.constant 1.000000e+00 : f32
    %523 = vector.broadcast %cst_149 : f32 to vector<8x64xf32>
    %524 = arith.addf %523, %522 : vector<8x64xf32>
    %525 = arith.divf %523, %524 : vector<8x64xf32>
    %526 = arith.mulf %285, %525 : vector<8x64xf32>
    %527 = arith.mulf %520, %526 : vector<8x64xf32>
    %c1_150 = arith.constant 1 : index
    %c0_151 = arith.constant 0 : index
    %c0_152 = arith.constant 0 : index
    %528 = vector.load %arg10[%c1_150, %c0_151, %c0_152] : memref<2x64x32xf32, #tpu.memory_space<vmem>>, vector<1x64x32xf32>
    %529 = vector.shape_cast %528 : vector<1x64x32xf32> to vector<64x32xf32>
    %cst_153 = arith.constant dense<0.000000e+00> : vector<8x32xf32>
    %530 = tpu.matmul %527, %529, %cst_153 {dimension_numbers = #tpu.dot_dimension_numbers<[1], [0], [0], [1], [0, 0, 1, 1], [], []>} : vector<8x64xf32>, vector<64x32xf32>, vector<8x32xf32> -> vector<8x32xf32>
    %531 = arith.addf %266, %530 : vector<8x32xf32>
    %532 = arith.mulf %531, %531 : vector<8x32xf32>
    %cst_154 = arith.constant dense<0.000000e+00> : vector<8xf32>
    %533 = vector.multi_reduction <add>, %532, %cst_154 [1] : vector<8x32xf32> to vector<8xf32>
    %534 = vector.shape_cast %533 : vector<8xf32> to vector<8x1xf32>
    %cst_155 = arith.constant 3.200000e+01 : f32
    %535 = vector.broadcast %cst_155 : f32 to vector<8x1xf32>
    %536 = arith.divf %534, %535 : vector<8x1xf32>
    %cst_156 = arith.constant 9.99999974E-6 : f32
    %537 = vector.broadcast %cst_156 : f32 to vector<8x1xf32>
    %538 = arith.addf %536, %537 : vector<8x1xf32>
    %539 = math.rsqrt %538 : vector<8x1xf32>
    %540 = vector.broadcast %539 : vector<8x1xf32> to vector<8x32xf32>
    %541 = arith.mulf %531, %540 : vector<8x32xf32>
    %c0_157 = arith.constant 0 : index
    %c0_158 = arith.constant 0 : index
    %542 = vector.load %arg12[%c0_157, %c0_158] : memref<1x32xf32, #tpu.memory_space<vmem>>, vector<1x32xf32>
    %543 = vector.broadcast %542 : vector<1x32xf32> to vector<8x32xf32>
    %544 = arith.mulf %541, %543 : vector<8x32xf32>
    %c0_159 = arith.constant 0 : index
    %c0_160 = arith.constant 0 : index
    %545 = vector.load %arg13[%c0_159, %c0_160] : memref<32x128xf32, #tpu.memory_space<vmem>>, vector<32x128xf32>
    %cst_161 = arith.constant dense<0.000000e+00> : vector<8x128xf32>
    %546 = tpu.matmul %544, %545, %cst_161 {dimension_numbers = #tpu.dot_dimension_numbers<[1], [0], [0], [1], [0, 0, 1, 1], [], []>} : vector<8x32xf32>, vector<32x128xf32>, vector<8x128xf32> -> vector<8x128xf32>
    %c0_162 = arith.constant 0 : index
    %c0_163 = arith.constant 0 : index
    %c0_164 = arith.constant 0 : index
    %547 = vector.load %arg14[%c0_162, %c0_163, %c0_164] : memref<1x8x128xf32, #tpu.memory_space<vmem>>, vector<1x8x128xf32>
    %548 = vector.shape_cast %547 : vector<1x8x128xf32> to vector<8x128xf32>
    %549 = vector.shape_cast %546 : vector<8x128xf32> to vector<1x8x128xf32>
    tpu.vector_store %arg14[%c0_162, %c0_163, %c0_164], %549 {strides = array<i32>} : memref<1x8x128xf32, #tpu.memory_space<vmem>>, vector<1x8x128xf32>,
    return
  }
  func.func @transform_0(%arg0: i32) -> (i32, i32, i32) {
    %c0_i32 = arith.constant 0 : i32
    %c0_i32_0 = arith.constant 0 : i32
    %c0_i32_1 = arith.constant 0 : i32
    return %arg0, %c0_i32, %c0_i32_0 : i32, i32, i32
  }
  func.func @transform_1(%arg0: i32) -> (i32, i32, i32) {
    %c0_i32 = arith.constant 0 : i32
    %c0_i32_0 = arith.constant 0 : i32
    %c0_i32_1 = arith.constant 0 : i32
    %c0_i32_2 = arith.constant 0 : i32
    return %c0_i32, %c0_i32_0, %c0_i32_1 : i32, i32, i32
  }
  func.func @transform_2(%arg0: i32) -> (i32, i32, i32) {
    %c0_i32 = arith.constant 0 : i32
    %c0_i32_0 = arith.constant 0 : i32
    %c0_i32_1 = arith.constant 0 : i32
    %c0_i32_2 = arith.constant 0 : i32
    return %c0_i32, %c0_i32_0, %c0_i32_1 : i32, i32, i32
  }
  func.func @transform_3(%arg0: i32) -> (i32, i32, i32) {
    %c0_i32 = arith.constant 0 : i32
    %c0_i32_0 = arith.constant 0 : i32
    %c0_i32_1 = arith.constant 0 : i32
    %c0_i32_2 = arith.constant 0 : i32
    return %c0_i32, %c0_i32_0, %c0_i32_1 : i32, i32, i32
  }
  func.func @transform_4(%arg0: i32) -> (i32, i32, i32) {
    %c0_i32 = arith.constant 0 : i32
    %c0_i32_0 = arith.constant 0 : i32
    %c0_i32_1 = arith.constant 0 : i32
    %c0_i32_2 = arith.constant 0 : i32
    return %c0_i32, %c0_i32_0, %c0_i32_1 : i32, i32, i32
  }
  func.func @transform_5(%arg0: i32) -> (i32, i32, i32) {
    %c0_i32 = arith.constant 0 : i32
    %c0_i32_0 = arith.constant 0 : i32
    %c0_i32_1 = arith.constant 0 : i32
    %c0_i32_2 = arith.constant 0 : i32
    return %c0_i32, %c0_i32_0, %c0_i32_1 : i32, i32, i32
  }
  func.func @transform_6(%arg0: i32) -> (i32, i32, i32) {
    %c0_i32 = arith.constant 0 : i32
    %c0_i32_0 = arith.constant 0 : i32
    %c0_i32_1 = arith.constant 0 : i32
    %c0_i32_2 = arith.constant 0 : i32
    return %c0_i32, %c0_i32_0, %c0_i32_1 : i32, i32, i32
  }
  func.func @transform_7(%arg0: i32) -> (i32, i32, i32) {
    %c0_i32 = arith.constant 0 : i32
    %c0_i32_0 = arith.constant 0 : i32
    %c0_i32_1 = arith.constant 0 : i32
    %c0_i32_2 = arith.constant 0 : i32
    return %c0_i32, %c0_i32_0, %c0_i32_1 : i32, i32, i32
  }
  func.func @transform_8(%arg0: i32) -> (i32, i32, i32) {
    %c0_i32 = arith.constant 0 : i32
    %c0_i32_0 = arith.constant 0 : i32
    %c0_i32_1 = arith.constant 0 : i32
    %c0_i32_2 = arith.constant 0 : i32
    return %c0_i32, %c0_i32_0, %c0_i32_1 : i32, i32, i32
  }
  func.func @transform_9(%arg0: i32) -> (i32, i32, i32) {
    %c0_i32 = arith.constant 0 : i32
    %c0_i32_0 = arith.constant 0 : i32
    %c0_i32_1 = arith.constant 0 : i32
    %c0_i32_2 = arith.constant 0 : i32
    return %c0_i32, %c0_i32_0, %c0_i32_1 : i32, i32, i32
  }
  func.func @transform_10(%arg0: i32) -> (i32, i32, i32) {
    %c0_i32 = arith.constant 0 : i32
    %c0_i32_0 = arith.constant 0 : i32
    %c0_i32_1 = arith.constant 0 : i32
    %c0_i32_2 = arith.constant 0 : i32
    return %c0_i32, %c0_i32_0, %c0_i32_1 : i32, i32, i32
  }
  func.func @transform_11(%arg0: i32) -> (i32, i32) {
    %c0_i32 = arith.constant 0 : i32
    %c0_i32_0 = arith.constant 0 : i32
    %c0_i32_1 = arith.constant 0 : i32
    return %c0_i32, %c0_i32_0 : i32, i32
  }
  func.func @transform_12(%arg0: i32) -> (i32, i32) {
    %c0_i32 = arith.constant 0 : i32
    %c0_i32_0 = arith.constant 0 : i32
    %c0_i32_1 = arith.constant 0 : i32
    return %c0_i32, %c0_i32_0 : i32, i32
  }
  func.func @transform_13(%arg0: i32) -> (i32, i32, i32) {
    %c0_i32 = arith.constant 0 : i32
    %c0_i32_0 = arith.constant 0 : i32
    %c0_i32_1 = arith.constant 0 : i32
    return %arg0, %c0_i32, %c0_i32_0 : i32, i32, i32
  }
}

</mosaic_0001>

<bundles_post_ra>
// kernel: tpu_custom_call.1
= control target key start
LH: loop header
LB: loop body
LE: loop exit
PB: predicated region body
PF: predicated region fallthrough
CT: control target
= control target key end

     0   :  { %s4721_s0 = inlined_call_operand.hbm [shape: f32[2,8,32], index: 0, kind: input, shape index: {}]   ;;  %s4722_s1 = inlined_call_operand.vmem [shape: f32[2,1,32], index: 1, kind: input, shape index: {}]   ;;  %s4723_s2 = inlined_call_operand.vmem [shape: f32[2,32,128], index: 2, kind: input, shape index: {}]   ;;  %s4724_s3 = inlined_call_operand.hbm [shape: f32[2,4,64], index: 3, kind: input, shape index: {}]   ;;  %s4725_s4 = inlined_call_operand.hbm [shape: f32[2,1,64], index: 4, kind: input, shape index: {}]   ;;  %s4726_s5 = inlined_call_operand.vmem [shape: f32[2,64,96], index: 5, kind: input, shape index: {}]   ;;  %s4727_s6 = inlined_call_operand.hbm [shape: f32[2,1,64], index: 6, kind: input, shape index: {}]   ;;  %s4728_s7 = inlined_call_operand.hbm [shape: f32[2,16,64], index: 7, kind: input, shape index: {}]   ;;  %s4729_s8 = inlined_call_operand.hbm [shape: f32[2,1,64], index: 8, kind: input, shape index: {}]   ;;  %s4730_s9 = inlined_call_operand.vmem [shape: f32[2,64,32], index: 9, kind: input, shape index: {}]   ;;  %s4731_s10 = inlined_call_operand.vmem [shape: f32[4,8,8], index: 10, kind: input, shape index: {}]   ;;  %s4732_s11 = inlined_call_operand.vmem [shape: f32[1,32], index: 11, kind: input, shape index: {}]   ;;  %s4733_s12 = inlined_call_operand.hbm [shape: f32[32,128], index: 12, kind: input, shape index: {}]   ;;  %s4734_s13 = inlined_call_operand.hbm [shape: f32[2,8,128], index: 13, kind: output, shape index: {}]  }
   0x1   :  { %4743 = sst [smem:[#allocation21_spill]] %s4721_s0 }
   0x2   :  { %4744 = sst [smem:[#allocation22_spill]] %s4724_s3 }
   0x3   :  { %4745 = sst [smem:[#allocation23_spill]] %s4726_s5 }
   0x4   :  { %4746 = sst [smem:[#allocation24_spill]] %s4730_s9 }
   0x5   :  { %4747 = sst [smem:[#allocation25_spill]] %s4731_s10 }
   0x6   :  { %4748 = sst [smem:[#allocation26_spill]] %s4732_s11 }
   0x7   :  { %4749 = sst [smem:[#allocation27_spill]] %s4734_s13 }
   0x8   :  { %18 = vsyncpa [#allocation4], 0 }
   0x9   :  { %20 = vsyncpa [#allocation4 + $0x1], 0 }
   0xa   :  { %21 = vsyncpa [#allocation7], 0 }
   0xb   :  { %22 = vsyncpa [#allocation10], 0 }
   0xc   :  { %23 = vsyncpa [#allocation13], 0 }
   0xd   :  { %24 = vsyncpa [#allocation5], 0 }
   0xe   :  { %26 = vsyncpa [#allocation5 + $0x1], 0  ;;  %s3850_s25 = smov 0   ;;  %s3852_s26 = smov 0  }
   0xf   :  { %s3854_s27 = smov 0   ;;  %s3856_s28 = smov 0  }
  0x10 LB: > { %s3762_s29 = smov [#allocation6]   ;;  %s3871_s14 = sadd.s32 4294967295, %s3760_s28   ;;  %s3760_s28 = sphi %s3856_s28, %s4780_s28   ;;  %s3756_s27 = sphi %s3854_s27, %s4779_s27   ;;  %s3752_s26 = sphi %s3852_s26, %s4778_s26   ;;  %s3748_s25 = sphi %s3850_s25, %s4777_s25  }
  0x11   : > { %s359_s30 = sshll.u32 %s3762_s29, 4  ;;  %p2913_p0 = scmp.ge.s32.totalorder %s3760_s28, 1  ;;  %s3876_s30 = int_to_ptr.vmem [resolvable:$true] %s359_s30 }
  0x12   : > { %p4739_p1 = scmp.eq.s32.totalorder %s3871_s14, 0  ;;  %p341_p2 = scmp.lt.s32.totalorder %s3760_s28, 3 }
  0x13   : > { %s3763_s17 = smov [#allocation9]   ;;  %s3764_s19 = smov [#allocation12]  }
  0x14   : > { %p3878_p3 = pnand %p2913_p0, %p341_p2  ;;  %s388_s18 = sshll.u32 %s3763_s17, 4  ;;  %s3891_s18 = int_to_ptr.vmem [resolvable:$true] %s388_s18 }
  0x15   : > { %s3893_s20 = sshll.u32 %s3764_s19, 4  ;;  %s4752_s3 = sld [smem:[#allocation22_spill]]  ;;  %s415_s20 = int_to_ptr.vmem [resolvable:$true] %s3893_s20 }
  0x16   : > { %s4750_s15 = scalar_select %p3878_p3, 1, 0 }
  0x17   : > { %p3301_p5 = pneg %p3878_p3 }
  0x19   : > { %p3887_p6 = pnand %p3301_p5, %p4739_p1 }
  0x1b   : > { %s3484_s23 = scalar_lea.hbm %s4752_s3, 128  ;;  %p3903_p8 = pneg %p3887_p6 }
  0x1c   : > { %p3485_p7 = scmp.ne.s32.totalorder %s4752_s3, %s3484_s23  ;;  %p3491_p11 = scmp.lt.u32.totalorder %s3484_s23, %s4752_s3 }
  0x1e   : > { %p3487_p9 = pnand %p3903_p8, %p3485_p7 }
  0x20   : > { %p3488_p10 = pneg %p3487_p9 }
  0x22   : > { %p3493_p12 = pnand %p3491_p11, %p3488_p10 }
  0x24   : > { %3496 = shalt.err (!%p3493_p12)
}
  0x25   : > { %s3497_s21 = scalar_lea.vmem %s3876_s30, 128  ;;  %p3505_p5 = scmp.lt.s32.totalorder %s3876_s30, %s3876_s30 }
  0x26   : > { %p3498_p13 = scmp.ne.s32.totalorder %s3876_s30, %s3497_s21  ;;  %p3506_p4 = scmp.lt.s32.totalorder %s3497_s21, %s3497_s21 }
  0x28   : > { %p3500_p0 = pnand %p3498_p13, %p3903_p8  ;;  %p3507_p7 = por %p3506_p4, %p3505_p5 }
  0x2a   : > { %p3501_p2 = pneg %p3500_p0 }
  0x2c   : > { %p3508_p9 = pnand %p3507_p7, %p3501_p2 }
  0x2e   : > { %3511 = shalt.err (!%p3508_p9)
}
  0x2f   : > { %s3765_s22 = smov 64   ;;  %s3766_s23 = smov 4  }
  0x30   : > { %3304 = dma.hbm_to_vmem [thread:$0]  (!%p3887_p6), %s4752_s3, 128, %s3876_s30, [#allocation7], %s3765_s22, %s3765_s22, %s3766_s23  }
  0x31   : > { %s3512_s11 = scalar_lea.hbm %s4727_s6, 32 }
  0x32   : > { %p3513_p4 = scmp.ne.s32.totalorder %s4727_s6, %s3512_s11  ;;  %p3519_p12 = scmp.lt.u32.totalorder %s3512_s11, %s4727_s6 }
  0x34   : > { %p3515_p10 = pnand %p3513_p4, %p3903_p8 }
  0x36   : > { %p3516_p11 = pneg %p3515_p10 }
  0x38   : > { %p3521_p13 = pnand %p3519_p12, %p3516_p11 }
  0x3a   : > { %3524 = shalt.err (!%p3521_p13)
}
  0x3b   : > { %s3525_s30 = scalar_lea.vmem %s3891_s18, 32  ;;  %p3533_p7 = scmp.lt.s32.totalorder %s3891_s18, %s3891_s18 }
  0x3c   : > { %p3526_p0 = scmp.ne.s32.totalorder %s3891_s18, %s3525_s30  ;;  %p3534_p9 = scmp.lt.s32.totalorder %s3525_s30, %s3525_s30 }
  0x3e   : > { %p3528_p2 = pnand %p3526_p0, %p3903_p8  ;;  %p3535_p4 = por %p3534_p9, %p3533_p7 }
  0x40   : > { %p3529_p5 = pneg %p3528_p2 }
  0x42   : > { %p3536_p10 = pnand %p3535_p4, %p3529_p5 }
  0x44   : > { %3539 = shalt.err (!%p3536_p10)
}
  0x45   : > { %s3767_s5 = smov 16   ;;  %s3768_s9 = smov 1  }
  0x46   : > { %3310 = dma.hbm_to_vmem [thread:$0]  (!%p3887_p6), %s4727_s6, 32, %s3891_s18, [#allocation10], %s3767_s5, %s3767_s5, %s3768_s9  }
  0x47   : > { %s3540_s24 = scalar_lea.hbm %s4729_s8, 32 }
  0x48   : > { %p3541_p11 = scmp.ne.s32.totalorder %s4729_s8, %s3540_s24  ;;  %p3547_p0 = scmp.lt.u32.totalorder %s3540_s24, %s4729_s8 }
  0x4a   : > { %p3543_p12 = pnand %p3541_p11, %p3903_p8 }
  0x4c   : > { %p3544_p13 = pneg %p3543_p12 }
  0x4e   : > { %p3549_p2 = pnand %p3547_p0, %p3544_p13 }
  0x50   : > { %3552 = shalt.err (!%p3549_p2)
}
  0x51   : > { %s3553_s30 = scalar_lea.vmem %s415_s20, 32  ;;  %p3561_p4 = scmp.lt.s32.totalorder %s415_s20, %s415_s20 }
  0x52   : > { %p3554_p5 = scmp.ne.s32.totalorder %s415_s20, %s3553_s30  ;;  %p3562_p10 = scmp.lt.s32.totalorder %s3553_s30, %s3553_s30 }
  0x54   : > { %p3556_p7 = pnand %p3554_p5, %p3903_p8  ;;  %p3563_p1 = por %p3562_p10, %p3561_p4 }
  0x56   : > { %p3557_p9 = pneg %p3556_p7 }
  0x58   : > { %p3564_p3 = pnand %p3563_p1, %p3557_p9 }
  0x5a   : > { %3567 = shalt.err (!%p3564_p3)
}
  0x5b   : > { %3316 = dma.hbm_to_vmem [thread:$0]  (!%p3887_p6), %s4729_s8, 32, %s415_s20, [#allocation13], %s3767_s5, %s3767_s5, %s3768_s9  }
  0x5c   : > { %s3769_s11 = smov [#allocation8]   ;;  %s3770_s23 = smov [#allocation11]  }
  0x5d   : > { %s372_s22 = sshll.u32 %s3769_s11, 4  ;;  %s401_s24 = sshll.u32 %s3770_s23, 4  ;;  %s373_s22 = int_to_ptr.vmem [resolvable:$true] %s372_s22  ;;  %s402_s24 = int_to_ptr.vmem [resolvable:$true] %s401_s24 }
  0x5e   : > { %s3568_s19 = scalar_lea.hbm %s4725_s4, 32 }
  0x5f   : > { %p3569_p1 = scmp.ne.s32.totalorder %s4725_s4, %s3568_s19  ;;  %p3575_p12 = scmp.lt.u32.totalorder %s3568_s19, %s4725_s4 }
  0x61   : > { %p3571_p3 = pnand %p3569_p1, %p3903_p8 }
  0x63   : > { %p3572_p11 = pneg %p3571_p3 }
  0x65   : > { %p3577_p13 = pnand %p3575_p12, %p3572_p11 }
  0x67   : > { %3580 = shalt.err (!%p3577_p13)
}
  0x68   : > { %s3581_s20 = scalar_lea.vmem %s373_s22, 32  ;;  %p3589_p7 = scmp.lt.s32.totalorder %s373_s22, %s373_s22 }
  0x69   : > { %p3582_p0 = scmp.ne.s32.totalorder %s373_s22, %s3581_s20  ;;  %p3590_p9 = scmp.lt.s32.totalorder %s3581_s20, %s3581_s20 }
  0x6b   : > { %p3584_p2 = pnand %p3582_p0, %p3903_p8  ;;  %p3591_p4 = por %p3590_p9, %p3589_p7 }
  0x6d   : > { %p3585_p5 = pneg %p3584_p2 }
  0x6f   : > { %p3592_p10 = pnand %p3591_p4, %p3585_p5 }
  0x71   : > { %3595 = shalt.err (!%p3592_p10)
}
  0x72   : > { %3307 = dma.hbm_to_vmem [thread:$0]  (!%p3887_p6), %s4725_s4, 32, %s373_s22, [#allocation7], %s3767_s5, %s3767_s5, %s3768_s9  }
  0x73   : > { %s3596_s29 = scalar_lea.hbm %s4728_s7, 512 }
  0x74   : > { %p3597_p1 = scmp.ne.s32.totalorder %s4728_s7, %s3596_s29  ;;  %p3603_p12 = scmp.lt.u32.totalorder %s3596_s29, %s4728_s7 }
  0x76   : > { %p3599_p3 = pnand %p3597_p1, %p3903_p8 }
  0x78   : > { %p3600_p11 = pneg %p3599_p3 }
  0x7a   : > { %p3605_p13 = pnand %p3603_p12, %p3600_p11 }
  0x7c   : > { %3608 = shalt.err (!%p3605_p13)
}
  0x7d   : > { %s3609_s18 = scalar_lea.vmem %s402_s24, 512  ;;  %p3617_p7 = scmp.lt.s32.totalorder %s402_s24, %s402_s24 }
  0x7e   : > { %p3610_p0 = scmp.ne.s32.totalorder %s402_s24, %s3609_s18  ;;  %p3618_p9 = scmp.lt.s32.totalorder %s3609_s18, %s3609_s18 }
  0x80   : > { %p3612_p2 = pnand %p3610_p0, %p3903_p8  ;;  %p3619_p4 = por %p3618_p9, %p3617_p7 }
  0x82   : > { %p3613_p5 = pneg %p3612_p2 }
  0x84   : > { %p3620_p10 = pnand %p3619_p4, %p3613_p5 }
  0x86   : > { %3623 = shalt.err (!%p3620_p10)
}
  0x87   : > { %s3771_s5 = smov 128   ;;  %s3772_s9 = smov 8  }
  0x88   : > { %3313 = dma.hbm_to_vmem [thread:$0]  (!%p3887_p6), %s4728_s7, 512, %s402_s24, [#allocation10], %s3771_s5, %s3771_s5, %s3772_s9  }
  0x89   : > { %s3773_s3 = smov [#allocation14]   ;;  %s3624_s29 = scalar_lea.hbm %s4733_s12, 512 }
  0x8a   : > { %s436_s10 = sshll.u32 %s3773_s3, 4  ;;  %p3625_p1 = scmp.ne.s32.totalorder %s4733_s12, %s3624_s29  ;;  %s437_s10 = int_to_ptr.vmem [resolvable:$true] %s436_s10 }
  0x8b   : > { %p3631_p12 = scmp.lt.u32.totalorder %s3624_s29, %s4733_s12 }
  0x8c   : > { %p3627_p3 = pnand %p3625_p1, %p3903_p8 }
  0x8e   : > { %p3628_p11 = pneg %p3627_p3 }
  0x90   : > { %p3633_p13 = pnand %p3631_p12, %p3628_p11 }
  0x92   : > { %3636 = shalt.err (!%p3633_p13)
}
  0x93   : > { %s3637_s24 = scalar_lea.vmem %s437_s10, 512  ;;  %p3645_p7 = scmp.lt.s32.totalorder %s437_s10, %s437_s10 }
  0x94   : > { %p3638_p0 = scmp.ne.s32.totalorder %s437_s10, %s3637_s24  ;;  %p3646_p9 = scmp.lt.s32.totalorder %s3637_s24, %s3637_s24 }
  0x96   : > { %p3640_p2 = pnand %p3638_p0, %p3903_p8  ;;  %p3647_p4 = por %p3646_p9, %p3645_p7 }
  0x98   : > { %p3641_p5 = pneg %p3640_p2 }
  0x9a   : > { %p3648_p10 = pnand %p3647_p4, %p3641_p5 }
  0x9c   : > { %3651 = shalt.err (!%p3648_p10)
}
  0x9d   : > { %3319 = dma.hbm_to_vmem [thread:$0]  (!%p3887_p6), %s4733_s12, 512, %s437_s10, [#allocation13], %s3771_s5, %s3771_s5, %s3772_s9  }
  0x9e   : > { %s2912_s13 = sadd.s32 4294967294, %s3760_s28   ;;  %s4031_s16 = sadd.s32 1, %s3760_s28  }
  0x9f   : > { %s36_s20 = ssub.s32 %s3760_s28, %s4031_s16  ;;  %s39_s3 = sadd.s32 1, %s3756_s27 }
  0xa0   : > { %p37_p8 = scmp.eq.s32.totalorder %s36_s20, 0  ;;  %p46_p1 = scmp.ne.s32.totalorder %s3756_s27, %s3752_s26 }
  0xa1   : > { %p47_p3 = scmp.eq.s32.totalorder %s3760_s28, 0  ;;  %p52_p11 = scmp.ne.s32.totalorder %s3752_s26, %s3748_s25 }
  0xa2   : > { %s4042_s11 = scalar_select %p37_p8, %s3756_s27, %s39_s3  }
  0xa3   : > { %p4044_p12 = por %p47_p3, %p46_p1  ;;  %p4755_p13 = scmp.eq.s32.totalorder %s3871_s14, 0 }
  0xa4   : > { %p328_p0 = scmp.eq.s32.totalorder %s3871_s14, 1  ;;  %p334_p2 = scmp.eq.s32.totalorder %s2912_s13, 1 }
  0xa5   : > { %p4050_p6 = por %p4755_p13, %p52_p11  ;;  %p3334_p5 = scmp.lt.s32.totalorder %s3760_s28, 2 }
  0xa6   : > { %s450_s9 = sand.u32 1, %s3756_s27   ;;  %p4057_p7 = por %p328_p0, %p46_p1 }
  0xa7   : > { %p4061_p9 = por %p334_p2, %p52_p11  ;;  %s2921_s17 = sshll.u32 %s450_s9, 3 }
  0xa8   : > { %s4757_s10 = scalar_select %p4057_p7, 1, 0 }
  0xa9   : > { %s4758_s29 = scalar_select %p4061_p9, 1, 0 }
  0xaa   : > { %s2922_s19 = sshll.u32 %s3760_s28, 7  ;;  %s4759_s0 = sld [smem:[#allocation21_spill]] }
  0xab   : > { %s454_s18 = scalar_lea.vmem [#allocation3], %s2921_s17  ;;  %p4075_p4 = pnand %p3334_p5, %p4044_p12 }
  0xac   : > { %s461_s22 = sshll.u32 %s454_s18, 4  ;;  %s451_s20 = scalar_lea.sflag [#allocation4], %s450_s9  ;;  %s4071_s22 = int_to_ptr.vmem [resolvable:$true] %s461_s22 }
  0xad   : > { %p3654_p8 = pneg %p4075_p4 }
  0xb0   : > { %s4069_s24 = scalar_lea.hbm %s4759_s0, %s2922_s19  ;;  %s3657_s21 = scalar_lea.hbm %s4759_s0, 256 }
  0xb1   : > { %s3652_s3 = scalar_lea.hbm %s4069_s24, 128  ;;  %p3658_p11 = scmp.lt.u32.totalorder %s4069_s24, %s4759_s0 }
  0xb2   : > { %p3653_p10 = scmp.ne.s32.totalorder %s4069_s24, %s3652_s3  ;;  %p3659_p12 = scmp.lt.u32.totalorder %s3657_s21, %s3652_s3 }
  0xb3   : > { %p3661_p0 = scmp.lt.u32.totalorder %s3652_s3, %s4069_s24 }
  0xb4   : > { %p3655_p1 = pnand %p3654_p8, %p3653_p10  ;;  %p3660_p13 = por %p3659_p12, %p3658_p11 }
  0xb6   : > { %p3656_p3 = pneg %p3655_p1  ;;  %p3662_p2 = por %p3661_p0, %p3660_p13 }
  0xb8   : > { %p3663_p5 = pnand %p3662_p2, %p3656_p3 }
  0xba   : > { %3666 = shalt.err (!%p3663_p5)
}
  0xbb   : > { %s3667_s9 = scalar_lea.vmem %s4071_s22, 128  ;;  %s3774_s18 = smov [#allocation3]  }
  0xbc   : > { %p3668_p10 = scmp.ne.s32.totalorder %s4071_s22, %s3667_s9  ;;  %s3672_s17 = sshll.u32 %s3774_s18, 4  ;;  %s3673_s17 = int_to_ptr.vmem [resolvable:$false] %s3672_s17 }
  0xbd   : > { %s3674_s19 = scalar_lea.vmem %s3673_s17, 256  ;;  %p3675_p7 = scmp.lt.s32.totalorder %s4071_s22, %s3673_s17 }
  0xbe   : > { %p3670_p1 = pnand %p3668_p10, %p3654_p8  ;;  %p3676_p11 = scmp.lt.s32.totalorder %s3674_s19, %s3667_s9 }
  0xc0   : > { %p3671_p9 = pneg %p3670_p1  ;;  %p3677_p12 = por %p3676_p11, %p3675_p7 }
  0xc2   : > { %p3678_p13 = pnand %p3677_p12, %p3671_p9 }
  0xc4   : > { %3681 = shalt.err (!%p3678_p13)
}
  0xc5   : > { %3323 = dma.hbm_to_vmem [thread:$0]  (!%p4075_p4), %s4069_s24, 128, %s4071_s22, %s451_s20  }
  0xc6   : > { %p4761_p3 = scmp.ne.s32.totalorder %s4750_s15, 0 }
  0xc7   : > { %s4107_s3 = sand.u32 (!%p4761_p3), 1, %s3752_s26  }
  0xc8   : > { %470 = sbr.rel (%p4761_p3) target bundleno = 3164 (0xc5c), region = 72  ;;  %s4742_s21 = sshll.u32 (!%p4761_p3), %s4107_s3, 3 }
  0xc9   : > { %s473_s23 = scalar_lea.sflag (!%p4761_p3), [#allocation4], %s4107_s3  ;;  %s476_s30 = scalar_lea.vmem (!%p4761_p3), [#allocation3], %s4742_s21 }
  0xcf   : > { %3727 = dma.done.wait (%p4050_p6), %s473_s23, 128  }
  0xd0   : > { %3729 = vsyncadd (%p4050_p6), %s473_s23, 4294967168  ;;  %p4762_p7 = scmp.eq.s32.totalorder %s3871_s14, 0 }
  0xd2   : > { %3731 = dma.done.wait (%p4762_p7), [#allocation7], 160   ;;  %p4763_p9 = pmov %p4762_p7 }
  0xd3   : > { %p4764_p4 = pmov %p4762_p7 }
  0xd4   : > { %3733 = vsyncadd (%p4763_p9), [#allocation7], 4294967136 }
  0xd5   : > { %3735 = dma.done.wait (%p4764_p4), [#allocation10], 544   ;;  %p4765_p8 = pmov %p4764_p4 }
  0xd6   : > { %p4766_p0 = pmov %p4764_p4 }
  0xd7   : > { %3737 = vsyncadd (%p4765_p8), [#allocation10], 4294966752 }
  0xd8   : > { %3739 = dma.done.wait (%p4766_p0), [#allocation13], 544   ;;  %p4767_p2 = pmov %p4766_p0 }
  0xd9   : > { %v4129_v0 = vld [vmem:[%s476_s30] sm:$0xff]  ;;  %vm545_vm0 = vcmask 261120   ;;  %v562_v3 = vld [vmem:[%s4723_s2] sm:$0xff]  ;;  %v3775_v6 = vmov 0.0|0.0   ;;  %v565_v8 = vld [vmem:[%s4723_s2 + $0x18] sm:$0xff]  ;;  %vm3776_vm1 = vmmov 0   ;;  %v716_v36 = vlaneseq }
  0xda   : > { %3741 = vsyncadd (%p4767_p2), [#allocation13], 4294966752  ;;  %v544_v1 = vmul.f32 %v4129_v0, %v4129_v0  ;;  %v563_v4 = vld [vmem:[%s4723_s2 + $0x8] sm:$0xff]  ;;  %v564_v5 = vld [vmem:[%s4723_s2 + $0x10] sm:$0xff]  ;;  %3207 = vmatprep.subr.bf16.mxu0 %v3775_v6  ;;  %v3777_v9 = vmov 0.0   ;;  %s4768_s15 = sld [smem:[#allocation25_spill]] }
  0xdb   : > { %v3208_v7 = vpack.c.bf16 %v563_v4, %v562_v3  ;;  %3066 = vmatprep.mubr.msk.f32.mxu0 %vm3776_vm1, %v3777_v9  ;;  %3074 = vmatprep.subr.mxu1 %v3777_v9  ;;  %v3211_v10 = vpack.c.bf16 %v565_v8, %v564_v5  ;;  %v2932_v15 = vld [vmem:[%s4722_s1] ss:$0 sm:$0xff]  ;;  %vm642_vm2 = vcmask 64512   ;;  %s4769_s19 = sld [smem:[#allocation23_spill]]  ;;  %v717_v37 = vshrl.u32 %v716_v36, 7  ;;  %s3778_s22 = smov 64  }
  0xdc   : > { %v546_v2 = vsel %vm545_vm0, %v544_v1, 0.0  ;;  %3076 = vmatprep.mubr.msk.f32.mxu1 %vm3776_vm1, %v3777_v9  ;;  %v639_v39 = vld [vmem:[#allocation6] sm:$0xf]  ;;  %v2935_v45 = vld [vmem:[#allocation8] ss:$0 sm:$0xff]  ;;  %vm986_vm3 = vcmask 523264  }
  0xdd   : > { %547 = vadd.xlane.f32.xlu0 %v546_v2  ;;  %3209 = vmatpush3.bf16.msra.mxu0 %v3208_v7  ;;  %v4235_v38 = vsub.s32 0, %v717_v37  ;;  %v4237_v40 = vsub.s32 1, %v717_v37  ;;  %v4240_v42 = vsub.s32 2, %v717_v37  ;;  %v4242_v43 = vsub.s32 3, %v717_v37  ;;  %s4770_s9 = sld [smem:[#allocation24_spill]]  ;;  %s4771_s24 = sld [smem:[#allocation26_spill]] }
  0xde   : > { %3210 = vmatprep.subr.bf16.mxu0 %v3775_v6  ;;  %vm1280_vm6 = vcmask 516096   ;;  %s4772_s13 = sshll.u32 %s4107_s3, 3  ;;  %s2988_s20 = sshll.u32 %s3871_s14, 7 }
  0xdf   : > { %v719_v41 = vrot.slane %v639_v39, %v4235_v38  ;;  %v806_v44 = vrot.slane %v639_v39, %v4237_v40  ;;  %v887_v51 = vrot.slane %v639_v39, %v4240_v42  ;;  %v968_v52 = vrot.slane %v639_v39, %v4242_v43  ;;  %s542_s21 = scalar_lea.vmem [#allocation15], %s4772_s13  ;;  %s4773_s23 = sld [smem:[#allocation27_spill]] }
  0xe0   : > { %v4164_v18 = vld [vmem:[%s4768_s15] sm:$0xff]  ;;  %v4169_v19 = vld [vmem:[%s4768_s15 + $0x8] sm:$0xff]  ;;  %v4184_v22 = vld [vmem:[%s4768_s15 + $0x10] sm:$0xff]  ;;  %s2772_s30 = scalar_lea.sflag [#allocation5], %s4107_s3  ;;  %p4774_p5 = scmp.ne.s32.totalorder %s4757_s10, 0 }
  0xe1   : > { %3212 = vmatpush3.bf16.msra.mxu0 %v3211_v10  ;;  %v4189_v23 = vld [vmem:[%s4768_s15 + $0x18] sm:$0xff]  ;;  %v978_v24 = vld [vmem:[%s4769_s19] sm:$0xff]  ;;  %v979_v25 = vld [vmem:[%s4769_s19 + $0x8] sm:$0xff]  ;;  %s3779_s14 = smov [#allocation15]  }
  0xe2   : > { %3069 = vmatprep.subr.mxu0 %v3777_v9  ;;  %v3214_v26 = vpack.c.bf16 %v979_v25, %v978_v24  ;;  %v980_v27 = vld [vmem:[%s4769_s19 + $0x10] sm:$0xff]  ;;  %v981_v28 = vld [vmem:[%s4769_s19 + $0x18] sm:$0xff]  ;;  %v982_v30 = vld [vmem:[%s4769_s19 + $0x20] sm:$0xff]  ;;  %v4265_v24 = vsub.s32 7, %v717_v37 }
  0xe3   : > { %v3217_v29 = vpack.c.bf16 %v981_v28, %v980_v27  ;;  %v983_v31 = vld [vmem:[%s4769_s19 + $0x28] sm:$0xff]  ;;  %v984_v33 = vld [vmem:[%s4769_s19 + $0x30] sm:$0xff]  ;;  %v985_v34 = vld [vmem:[%s4769_s19 + $0x38] sm:$0xff] }
  0xe4   : > { %v3220_v32 = vpack.c.bf16 %v983_v31, %v982_v30  ;;  %v3223_v35 = vpack.c.bf16 %v985_v34, %v984_v33  ;;  %v2944_v30 = vld [vmem:[#allocation9] ss:$0 sm:$0xff] }
  0xe5   : > { %s4679_s0 = scalar_lea.hbm %s4773_s23, %s2988_s20 }
 0x16a   : > { %v548_v11 = vpop.xlane.xlu0 %547 }
 0x16b   : > { %v550_v12 = vmul.f32 0.03125, %v548_v11  ;;  %v4254_v11 = vsub.s32 4, %v717_v37 }
 0x16d   : > { %v551_v13 = vadd.f32 1e-05, %v550_v12 }
 0x16f   : > { %3390 = vrsqrt.f32 %v551_v13 }
 0x179   : > { %v3391_v14 = vpop.eup %3390 }
 0x17a   : > { %v553_v16 = vmul.f32 %v3391_v14, %v4129_v0  ;;  %v4258_v14 = vsub.s32 5, %v717_v37 }
 0x17c   : > { %v561_v17 = vmul.f32 %v2932_v15, %v553_v16  ;;  %v4261_v16 = vsub.s32 6, %v717_v37 }
 0x17e   : > { %3067 = vmatmul.mubr.msk.f32.vlgmr.msra.gmra.mrb[0].mxu0 %vm545_vm0, %v561_v17 }
 0x17f   : > { %3071 = vmatprep.mubr.msk.f32.mxu0 %vm3776_vm1, %v3777_v9 }
 0x251   : > { %v4171_v20 = vpop.f32.mrb[0].mxu0 }
 0x252   : > { %v3068_v21 = vpop.f32.mrb[1].mxu0  ;;  %3070 = vmatpush3.msra.mxu0 %v4171_v20  ;;  %3075 = vmatpush3.msra.mxu1 %v4171_v20 }
 0x253   : > { %3072 = vmatmul.mubr.msk.f32.vlgmr.msra.gmra.mrb[2].mxu0 %vm642_vm2, %v4164_v18  ;;  %3077 = vmatmul.mubr.msk.f32.vlgmr.msra.gmra.mrb[0].mxu1 %vm642_vm2, %v4169_v19 }
 0x254   : > { %3079 = vmatprep.subr.mxu1 %v3777_v9  ;;  %3084 = vmatprep.subr.mxu0 %v3777_v9 }
 0x255   : > { %3080 = vmatpush3.msra.mxu1 %v4171_v20  ;;  %3085 = vmatpush3.msra.mxu0 %v4171_v20 }
 0x256   : > { %3081 = vmatprep.mubr.msk.f32.mxu1 %vm3776_vm1, %v3777_v9  ;;  %3086 = vmatprep.mubr.msk.f32.mxu0 %vm3776_vm1, %v3777_v9 }
 0x257   : > { %3082 = vmatmul.mubr.msk.f32.vlgmr.msra.gmra.mrb[2].mxu1 %vm642_vm2, %v4184_v22  ;;  %3087 = vmatmul.mubr.msk.f32.vlgmr.msra.gmra.mrb[4].mxu0 %vm642_vm2, %v4189_v23 }
 0x258   : > { %3213 = vmatprep.subr.bf16.mxu1 %v3775_v6  ;;  %3105 = vmatprep.mubr.msk.f32.mxu1 %vm3776_vm1, %v3777_v9 }
 0x259   : > { %3225 = vmatprep.subr.bf16.mxu0 %v3775_v6  ;;  %3124 = vmatprep.mubr.msk.f32.mxu0 %vm3776_vm1, %v3777_v9 }
 0x25a   : > { %3215 = vmatpush3.bf16.msra.mxu1 %v3214_v26  ;;  %v2946_v26 = vmul.f32 -1.442695, %v4171_v20 }
 0x25b   : > { %3216 = vmatprep.subr.bf16.mxu1 %v3775_v6 }
 0x25e   : > { %3218 = vmatpush3.bf16.msra.mxu1 %v3217_v29 }
 0x25f   : > { %3219 = vmatprep.subr.bf16.mxu1 %v3775_v6 }
 0x262   : > { %3221 = vmatpush3.bf16.msra.mxu1 %v3220_v32 }
 0x263   : > { %3222 = vmatprep.subr.bf16.mxu1 %v3775_v6 }
 0x266   : > { %3224 = vmatpush3.bf16.msra.mxu1 %v3223_v35 }
 0x267   : > { %3237 = vmatprep.subr.bf16.mxu1 %v3775_v6 }
 0x326   : > { %v712_v46 = vpop.f32.mrb[2].mxu0  ;;  %v799_v47 = vpop.f32.mrb[0].mxu1 }
 0x327   : > { %v720_v48 = vmul.f32 %v719_v41, %v712_v46  ;;  %v3073_v49 = vpop.f32.mrb[3].mxu0  ;;  %v3078_v50 = vpop.f32.mrb[1].mxu1  ;;  %v807_v54 = vmul.f32 %v806_v44, %v799_v47  ;;  %v1528_v41 = vld [vmem:[%s4770_s9] sm:$0xff]  ;;  %v1530_v44 = vld [vmem:[%s4770_s9 + $0x10] sm:$0xff]  ;;  %v1531_v46 = vld [vmem:[%s4770_s9 + $0x18] sm:$0xff] }
 0x328   : > { %v3229_v47 = vpack.c.bf16 %v1531_v46, %v1530_v44  ;;  %v1533_v49 = vld [vmem:[%s4770_s9 + $0x28] sm:$0xff] }
 0x329   : > { %v727_v53 = vadd.f32 %v2935_v45, %v720_v48  ;;  %v1532_v48 = vld [vmem:[%s4770_s9 + $0x20] sm:$0xff] }
 0x32a   : > { %v880_v55 = vpop.f32.mrb[2].mxu1  ;;  %v961_v56 = vpop.f32.mrb[4].mxu0  ;;  %v3232_v50 = vpack.c.bf16 %v1533_v49, %v1532_v48 }
 0x32b   : > { %v808_v57 = vadd.f32 %v807_v54, %v727_v53  ;;  %v888_v58 = vmul.f32 %v887_v51, %v880_v55  ;;  %v3083_v59 = vpop.f32.mrb[3].mxu1  ;;  %v969_v60 = vmul.f32 %v968_v52, %v961_v56  ;;  %v3088_v61 = vpop.f32.mrb[5].mxu0  ;;  %v1534_v52 = vld [vmem:[%s4770_s9 + $0x30] sm:$0xff]  ;;  %v1535_v53 = vld [vmem:[%s4770_s9 + $0x38] sm:$0xff] }
 0x32c   : > { %v3235_v55 = vpack.c.bf16 %v1535_v53, %v1534_v52 }
 0x32d   : > { %v889_v62 = vadd.f32 %v888_v58, %v808_v57 }
 0x32f   : > { %v970_v63 = vadd.f32 %v969_v60, %v889_v62 }
 0x331   : > { %v2942_v1 = vmul.f32 -1.442695, %v970_v63 }
 0x333   : > { %3392 = vpow2.f32 %v2942_v1 }
 0x33d   : > { %v3393_v2 = vpop.eup %3392 }
 0x33e   : > { %v974_v3 = vadd.f32 1.0, %v3393_v2  ;;  %v4304_v2 = vld [vmem:[#allocation11] sm:$0xff] }
 0x340   : > { %3394 = vrcp.f32 %v974_v3 }
 0x341   : > { %3396 = vpow2.f32 %v2946_v26 }
 0x34a   : > { %v3395_v4 = vpop.eup %3394 }
 0x34b   : > { %v4247_v5 = vmul.f32 %v3395_v4, %v970_v63  ;;  %v3397_v28 = vpop.eup %3396  ;;  %v4307_v4 = vld [vmem:[#allocation11 + $0x8] sm:$0xff] }
 0x34c   : > { %v1519_v29 = vadd.f32 1.0, %v3397_v28 }
 0x34d   : > { %3106 = vmatmul.mubr.msk.f32.vlgmr.msra.gmra.mrb[4].mxu1 %vm986_vm3, %v4247_v5 }
 0x34e   : > { %3135 = vmatprep.mubr.msk.f32.mxu1 %vm3776_vm1, %v3777_v9  ;;  %3398 = vrcp.f32 %v1519_v29 }
 0x358   : > { %v3399_v32 = vpop.eup %3398 }
 0x359   : > { %v1522_v34 = vmul.f32 %v3399_v32, %v4171_v20  ;;  %v1529_v20 = vld [vmem:[%s4770_s9 + $0x8] sm:$0xff] }
 0x35a   : > { %v3226_v45 = vpack.c.bf16 %v1529_v20, %v1528_v41 }
 0x35c   : > { %3227 = vmatpush3.bf16.msra.mxu0 %v3226_v45 }
 0x35d   : > { %3228 = vmatprep.subr.bf16.mxu0 %v3775_v6 }
 0x360   : > { %3230 = vmatpush3.bf16.msra.mxu0 %v3229_v47 }
 0x361   : > { %3231 = vmatprep.subr.bf16.mxu0 %v3775_v6 }
 0x364   : > { %3233 = vmatpush3.bf16.msra.mxu0 %v3232_v50 }
 0x365   : > { %3234 = vmatprep.subr.bf16.mxu0 %v3775_v6 }
 0x368   : > { %3236 = vmatpush3.bf16.msra.mxu0 %v3235_v55 }
 0x369   : > { %3138 = vmatprep.subr.mxu0 %v3777_v9 }
 0x420   : > { %v1056_v7 = vpop.f32.mrb[4].mxu1 }
 0x421   : > { %v3107_v8 = vpop.f32.mrb[5].mxu1  ;;  %v1089_v10 = vrot.slane %v1056_v7, %v4235_v38  ;;  %v1101_v12 = vrot.slane %v1056_v7, %v4237_v40  ;;  %v1137_v13 = vrot.slane %v1056_v7, %v4254_v11  ;;  %v1149_v15 = vrot.slane %v1056_v7, %v4258_v14 }
 0x422   : > { %v1113_v17 = vrot.slane %v1056_v7, %v4240_v42  ;;  %v1161_v21 = vrot.slane %v1056_v7, %v4261_v16  ;;  %v1173_v25 = vrot.slane %v1056_v7, %v4265_v24  ;;  %v1125_v27 = vrot.slane %v1056_v7, %v4242_v43 }
 0x423   : > { %1096 = vbcast.lane.b32.xlu1 %v1089_v10, 328  ;;  %1092 = vbcast.lane.b32.xlu0 %v1089_v10, 320  ;;  %v1067_v31 = vadd.f32 %v2944_v30, %v1056_v7 }
 0x425   : > { %v1071_v33 = vand.u32 2147483647, %v1067_v31  ;;  %v1068_v61 = vmax.f32 %v1067_v31, 0.0  ;;  %vm1069_vm5 = vcmp.ne.f32.partialorder %v1067_v31, %v1067_v31 }
 0x427   : > { %1104 = vbcast.lane.b32.xlu1 %v1101_v12, 320  ;;  %1140 = vbcast.lane.b32.xlu0 %v1137_v13, 320  ;;  %v1072_v35 = vsub.f32 0.0, %v1071_v33 }
 0x429   : > { %v1073_v36 = vmul.f32 1.442695, %v1072_v35 }
 0x42b   : > { %1108 = vbcast.lane.b32.xlu1 %v1101_v12, 328  ;;  %1152 = vbcast.lane.b32.xlu0 %v1149_v15, 320  ;;  %3400 = vpow2.f32 %v1073_v36 }
 0x42f   : > { %1116 = vbcast.lane.b32.xlu1 %v1113_v17, 320  ;;  %1164 = vbcast.lane.b32.xlu0 %v1161_v21, 320 }
 0x433   : > { %1120 = vbcast.lane.b32.xlu1 %v1113_v17, 328  ;;  %1176 = vbcast.lane.b32.xlu0 %v1173_v25, 320 }
 0x435   : > { %v3401_v37 = vpop.eup %3400 }
 0x436   : > { %v1075_v39 = vadd.f32 1.0, %v3401_v37  ;;  %v1078_v51 = vmul.f32 -0.5, %v3401_v37  ;;  %v1081_v57 = vand.u32 2147483647, %v3401_v37 }
 0x437   : > { %1128 = vbcast.lane.b32.xlu1 %v1125_v27, 320  ;;  %1184 = vbcast.lane.b32.xlu0 %v1089_v10, 336 }
 0x438   : > { %3402 = vlog2.f32 %v1075_v39  ;;  %v1079_v56 = vadd.f32 1.0, %v1078_v51  ;;  %vm1082_vm4 = vcmp.lt.f32.partialorder %v1081_v57, 0.0004427343 }
 0x43a   : > { %v1080_v59 = vmul.f32 %v3401_v37, %v1079_v56 }
 0x43b   : > { %1132 = vbcast.lane.b32.xlu1 %v1125_v27, 328  ;;  %1192 = vbcast.lane.b32.xlu0 %v1101_v12, 336 }
 0x43f   : > { %1144 = vbcast.lane.b32.xlu1 %v1137_v13, 328  ;;  %1200 = vbcast.lane.b32.xlu0 %v1113_v17, 336 }
 0x442   : > { %v3403_v54 = vpop.eup %3402 }
 0x443   : > { %1156 = vbcast.lane.b32.xlu1 %v1149_v15, 328  ;;  %1208 = vbcast.lane.b32.xlu0 %v1125_v27, 336  ;;  %v1077_v58 = vmul.f32 0.6931472, %v3403_v54 }
 0x445   : > { %v1083_v60 = vsel %vm1082_vm4, %v1080_v59, %v1077_v58 }
 0x446   : > { %v1084_v62 = vadd.f32 %v1083_v60, %v1068_v61 }
 0x447   : > { %1168 = vbcast.lane.b32.xlu1 %v1161_v21, 328  ;;  %1216 = vbcast.lane.b32.xlu0 %v1137_v13, 336 }
 0x448   : > { %v4300_v63 = vsel %vm1069_vm5, %v1067_v31, %v1084_v62 }
 0x449   : > { %v1252_v1 = vrot.slane %v4300_v63, %v4235_v38  ;;  %v1285_v8 = vrot.slane %v4300_v63, %v4237_v40  ;;  %v4320_v29 = vmul.f32 %v4300_v63, %v4247_v5  ;;  %v1349_v37 = vrot.slane %v4300_v63, %v4242_v43 }
 0x44a   : > { %v1381_v52 = vrot.slane %v4300_v63, %v4254_v11 }
 0x44b   : > { %1180 = vbcast.lane.b32.xlu1 %v1173_v25, 328  ;;  %1224 = vbcast.lane.b32.xlu0 %v1149_v15, 336  ;;  %v1253_v3 = vmul.f32 %v1252_v1, %v4304_v2  ;;  %v1287_v28 = vmul.f32 %v1285_v8, %v4307_v4  ;;  %v1350_v48 = vmul.f32 %v1349_v37, %v4304_v2 }
 0x44c   : > { %v1351_v53 = vmul.f32 %v1349_v37, %v4307_v4  ;;  %v1297_v54 = vrot.slane %v4320_v29, %v4237_v40 }
 0x44d   : > { %v1255_v7 = vmul.f32 1.442695, %v1253_v3  ;;  %v1290_v33 = vmul.f32 1.442695, %v1287_v28  ;;  %v1352_v59 = vmul.f32 1.442695, %v1350_v48 }
 0x44e   : > { %v1354_v3 = vmul.f32 1.442695, %v1351_v53 }
 0x44f   : > { %1188 = vbcast.lane.b32.xlu1 %v1089_v10, 344  ;;  %1232 = vbcast.lane.b32.xlu0 %v1161_v21, 336  ;;  %v1254_v10 = vmul.f32 %v1252_v1, %v4307_v4  ;;  %3404 = vpow2.f32 %v1255_v7  ;;  %v1382_v1 = vmul.f32 %v1381_v52, %v4304_v2 }
 0x453   : > { %1196 = vbcast.lane.b32.xlu1 %v1101_v12, 344  ;;  %1240 = vbcast.lane.b32.xlu0 %v1173_v25, 336 }
 0x457   : > { %1204 = vbcast.lane.b32.xlu1 %v1113_v17, 344  ;;  %1524 = vrot.lane.b32.xlu0 %v1522_v34, %s3778_s22  ;;  %v1257_v17 = vmul.f32 1.442695, %v1254_v10  ;;  %v1264_v34 = vrot.slane %v4320_v29, %v4235_v38 }
 0x459   : > { %3406 = vpow2.f32 %v1257_v17  ;;  %v3405_v35 = vpop.eup %3404 }
 0x45a   : > { %v1259_v45 = vmul.f32 0.0, %v3405_v35 }
 0x45b   : > { %1212 = vbcast.lane.b32.xlu1 %v1125_v27, 344  ;;  %v1317_v27 = vrot.slane %v4300_v63, %v4240_v42 }
 0x45d   : > { %v1318_v32 = vmul.f32 %v1317_v27, %v4304_v2  ;;  %v1319_v39 = vmul.f32 %v1317_v27, %v4307_v4  ;;  %v1413_v27 = vrot.slane %v4300_v63, %v4258_v14 }
 0x45f   : > { %1220 = vbcast.lane.b32.xlu1 %v1137_v13, 344  ;;  %v1320_v44 = vmul.f32 1.442695, %v1318_v32  ;;  %v1322_v49 = vmul.f32 1.442695, %v1319_v39 }
 0x463   : > { %1228 = vbcast.lane.b32.xlu1 %v1149_v15, 344  ;;  %v1286_v15 = vmul.f32 %v1285_v8, %v4304_v2  ;;  %v3407_v46 = vpop.eup %3406 }
 0x464   : > { %v1260_v55 = vmul.f32 0.0, %v3407_v46 }
 0x465   : > { %v1288_v26 = vmul.f32 1.442695, %v1286_v15 }
 0x467   : > { %1236 = vbcast.lane.b32.xlu1 %v1161_v21, 344  ;;  %3408 = vpow2.f32 %v1288_v26  ;;  %v1384_v26 = vmul.f32 1.442695, %v1382_v1 }
 0x468   : > { %3410 = vpow2.f32 %v1290_v33 }
 0x469   : > { %3412 = vpow2.f32 %v1320_v44  ;;  %v1361_v44 = vrot.slane %v4320_v29, %v4242_v43 }
 0x46a   : > { %3414 = vpow2.f32 %v1322_v49 }
 0x46b   : > { %1244 = vbcast.lane.b32.xlu1 %v1173_v25, 344  ;;  %3416 = vpow2.f32 %v1352_v59 }
 0x46c   : > { %3418 = vpow2.f32 %v1354_v3 }
 0x46d   : > { %3420 = vpow2.f32 %v1384_v26 }
 0x471   : > { %v3409_v56 = vpop.eup %3408 }
 0x472   : > { %v3411_v8 = vpop.eup %3410 }
 0x495   : > { %v1097_v12 = vpop.permute.xlu1 %1096  ;;  %v1093_v13 = vpop.permute.xlu0 %1092 }
 0x496   : > { %v1265_v41 = vmul.f32 %v1264_v34, %v1093_v13  ;;  %v1266_v50 = vmul.f32 %v1264_v34, %v1097_v12  ;;  %v1383_v12 = vmul.f32 %v1381_v52, %v4307_v4  ;;  %v1329_v13 = vrot.slane %v4320_v29, %v4240_v42 }
 0x498   : > { %v4333_v51 = vadd.f32 %v1265_v41, %v1259_v45  ;;  %v4343_v62 = vadd.f32 %v1266_v50, %v1260_v55  ;;  %v1386_v34 = vmul.f32 1.442695, %v1383_v12  ;;  %v1414_v41 = vmul.f32 %v1413_v27, %v4304_v2 }
 0x499   : > { %v1105_v21 = vpop.permute.xlu1 %1104  ;;  %v4313_v25 = vpop.permute.xlu0 %1140 }
 0x49a   : > { %v1298_v60 = vmul.f32 %v1297_v54, %v1105_v21  ;;  %v1292_v61 = vmul.f32 %v3409_v56, %v4333_v51  ;;  %v1293_v17 = vmul.f32 %v3411_v8, %v4343_v62  ;;  %3422 = vpow2.f32 %v1386_v34 }
 0x49c   : > { %v1300_v15 = vadd.f32 %v1298_v60, %v1292_v61 }
 0x49d   : > { %v1109_v30 = vpop.permute.xlu1 %1108  ;;  %v4322_v31 = vpop.permute.xlu0 %1152 }
 0x49e   : > { %v1299_v7 = vmul.f32 %v1297_v54, %v1109_v30  ;;  %v3413_v30 = vpop.eup %3412  ;;  %v1445_v54 = vrot.slane %v4300_v63, %v4261_v16 }
 0x49f   : > { %v1324_v37 = vmul.f32 %v3413_v30, %v1300_v15  ;;  %v3415_v39 = vpop.eup %3414  ;;  %v1477_v30 = vrot.slane %v4300_v63, %v4265_v24 }
 0x4a0   : > { %v4352_v32 = vadd.f32 %v1299_v7, %v1293_v17  ;;  %v3417_v53 = vpop.eup %3416  ;;  %v1446_v8 = vmul.f32 %v1445_v54, %v4304_v2  ;;  %v1447_v17 = vmul.f32 %v1445_v54, %v4307_v4 }
 0x4a1   : > { %v1117_v36 = vpop.permute.xlu1 %1116  ;;  %v4330_v20 = vpop.permute.xlu0 %1164 }
 0x4a2   : > { %v1330_v28 = vmul.f32 %v1329_v13, %v1117_v36  ;;  %v1325_v46 = vmul.f32 %v3415_v39, %v4352_v32  ;;  %v1415_v36 = vmul.f32 %v1413_v27, %v4307_v4  ;;  %v3419_v59 = vpop.eup %3418 }
 0x4a4   : > { %v1332_v45 = vadd.f32 %v1330_v28, %v1324_v37  ;;  %v1418_v61 = vmul.f32 1.442695, %v1415_v36  ;;  %v1448_v28 = vmul.f32 1.442695, %v1446_v8 }
 0x4a5   : > { %v1121_v47 = vpop.permute.xlu1 %1120  ;;  %v4340_v57 = vpop.permute.xlu0 %1176 }
 0x4a6   : > { %v1331_v35 = vmul.f32 %v1329_v13, %v1121_v47  ;;  %v1416_v47 = vmul.f32 1.442695, %v1414_v41  ;;  %v1356_v56 = vmul.f32 %v3417_v53, %v1332_v45 }
 0x4a8   : > { %v1333_v52 = vadd.f32 %v1331_v35, %v1325_v46  ;;  %3424 = vpow2.f32 %v1416_v47  ;;  %v1450_v46 = vmul.f32 1.442695, %v1447_v17  ;;  %v1478_v47 = vmul.f32 %v1477_v30, %v4304_v2 }
 0x4a9   : > { %v1129_v58 = vpop.permute.xlu1 %1128  ;;  %v1185_v21 = vpop.permute.xlu0 %1184  ;;  %3426 = vpow2.f32 %v1418_v61 }
 0x4aa   : > { %v1362_v50 = vmul.f32 %v1361_v44, %v1129_v58  ;;  %v1357_v3 = vmul.f32 %v3419_v59, %v1333_v52  ;;  %v3421_v58 = vpop.eup %3420  ;;  %v1269_v35 = vmul.f32 %v4333_v51, %v1185_v21  ;;  %3428 = vpow2.f32 %v1448_v28 }
 0x4ab   : > { %v3423_v27 = vpop.eup %3422  ;;  %v1425_v51 = vrot.slane %v4320_v29, %v4258_v14  ;;  %3430 = vpow2.f32 %v1450_v46  ;;  %v1480_v8 = vmul.f32 1.442695, %v1478_v47 }
 0x4ac   : > { %v1364_v1 = vadd.f32 %v1362_v50, %v1356_v56  ;;  %v1271_v54 = vsel %vm986_vm3, %v1269_v35, 0.0  ;;  %v1479_v56 = vmul.f32 %v1477_v30, %v4307_v4 }
 0x4ad   : > { %v1133_v10 = vpop.permute.xlu1 %1132  ;;  %v1193_v48 = vpop.permute.xlu0 %1192  ;;  %v1426_v2 = vmul.f32 %v1425_v51, %v4322_v31  ;;  %3432 = vpow2.f32 %v1480_v8  ;;  %v1457_v31 = vrot.slane %v4320_v29, %v4261_v16 }
 0x4ae   : > { %v1363_v55 = vmul.f32 %v1361_v44, %v1133_v10  ;;  %v1393_v10 = vrot.slane %v4320_v29, %v4254_v11  ;;  %v1388_v26 = vmul.f32 %v3421_v58, %v1364_v1  ;;  %v1302_v53 = vmul.f32 %v1300_v15, %v1193_v48 }
 0x4af   : > { %v1482_v4 = vmul.f32 1.442695, %v1479_v56 }
 0x4b0   : > { %v4364_v12 = vadd.f32 %v1363_v55, %v1357_v3  ;;  %v1394_v34 = vmul.f32 %v1393_v10, %v4313_v25  ;;  %v1304_v48 = vsel %vm986_vm3, %v1302_v53, 0.0 }
 0x4b1   : > { %v1145_v33 = vpop.permute.xlu1 %1144  ;;  %v1201_v7 = vpop.permute.xlu0 %1200  ;;  %3434 = vpow2.f32 %v1482_v4 }
 0x4b2   : > { %v1395_v37 = vmul.f32 %v1393_v10, %v1145_v33  ;;  %v1389_v39 = vmul.f32 %v3423_v27, %v4364_v12  ;;  %v1396_v36 = vadd.f32 %v1394_v34, %v1388_v26  ;;  %v3425_v55 = vpop.eup %3424  ;;  %v1334_v58 = vmul.f32 %v1332_v45, %v1201_v7 }
 0x4b3   : > { %v3427_v15 = vpop.eup %3426 }
 0x4b4   : > { %v1397_v25 = vadd.f32 %v1395_v37, %v1389_v39  ;;  %v1420_v59 = vmul.f32 %v3425_v55, %v1396_v36  ;;  %v3429_v7 = vpop.eup %3428 }
 0x4b5   : > { %v1157_v49 = vpop.permute.xlu1 %1156  ;;  %v1209_v41 = vpop.permute.xlu0 %1208 }
 0x4b6   : > { %v1427_v17 = vmul.f32 %v1425_v51, %v1157_v49  ;;  %v1421_v26 = vmul.f32 %v3427_v15, %v1397_v25  ;;  %v1428_v30 = vadd.f32 %v1426_v2, %v1420_v59 }
 0x4b8   : > { %v1429_v49 = vadd.f32 %v1427_v17, %v1421_v26 }
 0x4b9   : > { %v4361_v60 = vpop.permute.xlu1 %1168  ;;  %v1217_v61 = vpop.permute.xlu0 %1216 }
 0x4ba   : > { %v1459_v56 = vmul.f32 %v1457_v31, %v4361_v60  ;;  %v1398_v59 = vmul.f32 %v1396_v36, %v1217_v61 }
 0x4bc   : > { %v1400_v36 = vsel %vm986_vm3, %v1398_v59, 0.0 }
 0x4bd   : > { %v4366_v13 = vpop.permute.xlu1 %1180  ;;  %v1225_v46 = vpop.permute.xlu0 %1224 }
 0x4be   : > { %v1430_v61 = vmul.f32 %v1428_v30, %v1225_v46 }
 0x4c1   : > { %v1189_v44 = vpop.permute.xlu1 %1188 }
 0x4c2   : > { %v1270_v50 = vmul.f32 %v4343_v62, %v1189_v44  ;;  %v1336_v44 = vsel %vm986_vm3, %v1334_v58, 0.0 }
 0x4c4   : > { %v1272_v63 = vsel %vm986_vm3, %v1270_v50, 0.0 }
 0x4c5   : > { %v1273_v21 = vadd.f32 %v1272_v63, %v1271_v54  ;;  %v1197_v33 = vpop.permute.xlu1 %1196  ;;  %v3431_v63 = vpop.eup %3430 }
 0x4c6   : > { %v1303_v62 = vmul.f32 %v4352_v32, %v1197_v33  ;;  %v1366_v32 = vmul.f32 %v1364_v1, %v1209_v41  ;;  %v1452_v1 = vmul.f32 %v3429_v7, %v1428_v30  ;;  %v1453_v15 = vmul.f32 %v3431_v63, %v1429_v49  ;;  %v3433_v4 = vpop.eup %3432 }
 0x4c7   : > { %v1274_v3 = vrot.slane %v1273_v21, 4 }
 0x4c8   : > { %v1305_v10 = vsel %vm986_vm3, %v1303_v62, 0.0  ;;  %v1368_v55 = vsel %vm986_vm3, %v1366_v32, 0.0 }
 0x4c9   : > { %v1275_v27 = vadd.f32 %v1274_v3, %v1273_v21  ;;  %v1306_v28 = vadd.f32 %v1305_v10, %v1304_v48  ;;  %v1205_v34 = vpop.permute.xlu1 %1204  ;;  %v1233_v10 = vpop.permute.xlu0 %1232 }
 0x4ca   : > { %v1335_v35 = vmul.f32 %v1333_v52, %v1205_v34  ;;  %v1458_v52 = vmul.f32 %v1457_v31, %v4330_v20  ;;  %v1461_v34 = vadd.f32 %v1459_v56, %v1453_v15 }
 0x4cb   : > { %v1276_v37 = vrot.slane %v1275_v27, 2  ;;  %v1307_v39 = vrot.slane %v1306_v28, 4 }
 0x4cc   : > { %v1337_v45 = vsel %vm986_vm3, %v1335_v35, 0.0  ;;  %v1460_v58 = vadd.f32 %v1458_v52, %v1452_v1 }
 0x4cd   : > { %v1277_v50 = vadd.f32 %v1276_v37, %v1275_v27  ;;  %v1308_v53 = vadd.f32 %v1307_v39, %v1306_v28  ;;  %v1338_v47 = vadd.f32 %v1337_v45, %v1336_v44  ;;  %v1213_v54 = vpop.permute.xlu1 %1212  ;;  %v3435_v45 = vpop.eup %3434 }
 0x4ce   : > { %v1367_v41 = vmul.f32 %v4364_v12, %v1213_v54  ;;  %v1489_v12 = vrot.slane %v4320_v29, %v4265_v24  ;;  %v1484_v31 = vmul.f32 %v3433_v4, %v1460_v58  ;;  %v1485_v52 = vmul.f32 %v3435_v45, %v1461_v34  ;;  %v1241_v1 = vpop.permute.xlu0 %1240 }
 0x4cf   : > { %v1278_v51 = vrot.slane %v1277_v50, 1  ;;  %v1309_v21 = vrot.slane %v1308_v53, 2  ;;  %v1339_v33 = vrot.slane %v1338_v47, 4 }
 0x4d0   : > { %v1369_v62 = vsel %vm986_vm3, %v1367_v41, 0.0  ;;  %v1490_v29 = vmul.f32 %v1489_v12, %v4340_v57  ;;  %v1491_v7 = vmul.f32 %v1489_v12, %v4366_v13 }
 0x4d1   : > { %v1279_v2 = vadd.f32 %v1278_v51, %v1277_v50  ;;  %v1310_v48 = vadd.f32 %v1309_v21, %v1308_v53  ;;  %v1340_v3 = vadd.f32 %v1339_v33, %v1338_v47  ;;  %v1370_v20 = vadd.f32 %v1369_v62, %v1368_v55  ;;  %v1221_v8 = vpop.permute.xlu1 %1220 }
 0x4d2   : > { %v1399_v17 = vmul.f32 %v1397_v25, %v1221_v8  ;;  %v1432_v53 = vsel %vm986_vm3, %v1430_v61, 0.0  ;;  %v1462_v47 = vmul.f32 %v1460_v58, %v1233_v10  ;;  %v1492_v51 = vadd.f32 %v1490_v29, %v1484_v31 }
 0x4d3   : > { %1281 = vst.msk [vmem:[#allocation2] sm:$0x1] %vm1280_vm6, %v1279_v2  ;;  %v1311_v26 = vrot.slane %v1310_v48, 1  ;;  %v1341_v27 = vrot.slane %v1340_v3, 2  ;;  %v1371_v60 = vrot.slane %v1370_v20, 4  ;;  %v1493_v2 = vadd.f32 %v1491_v7, %v1485_v52 }
 0x4d4   : > { %v1401_v28 = vsel %vm986_vm3, %v1399_v17, 0.0  ;;  %v1464_v59 = vsel %vm986_vm3, %v1462_v47, 0.0  ;;  %v1494_v62 = vmul.f32 %v1492_v51, %v1241_v1 }
 0x4d5   : > { %v1312_v35 = vadd.f32 %v1311_v26, %v1310_v48  ;;  %v1342_v32 = vadd.f32 %v1341_v27, %v1340_v3  ;;  %v1372_v37 = vadd.f32 %v1371_v60, %v1370_v20  ;;  %v1402_v25 = vadd.f32 %v1401_v28, %v1400_v36  ;;  %v1229_v39 = vpop.permute.xlu1 %1228 }
 0x4d6   : > { %v1431_v44 = vmul.f32 %v1429_v49, %v1229_v39  ;;  %v1496_v27 = vsel %vm986_vm3, %v1494_v62, 0.0 }
 0x4d7   : > { %1313 = vst.msk [vmem:[#allocation2 + $0x1] sm:$0x1] %vm1280_vm6, %v1312_v35  ;;  %v1343_v50 = vrot.slane %v1342_v32, 1  ;;  %v1373_v30 = vrot.slane %v1372_v37, 2  ;;  %v1403_v46 = vrot.slane %v1402_v25, 4 }
 0x4d8   : > { %v1433_v54 = vsel %vm986_vm3, %v1431_v44, 0.0 }
 0x4d9   : > { %v1344_v41 = vadd.f32 %v1343_v50, %v1342_v32  ;;  %v1374_v63 = vadd.f32 %v1373_v30, %v1372_v37  ;;  %v1404_v57 = vadd.f32 %v1403_v46, %v1402_v25  ;;  %v1434_v55 = vadd.f32 %v1433_v54, %v1432_v53  ;;  %v1237_v49 = vpop.permute.xlu1 %1236  ;;  %v2945_v30 = vld [vmem:[#allocation12] ss:$0 sm:$0xff]  ;;  %v1525_v54 = vpop.permute.xlu0 %1524 }
 0x4da   : > { %v1463_v21 = vmul.f32 %v1461_v34, %v1237_v49  ;;  %v1514_v46 = vmul.f32 %v2945_v30, %v4247_v5  ;;  %v2950_v5 = vld [vmem:[%s4723_s2 + $0x20] sm:$0xff]  ;;  %v2951_v49 = vld [vmem:[%s4723_s2 + $0x28] sm:$0xff] }
 0x4db   : > { %1345 = vst.msk [vmem:[#allocation2 + $0x2] sm:$0x1] %vm1280_vm6, %v1344_v41  ;;  %v1375_v13 = vrot.slane %v1374_v63, 1  ;;  %v1405_v33 = vrot.slane %v1404_v57, 2  ;;  %v1435_v56 = vrot.slane %v1434_v55, 4  ;;  %v3238_v51 = vpack.c.bf16 %v2951_v49, %v2950_v5 }
 0x4dc   : > { %v1465_v15 = vsel %vm986_vm3, %v1463_v21, 0.0  ;;  %v2953_v21 = vld [vmem:[%s4723_s2 + $0x38] sm:$0xff] }
 0x4dd   : > { %v1376_v48 = vadd.f32 %v1375_v13, %v1374_v63  ;;  %v1406_v3 = vadd.f32 %v1405_v33, %v1404_v57  ;;  %v1436_v20 = vadd.f32 %v1435_v56, %v1434_v55  ;;  %v1466_v8 = vadd.f32 %v1465_v15, %v1464_v59  ;;  %v1245_v58 = vpop.permute.xlu1 %1244  ;;  %3239 = vmatpush3.bf16.msra.mxu1 %v3238_v51  ;;  %v2949_v15 = vld [vmem:[%s4722_s1 + $0x1] ss:$0 sm:$0xff] }
 0x4de   : > { %v1495_v17 = vmul.f32 %v1493_v2, %v1245_v58  ;;  %3240 = vmatprep.subr.bf16.mxu1 %v3775_v6 }
 0x4df   : > { %1377 = vst.msk [vmem:[#allocation2 + $0x3] sm:$0x1] %vm1280_vm6, %v1376_v48  ;;  %v1407_v12 = vrot.slane %v1406_v3, 1  ;;  %v1437_v10 = vrot.slane %v1436_v20, 2  ;;  %v1467_v26 = vrot.slane %v1466_v8, 4 }
 0x4e0   : > { %v1497_v60 = vsel %vm986_vm3, %v1495_v17, 0.0  ;;  %v2968_v17 = vld [vmem:[%s4769_s19 + $0x60] sm:$0xff] }
 0x4e1   : > { %v1408_v36 = vadd.f32 %v1407_v12, %v1406_v3  ;;  %v1438_v61 = vadd.f32 %v1437_v10, %v1436_v20  ;;  %v1468_v28 = vadd.f32 %v1467_v26, %v1466_v8  ;;  %v1498_v34 = vadd.f32 %v1497_v60, %v1496_v27  ;;  %v2966_v8 = vld [vmem:[%s4769_s19 + $0x50] sm:$0xff]  ;;  %v2969_v12 = vld [vmem:[%s4769_s19 + $0x68] sm:$0xff]  ;;  %v2971_v27 = vld [vmem:[%s4769_s19 + $0x78] sm:$0xff] }
 0x4e2   : > { %v3250_v10 = vpack.c.bf16 %v2969_v12, %v2968_v17  ;;  %v2970_v26 = vld [vmem:[%s4769_s19 + $0x70] sm:$0xff]  ;;  %v2976_v17 = vld [vmem:[%s4770_s9 + $0x40] sm:$0xff]  ;;  %v2977_v12 = vld [vmem:[%s4770_s9 + $0x48] sm:$0xff] }
 0x4e3   : > { %1409 = vst.msk [vmem:[#allocation2 + $0x4] sm:$0x1] %vm1280_vm6, %v1408_v36  ;;  %v1439_v4 = vrot.slane %v1438_v61, 1  ;;  %v1469_v35 = vrot.slane %v1468_v28, 2  ;;  %v1499_v32 = vrot.slane %v1498_v34, 4  ;;  %v3253_v60 = vpack.c.bf16 %v2971_v27, %v2970_v26 }
 0x4e4   : > { %v1706_v36 = vld [vmem:[#allocation6 + $0x4] sm:$0xf]  ;;  %v3256_v27 = vpack.c.bf16 %v2977_v12, %v2976_v17 }
 0x4e5   : > { %v1440_v37 = vadd.f32 %v1439_v4, %v1438_v61  ;;  %v1470_v25 = vadd.f32 %v1469_v35, %v1468_v28  ;;  %v1500_v39 = vadd.f32 %v1499_v32, %v1498_v34  ;;  %v1786_v61 = vrot.slane %v1706_v36, %v4235_v38 }
 0x4e6   : > { %v1872_v35 = vrot.slane %v1706_v36, %v4237_v40  ;;  %v1952_v32 = vrot.slane %v1706_v36, %v4240_v42 }
 0x4e7   : > { %1441 = vst.msk [vmem:[#allocation2 + $0x5] sm:$0x1] %vm1280_vm6, %v1440_v37  ;;  %v1471_v29 = vrot.slane %v1470_v25, 1  ;;  %v1501_v31 = vrot.slane %v1500_v39, 2  ;;  %v2956_v37 = vld [vmem:[#allocation8 + $0x1] ss:$0 sm:$0xff] }
 0x4e9   : > { %v1472_v44 = vadd.f32 %v1471_v29, %v1470_v25  ;;  %v1502_v45 = vadd.f32 %v1501_v31, %v1500_v39 }
 0x4eb   : > { %1473 = vst.msk [vmem:[#allocation2 + $0x6] sm:$0x1] %vm1280_vm6, %v1472_v44  ;;  %v1503_v7 = vrot.slane %v1502_v45, 1 }
 0x4ed   : > { %v1504_v50 = vadd.f32 %v1503_v7, %v1502_v45 }
 0x4ef   : > { %1505 = vst.msk [vmem:[#allocation2 + $0x7] sm:$0x1] %vm1280_vm6, %v1504_v50  ;;  %v2032_v50 = vrot.slane %v1706_v36, %v4242_v43 }
 0x4f6   : > { %v1506_v53 = vld [vmem:[#allocation2] sm:$0xff] }
 0x4f7   : > { %v1515_v47 = vadd.f32 %v1514_v46, %v1506_v53 }
 0x4f9   : > { %v1527_v52 = vmul.f32 %v1525_v54, %v1515_v47 }
 0x4fb   : > { %3125 = vmatmul.mubr.msk.f32.vlgmr.msra.gmra.mrb[6].mxu0 %vm986_vm3, %v1527_v52 }
 0x4fc   : > { %3140 = vmatprep.mubr.msk.f32.mxu0 %vm3776_vm1, %v3777_v9 }
 0x5ce   : > { %v1605_v1 = vpop.f32.mrb[6].mxu0 }
 0x5cf   : > { %v4421_v41 = vadd.f32 %v1605_v1, %v4129_v0  ;;  %v3126_v63 = vpop.f32.mrb[7].mxu0  ;;  %v2952_v0 = vld [vmem:[%s4723_s2 + $0x30] sm:$0xff] }
 0x5d0   : > { %v3241_v13 = vpack.c.bf16 %v2953_v21, %v2952_v0 }
 0x5d1   : > { %v1610_v57 = vmul.f32 %v4421_v41, %v4421_v41 }
 0x5d2   : > { %3242 = vmatpush3.bf16.msra.mxu1 %v3241_v13 }
 0x5d3   : > { %v1611_v55 = vsel %vm545_vm0, %v1610_v57, 0.0  ;;  %3148 = vmatprep.subr.mxu1 %v3777_v9 }
 0x5d4   : > { %1612 = vadd.xlane.f32.xlu1 %v1611_v55 }
 0x661   : > { %v1613_v33 = vpop.xlane.xlu1 %1612 }
 0x662   : > { %v1614_v56 = vmul.f32 0.03125, %v1613_v33 }
 0x664   : > { %v1615_v59 = vadd.f32 1e-05, %v1614_v56 }
 0x666   : > { %3436 = vrsqrt.f32 %v1615_v59 }
 0x670   : > { %v3437_v62 = vpop.eup %3436 }
 0x671   : > { %v1617_v2 = vmul.f32 %v3437_v62, %v4421_v41 }
 0x673   : > { %v1626_v48 = vmul.f32 %v2949_v15, %v1617_v2 }
 0x675   : > { %3136 = vmatmul.mubr.msk.f32.vlgmr.msra.gmra.mrb[6].mxu1 %vm545_vm0, %v1626_v48 }
 0x676   : > { %3150 = vmatprep.mubr.msk.f32.mxu1 %vm3776_vm1, %v3777_v9 }
 0x748   : > { %v4447_v3 = vpop.f32.mrb[6].mxu1 }
 0x749   : > { %v3137_v20 = vpop.f32.mrb[7].mxu1  ;;  %3139 = vmatpush3.msra.mxu0 %v4447_v3  ;;  %3149 = vmatpush3.msra.mxu1 %v4447_v3  ;;  %v2975_v33 = vmul.f32 -1.442695, %v4447_v3 }
 0x74a   : > { %3141 = vmatmul.mubr.msk.f32.vlgmr.msra.gmra.mrb[8].mxu0 %vm642_vm2, %v4164_v18  ;;  %3143 = vmatprep.subr.mxu0 %v3777_v9  ;;  %v2964_v18 = vld [vmem:[%s4769_s19 + $0x40] sm:$0xff] }
 0x74b   : > { %3144 = vmatpush3.msra.mxu0 %v4447_v3  ;;  %3145 = vmatprep.mubr.msk.f32.mxu0 %vm3776_vm1, %v3777_v9 }
 0x74c   : > { %3153 = vmatprep.subr.mxu0 %v3777_v9  ;;  %3151 = vmatmul.mubr.msk.f32.vlgmr.msra.gmra.mrb[8].mxu1 %vm642_vm2, %v4184_v22 }
 0x74d   : > { %3243 = vmatprep.subr.bf16.mxu1 %v3775_v6  ;;  %3174 = vmatprep.mubr.msk.f32.mxu1 %vm3776_vm1, %v3777_v9 }
 0x74e   : > { %3146 = vmatmul.mubr.msk.f32.vlgmr.msra.gmra.mrb[10].mxu0 %vm642_vm2, %v4169_v19  ;;  %v2965_v19 = vld [vmem:[%s4769_s19 + $0x48] sm:$0xff] }
 0x74f   : > { %3154 = vmatpush3.msra.mxu0 %v4447_v3  ;;  %3155 = vmatprep.mubr.msk.f32.mxu0 %vm3776_vm1, %v3777_v9  ;;  %v3244_v22 = vpack.c.bf16 %v2965_v19, %v2964_v18  ;;  %v2973_v19 = vld [vmem:[#allocation9 + $0x1] ss:$0 sm:$0xff] }
 0x750   : > { %3255 = vmatprep.subr.bf16.mxu0 %v3775_v6 }
 0x751   : > { %3245 = vmatpush3.bf16.msra.mxu1 %v3244_v22 }
 0x752   : > { %3156 = vmatmul.mubr.msk.f32.vlgmr.msra.gmra.mrb[12].mxu0 %vm642_vm2, %v4189_v23  ;;  %v2967_v23 = vld [vmem:[%s4769_s19 + $0x58] sm:$0xff]  ;;  %3246 = vmatprep.subr.bf16.mxu1 %v3775_v6 }
 0x753   : > { %3193 = vmatprep.mubr.msk.f32.mxu0 %vm3776_vm1, %v3777_v9  ;;  %v3247_v58 = vpack.c.bf16 %v2967_v23, %v2966_v8  ;;  %3257 = vmatpush3.bf16.msra.mxu0 %v3256_v27 }
 0x754   : > { %3258 = vmatprep.subr.bf16.mxu0 %v3775_v6 }
 0x755   : > { %3248 = vmatpush3.bf16.msra.mxu1 %v3247_v58 }
 0x756   : > { %3249 = vmatprep.subr.bf16.mxu1 %v3775_v6 }
 0x759   : > { %3251 = vmatpush3.bf16.msra.mxu1 %v3250_v10  ;;  %v2978_v10 = vld [vmem:[%s4770_s9 + $0x50] sm:$0xff] }
 0x75a   : > { %3252 = vmatprep.subr.bf16.mxu1 %v3775_v6 }
 0x75d   : > { %3254 = vmatpush3.bf16.msra.mxu1 %v3253_v60  ;;  %v2979_v60 = vld [vmem:[%s4770_s9 + $0x58] sm:$0xff] }
 0x75e   : > { %3267 = vmatprep.subr.bf16.mxu1 %v3775_v6  ;;  %v3259_v36 = vpack.c.bf16 %v2979_v60, %v2978_v10 }
 0x760   : > { %3260 = vmatpush3.bf16.msra.mxu0 %v3259_v36 }
 0x761   : > { %3261 = vmatprep.subr.bf16.mxu0 %v3775_v6 }
 0x81d   : > { %v1779_v28 = vpop.f32.mrb[8].mxu0 }
 0x81e   : > { %v1787_v34 = vmul.f32 %v1786_v61, %v1779_v28  ;;  %v3142_v4 = vpop.f32.mrb[9].mxu0  ;;  %v2980_v61 = vld [vmem:[%s4770_s9 + $0x60] sm:$0xff]  ;;  %v2981_v28 = vld [vmem:[%s4770_s9 + $0x68] sm:$0xff] }
 0x81f   : > { %v1945_v25 = vpop.f32.mrb[8].mxu1  ;;  %v2982_v4 = vld [vmem:[%s4770_s9 + $0x70] sm:$0xff] }
 0x820   : > { %v3152_v39 = vpop.f32.mrb[9].mxu1  ;;  %v1794_v31 = vadd.f32 %v2956_v37, %v1787_v34  ;;  %v1953_v45 = vmul.f32 %v1952_v32, %v1945_v25  ;;  %v3262_v34 = vpack.c.bf16 %v2981_v28, %v2980_v61 }
 0x821   : > { %v1865_v29 = vpop.f32.mrb[10].mxu0 }
 0x822   : > { %v1873_v44 = vmul.f32 %v1872_v35, %v1865_v29  ;;  %v3147_v7 = vpop.f32.mrb[11].mxu0  ;;  %v2983_v35 = vld [vmem:[%s4770_s9 + $0x78] sm:$0xff]  ;;  %3263 = vmatpush3.bf16.msra.mxu0 %v3262_v34 }
 0x823   : > { %v3265_v32 = vpack.c.bf16 %v2983_v35, %v2982_v4  ;;  %3264 = vmatprep.subr.bf16.mxu0 %v3775_v6 }
 0x824   : > { %v1874_v30 = vadd.f32 %v1873_v44, %v1794_v31 }
 0x825   : > { %v2025_v46 = vpop.f32.mrb[12].mxu0 }
 0x826   : > { %v1954_v53 = vadd.f32 %v1953_v45, %v1874_v30  ;;  %v2033_v47 = vmul.f32 %v2032_v50, %v2025_v46  ;;  %v3157_v54 = vpop.f32.mrb[13].mxu0  ;;  %3266 = vmatpush3.bf16.msra.mxu0 %v3265_v32 }
 0x827   : > { %v4553_v54 = vld [vmem:[#allocation11 + $0x10] sm:$0xff] }
 0x828   : > { %v2034_v52 = vadd.f32 %v2033_v47, %v1954_v53 }
 0x82a   : > { %v2963_v1 = vmul.f32 -1.442695, %v2034_v52 }
 0x82c   : > { %3438 = vpow2.f32 %v2963_v1 }
 0x836   : > { %v3439_v63 = vpop.eup %3438 }
 0x837   : > { %v2038_v57 = vadd.f32 1.0, %v3439_v63  ;;  %v4556_v63 = vld [vmem:[#allocation11 + $0x18] sm:$0xff] }
 0x839   : > { %3440 = vrcp.f32 %v2038_v57 }
 0x83a   : > { %3442 = vpow2.f32 %v2975_v33 }
 0x843   : > { %v3441_v55 = vpop.eup %3440 }
 0x844   : > { %v4505_v5 = vmul.f32 %v3441_v55, %v2034_v52  ;;  %v3443_v59 = vpop.eup %3442 }
 0x845   : > { %v2585_v15 = vadd.f32 1.0, %v3443_v59 }
 0x846   : > { %3175 = vmatmul.mubr.msk.f32.vlgmr.msra.gmra.mrb[10].mxu1 %vm986_vm3, %v4505_v5 }
 0x847   : > { %3204 = vmatprep.mubr.msk.f32.mxu1 %vm3776_vm1, %v3777_v9  ;;  %3444 = vrcp.f32 %v2585_v15 }
 0x851   : > { %v3445_v20 = vpop.eup %3444 }
 0x852   : > { %v2588_v18 = vmul.f32 %v3445_v20, %v4447_v3 }
 0x919   : > { %v2120_v49 = vpop.f32.mrb[10].mxu1 }
 0x91a   : > { %v3176_v0 = vpop.f32.mrb[11].mxu1  ;;  %v2202_v51 = vrot.slane %v2120_v49, %v4254_v11  ;;  %v2154_v21 = vrot.slane %v2120_v49, %v4235_v38  ;;  %v2238_v13 = vrot.slane %v2120_v49, %v4265_v24  ;;  %v2166_v56 = vrot.slane %v2120_v49, %v4237_v40 }
 0x91b   : > { %v2178_v9 = vrot.slane %v2120_v49, %v4240_v42  ;;  %v2190_v62 = vrot.slane %v2120_v49, %v4242_v43  ;;  %v2214_v2 = vrot.slane %v2120_v49, %v4258_v14  ;;  %v2226_v48 = vrot.slane %v2120_v49, %v4261_v16 }
 0x91c   : > { %2209 = vbcast.lane.b32.xlu1 %v2202_v51, 328  ;;  %2157 = vbcast.lane.b32.xlu0 %v2154_v21, 320  ;;  %v2132_v22 = vadd.f32 %v2973_v19, %v2120_v49 }
 0x91e   : > { %v2136_v8 = vand.u32 2147483647, %v2132_v22  ;;  %v2133_v7 = vmax.f32 %v2132_v22, 0.0  ;;  %vm2134_vm8 = vcmp.ne.f32.partialorder %v2132_v22, %v2132_v22 }
 0x920   : > { %2241 = vbcast.lane.b32.xlu1 %v2238_v13, 320  ;;  %2161 = vbcast.lane.b32.xlu0 %v2154_v21, 328  ;;  %v2137_v23 = vsub.f32 0.0, %v2136_v8 }
 0x922   : > { %v2138_v58 = vmul.f32 1.442695, %v2137_v23 }
 0x924   : > { %2249 = vbcast.lane.b32.xlu1 %v2154_v21, 336  ;;  %2169 = vbcast.lane.b32.xlu0 %v2166_v56, 320  ;;  %3446 = vpow2.f32 %v2138_v58 }
 0x928   : > { %2257 = vbcast.lane.b32.xlu1 %v2166_v56, 336  ;;  %2173 = vbcast.lane.b32.xlu0 %v2166_v56, 328 }
 0x92c   : > { %2265 = vbcast.lane.b32.xlu1 %v2178_v9, 336  ;;  %2181 = vbcast.lane.b32.xlu0 %v2178_v9, 320 }
 0x92e   : > { %v3447_v3 = vpop.eup %3446 }
 0x92f   : > { %v2140_v26 = vadd.f32 1.0, %v3447_v3  ;;  %v2143_v37 = vmul.f32 -0.5, %v3447_v3  ;;  %v2146_v29 = vand.u32 2147483647, %v3447_v3 }
 0x930   : > { %2273 = vbcast.lane.b32.xlu1 %v2190_v62, 336  ;;  %2185 = vbcast.lane.b32.xlu0 %v2178_v9, 328 }
 0x931   : > { %3448 = vlog2.f32 %v2140_v26  ;;  %v2144_v39 = vadd.f32 1.0, %v2143_v37  ;;  %vm2147_vm7 = vcmp.lt.f32.partialorder %v2146_v29, 0.0004427343 }
 0x933   : > { %v2145_v44 = vmul.f32 %v3447_v3, %v2144_v39 }
 0x934   : > { %2281 = vbcast.lane.b32.xlu1 %v2202_v51, 336  ;;  %2193 = vbcast.lane.b32.xlu0 %v2190_v62, 320 }
 0x938   : > { %2289 = vbcast.lane.b32.xlu1 %v2214_v2, 336  ;;  %2197 = vbcast.lane.b32.xlu0 %v2190_v62, 328 }
 0x93b   : > { %v3449_v25 = vpop.eup %3448 }
 0x93c   : > { %2297 = vbcast.lane.b32.xlu1 %v2226_v48, 336  ;;  %2205 = vbcast.lane.b32.xlu0 %v2202_v51, 320  ;;  %v2142_v31 = vmul.f32 0.6931472, %v3449_v25 }
 0x93e   : > { %v2148_v45 = vsel %vm2147_vm7, %v2145_v44, %v2142_v31 }
 0x93f   : > { %v2149_v50 = vadd.f32 %v2148_v45, %v2133_v7 }
 0x940   : > { %2305 = vbcast.lane.b32.xlu1 %v2238_v13, 336  ;;  %2217 = vbcast.lane.b32.xlu0 %v2214_v2, 320 }
 0x941   : > { %v4549_v46 = vsel %vm2134_vm8, %v2132_v22, %v2149_v50 }
 0x942   : > { %v2318_v47 = vrot.slane %v4549_v46, %v4235_v38  ;;  %v2350_v49 = vrot.slane %v4549_v46, %v4237_v40  ;;  %v2382_v33 = vrot.slane %v4549_v46, %v4240_v42 }
 0x944   : > { %2590 = vrot.lane.b32.xlu1 %v2588_v18, %s3778_s22  ;;  %2221 = vbcast.lane.b32.xlu0 %v2214_v2, 328  ;;  %v2319_v1 = vmul.f32 %v2318_v47, %v4553_v54  ;;  %v2320_v0 = vmul.f32 %v2318_v47, %v4556_v63  ;;  %v2352_v59 = vmul.f32 %v2350_v49, %v4556_v63  ;;  %s2785_s22 = sshll.u32 %s542_s21, 4  ;;  %s4674_s22 = int_to_ptr.vmem [resolvable:$true] %s2785_s22 }
 0x945   : > { %v2383_v15 = vmul.f32 %v2382_v33, %v4553_v54  ;;  %v2384_v58 = vmul.f32 %v2382_v33, %v4556_v63  ;;  %s3682_s5 = scalar_lea.vmem %s4674_s22, 128 }
 0x946   : > { %v2321_v55 = vmul.f32 1.442695, %v2319_v1  ;;  %v2355_v20 = vmul.f32 1.442695, %v2352_v59  ;;  %p3683_p6 = scmp.ne.s32.totalorder %s4674_s22, %s3682_s5 }
 0x947   : > { %v2385_v8 = vmul.f32 1.442695, %v2383_v15  ;;  %v2387_v27 = vmul.f32 1.442695, %v2384_v58 }
 0x948   : > { %2229 = vbcast.lane.b32.xlu0 %v2226_v48, 320  ;;  %3450 = vpow2.f32 %v2321_v55  ;;  %p3684_p10 = pnand %p3683_p6, %p4774_p5 }
 0x94a   : > { %p3685_p1 = pneg %p3684_p10 }
 0x94c   : > { %2233 = vbcast.lane.b32.xlu0 %v2226_v48, 328 }
 0x950   : > { %2245 = vbcast.lane.b32.xlu0 %v2238_v13, 328 }
 0x952   : > { %v3451_v19 = vpop.eup %3450 }
 0x953   : > { %v2325_v12 = vmul.f32 0.0, %v3451_v19 }
 0x954   : > { %2253 = vbcast.lane.b32.xlu0 %v2154_v21, 344  ;;  %v2351_v21 = vmul.f32 %v2350_v49, %v4553_v54 }
 0x958   : > { %2261 = vbcast.lane.b32.xlu0 %v2166_v56, 344 }
 0x95c   : > { %2269 = vbcast.lane.b32.xlu0 %v2178_v9, 344  ;;  %v2353_v9 = vmul.f32 1.442695, %v2351_v21 }
 0x960   : > { %2277 = vbcast.lane.b32.xlu0 %v2190_v62, 344  ;;  %v4567_v62 = vmul.f32 %v4549_v46, %v4505_v5 }
 0x962   : > { %v2330_v18 = vrot.slane %v4567_v62, %v4235_v38  ;;  %v2446_v38 = vrot.slane %v4549_v46, %v4254_v11  ;;  %v2362_v61 = vrot.slane %v4567_v62, %v4237_v40  ;;  %v2478_v40 = vrot.slane %v4549_v46, %v4258_v14 }
 0x963   : > { %v2394_v50 = vrot.slane %v4567_v62, %v4240_v42  ;;  %v2426_v15 = vrot.slane %v4567_v62, %v4242_v43 }
 0x964   : > { %2285 = vbcast.lane.b32.xlu0 %v2202_v51, 344  ;;  %v2447_v25 = vmul.f32 %v2446_v38, %v4553_v54  ;;  %v2448_v1 = vmul.f32 %v2446_v38, %v4556_v63  ;;  %v2479_v21 = vmul.f32 %v2478_v40, %v4553_v54 }
 0x966   : > { %v2449_v47 = vmul.f32 1.442695, %v2447_v25 }
 0x968   : > { %2293 = vbcast.lane.b32.xlu0 %v2214_v2, 344 }
 0x96c   : > { %2301 = vbcast.lane.b32.xlu0 %v2226_v48, 344  ;;  %v2414_v48 = vrot.slane %v4549_v46, %v4242_v43  ;;  %v2458_v43 = vrot.slane %v4567_v62, %v4254_v11 }
 0x96e   : > { %v2415_v17 = vmul.f32 %v2414_v48, %v4553_v54  ;;  %v2416_v4 = vmul.f32 %v2414_v48, %v4556_v63 }
 0x970   : > { %2309 = vbcast.lane.b32.xlu0 %v2238_v13, 344  ;;  %v2323_v13 = vmul.f32 1.442695, %v2320_v0  ;;  %v2417_v34 = vmul.f32 1.442695, %v2415_v17  ;;  %v2480_v17 = vmul.f32 %v2478_v40, %v4556_v63 }
 0x971   : > { %v2419_v44 = vmul.f32 1.442695, %v2416_v4 }
 0x972   : > { %3452 = vpow2.f32 %v2323_v13  ;;  %v2483_v4 = vmul.f32 1.442695, %v2480_v17 }
 0x973   : > { %3454 = vpow2.f32 %v2353_v9  ;;  %v2451_v9 = vmul.f32 1.442695, %v2448_v1 }
 0x974   : > { %3456 = vpow2.f32 %v2355_v20 }
 0x975   : > { %3458 = vpow2.f32 %v2385_v8 }
 0x976   : > { %3460 = vpow2.f32 %v2387_v27 }
 0x977   : > { %3462 = vpow2.f32 %v2417_v34 }
 0x978   : > { %3464 = vpow2.f32 %v2419_v44 }
 0x979   : > { %3466 = vpow2.f32 %v2449_v47 }
 0x97a   : > { %3468 = vpow2.f32 %v2451_v9 }
 0x97c   : > { %v3453_v10 = vpop.eup %3452 }
 0x97d   : > { %v2326_v32 = vmul.f32 0.0, %v3453_v10  ;;  %v3455_v37 = vpop.eup %3454 }
 0x98e   : > { %v2158_v30 = vpop.permute.xlu0 %2157  ;;  %v4574_v22 = vpop.permute.xlu1 %2209 }
 0x98f   : > { %v2331_v3 = vmul.f32 %v2330_v18, %v2158_v30  ;;  %v3457_v30 = vpop.eup %3456 }
 0x990   : > { %v3459_v0 = vpop.eup %3458 }
 0x991   : > { %v4584_v36 = vadd.f32 %v2331_v3, %v2325_v12  ;;  %v3461_v48 = vpop.eup %3460 }
 0x992   : > { %v2162_v53 = vpop.permute.xlu0 %2161  ;;  %v4588_v28 = vpop.permute.xlu1 %2241 }
 0x993   : > { %v2332_v60 = vmul.f32 %v2330_v18, %v2162_v53  ;;  %v2357_v29 = vmul.f32 %v3455_v37, %v4584_v36  ;;  %v2481_v18 = vmul.f32 1.442695, %v2479_v21  ;;  %v3463_v58 = vpop.eup %3462 }
 0x995   : > { %v2334_v31 = vadd.f32 %v2332_v60, %v2326_v32  ;;  %3470 = vpow2.f32 %v2481_v18  ;;  %v3465_v60 = vpop.eup %3464 }
 0x996   : > { %v2170_v52 = vpop.permute.xlu0 %2169  ;;  %v2250_v53 = vpop.permute.xlu1 %2249  ;;  %3472 = vpow2.f32 %v2483_v4 }
 0x997   : > { %v2363_v35 = vmul.f32 %v2362_v61, %v2170_v52  ;;  %v2358_v49 = vmul.f32 %v3457_v30, %v2334_v31  ;;  %v3467_v37 = vpop.eup %3466  ;;  %v2335_v11 = vmul.f32 %v4584_v36, %v2250_v53 }
 0x998   : > { %v3469_v30 = vpop.eup %3468 }
 0x999   : > { %v2365_v45 = vadd.f32 %v2363_v35, %v2357_v29 }
 0x99a   : > { %v2174_v57 = vpop.permute.xlu0 %2173  ;;  %v2258_v20 = vpop.permute.xlu1 %2257 }
 0x99b   : > { %v2364_v7 = vmul.f32 %v2362_v61, %v2174_v57  ;;  %v2389_v13 = vmul.f32 %v3459_v0, %v2365_v45  ;;  %v2542_v61 = vrot.slane %v4549_v46, %v4265_v24 }
 0x99d   : > { %v2366_v33 = vadd.f32 %v2364_v7, %v2358_v49  ;;  %v2367_v49 = vmul.f32 %v2365_v45, %v2258_v20  ;;  %v2544_v9 = vmul.f32 %v2542_v61, %v4556_v63 }
 0x99e   : > { %v2182_v51 = vpop.permute.xlu0 %2181 }
 0x99f   : > { %v2395_v55 = vmul.f32 %v2394_v50, %v2182_v51  ;;  %v2510_v51 = vrot.slane %v4549_v46, %v4261_v16  ;;  %v2390_v8 = vmul.f32 %v3461_v48, %v2366_v33  ;;  %v3471_v0 = vpop.eup %3470  ;;  %v2369_v18 = vsel %vm986_vm3, %v2367_v49, 0.0 }
 0x9a1   : > { %v2397_v42 = vadd.f32 %v2395_v55, %v2389_v13  ;;  %v2512_v29 = vmul.f32 %v2510_v51, %v4556_v63  ;;  %v2337_v55 = vsel %vm986_vm3, %v2335_v11, 0.0  ;;  %v2547_v63 = vmul.f32 1.442695, %v2544_v9 }
 0x9a2   : > { %v2186_v56 = vpop.permute.xlu0 %2185 }
 0x9a3   : > { %v2396_v59 = vmul.f32 %v2394_v50, %v2186_v56  ;;  %v2421_v12 = vmul.f32 %v3463_v58, %v2397_v42  ;;  %v2511_v56 = vmul.f32 %v2510_v51, %v4553_v54  ;;  %v2515_v1 = vmul.f32 1.442695, %v2512_v29 }
 0x9a5   : > { %v2398_v10 = vadd.f32 %v2396_v59, %v2390_v8  ;;  %v2513_v25 = vmul.f32 1.442695, %v2511_v56  ;;  %v3473_v56 = vpop.eup %3472 }
 0x9a6   : > { %v2194_v2 = vpop.permute.xlu0 %2193 }
 0x9a7   : > { %v2427_v19 = vmul.f32 %v2426_v15, %v2194_v2  ;;  %v2266_v2 = vpop.permute.xlu1 %2265  ;;  %v2422_v32 = vmul.f32 %v3465_v60, %v2398_v10  ;;  %3474 = vpow2.f32 %v2513_v25 }
 0x9a8   : > { %3476 = vpow2.f32 %v2515_v1  ;;  %v2399_v45 = vmul.f32 %v2397_v42, %v2266_v2 }
 0x9a9   : > { %v2429_v38 = vadd.f32 %v2427_v19, %v2421_v12 }
 0x9aa   : > { %v4576_v23 = vpop.permute.xlu0 %2197  ;;  %v2401_v2 = vsel %vm986_vm3, %v2399_v45, 0.0 }
 0x9ab   : > { %v2428_v27 = vmul.f32 %v2426_v15, %v4576_v23  ;;  %v2453_v40 = vmul.f32 %v3467_v37, %v2429_v38  ;;  %v2543_v23 = vmul.f32 %v2542_v61, %v4553_v54  ;;  %v2274_v47 = vpop.permute.xlu1 %2273 }
 0x9ad   : > { %v2430_v44 = vadd.f32 %v2428_v27, %v2422_v32  ;;  %v2545_v21 = vmul.f32 1.442695, %v2543_v23 }
 0x9ae   : > { %v4580_v26 = vpop.permute.xlu0 %2205 }
 0x9af   : > { %v2459_v35 = vmul.f32 %v2458_v43, %v4580_v26  ;;  %v2490_v26 = vrot.slane %v4567_v62, %v4258_v14  ;;  %v2454_v53 = vmul.f32 %v3469_v30, %v2430_v44  ;;  %v2282_v19 = vpop.permute.xlu1 %2281  ;;  %3478 = vpow2.f32 %v2545_v21 }
 0x9b0   : > { %3480 = vpow2.f32 %v2547_v63 }
 0x9b1   : > { %v2461_v50 = vadd.f32 %v2459_v35, %v2453_v40  ;;  %v3475_v35 = vpop.eup %3474 }
 0x9b2   : > { %v4592_v39 = vpop.permute.xlu0 %2217 }
 0x9b3   : > { %v2485_v59 = vmul.f32 %v3471_v0, %v2461_v50  ;;  %v2491_v15 = vmul.f32 %v2490_v26, %v4592_v39  ;;  %v2522_v39 = vrot.slane %v4567_v62, %v4261_v16  ;;  %v2290_v11 = vpop.permute.xlu1 %2289 }
 0x9b5   : > { %v2493_v12 = vadd.f32 %v2491_v15, %v2485_v59 }
 0x9b6   : > { %v4599_v52 = vpop.permute.xlu0 %2221 }
 0x9b7   : > { %v2517_v29 = vmul.f32 %v3475_v35, %v2493_v12 }
 0x9ba   : > { %v4603_v57 = vpop.permute.xlu0 %2229 }
 0x9bb   : > { %v2523_v60 = vmul.f32 %v2522_v39, %v4603_v57 }
 0x9be   : > { %v4609_v3 = vpop.permute.xlu0 %2233 }
 0x9bf   : > { %v2524_v30 = vmul.f32 %v2522_v39, %v4609_v3 }
 0x9c2   : > { %v4618_v34 = vpop.permute.xlu0 %2245 }
 0x9c6   : > { %v2254_v7 = vpop.permute.xlu0 %2253 }
 0x9c7   : > { %v2336_v46 = vmul.f32 %v2334_v31, %v2254_v7  ;;  %v2460_v31 = vmul.f32 %v2458_v43, %v4574_v22  ;;  %v2492_v22 = vmul.f32 %v2490_v26, %v4599_v52  ;;  %v2431_v43 = vmul.f32 %v2429_v38, %v2274_v47  ;;  %v3477_v26 = vpop.eup %3476 }
 0x9c8   : > { %v2463_v7 = vmul.f32 %v2461_v50, %v2282_v19 }
 0x9c9   : > { %v2338_v36 = vsel %vm986_vm3, %v2336_v46, 0.0  ;;  %v2462_v51 = vadd.f32 %v2460_v31, %v2454_v53  ;;  %v2433_v57 = vsel %vm986_vm3, %v2431_v43, 0.0  ;;  %v2525_v46 = vadd.f32 %v2523_v60, %v2517_v29 }
 0x9ca   : > { %v2339_v54 = vadd.f32 %v2338_v36, %v2337_v55  ;;  %v2262_v13 = vpop.permute.xlu0 %2261  ;;  %v2465_v59 = vsel %vm986_vm3, %v2463_v7, 0.0 }
 0x9cb   : > { %v2368_v14 = vmul.f32 %v2366_v33, %v2262_v13  ;;  %v2486_v4 = vmul.f32 %v3473_v56, %v2462_v51  ;;  %v2554_v13 = vrot.slane %v4567_v62, %v4265_v24 }
 0x9cc   : > { %v2340_v48 = vrot.slane %v2339_v54, 4 }
 0x9cd   : > { %v2370_v20 = vsel %vm986_vm3, %v2368_v14, 0.0 }
 0x9ce   : > { %v2341_v8 = vadd.f32 %v2340_v48, %v2339_v54  ;;  %v2371_v58 = vadd.f32 %v2370_v20, %v2369_v18  ;;  %v2270_v17 = vpop.permute.xlu0 %2269  ;;  %v3479_v54 = vpop.eup %3478 }
 0x9cf   : > { %v2400_v33 = vmul.f32 %v2398_v10, %v2270_v17  ;;  %v2494_v10 = vadd.f32 %v2492_v22, %v2486_v4  ;;  %v2549_v31 = vmul.f32 %v3479_v54, %v2525_v46  ;;  %v2298_v48 = vpop.permute.xlu1 %2297 }
 0x9d0   : > { %v2342_v27 = vrot.slane %v2341_v8, 2  ;;  %v2372_v42 = vrot.slane %v2371_v58, 4  ;;  %v2527_v17 = vmul.f32 %v2525_v46, %v2298_v48 }
 0x9d1   : > { %v2402_v61 = vsel %vm986_vm3, %v2400_v33, 0.0  ;;  %v2518_v21 = vmul.f32 %v3477_v26, %v2494_v10  ;;  %v2556_v33 = vmul.f32 %v2554_v13, %v4618_v34 }
 0x9d2   : > { %v2343_v32 = vadd.f32 %v2342_v27, %v2341_v8  ;;  %v2373_v37 = vadd.f32 %v2372_v42, %v2371_v58  ;;  %v2403_v25 = vadd.f32 %v2402_v61, %v2401_v2  ;;  %v2278_v52 = vpop.permute.xlu0 %2277  ;;  %v2555_v8 = vmul.f32 %v2554_v13, %v4588_v28  ;;  %v3481_v58 = vpop.eup %3480 }
 0x9d3   : > { %v2432_v16 = vmul.f32 %v2430_v44, %v2278_v52  ;;  %v2495_v44 = vmul.f32 %v2493_v12, %v2290_v11  ;;  %v2526_v14 = vadd.f32 %v2524_v30, %v2518_v21  ;;  %v2306_v4 = vpop.permute.xlu1 %2305 }
 0x9d4   : > { %v2344_v38 = vrot.slane %v2343_v32, 1  ;;  %v2374_v40 = vrot.slane %v2373_v37, 2  ;;  %v2404_v23 = vrot.slane %v2403_v25, 4  ;;  %v2557_v39 = vadd.f32 %v2555_v8, %v2549_v31 }
 0x9d5   : > { %v2434_v47 = vsel %vm986_vm3, %v2432_v16, 0.0  ;;  %v2497_v62 = vsel %vm986_vm3, %v2495_v44, 0.0  ;;  %v2550_v43 = vmul.f32 %v3481_v58, %v2526_v14  ;;  %v2693_v58 = vld [vmem:[#allocation14] sm:$0xff] }
 0x9d6   : > { %v2345_v1 = vadd.f32 %v2344_v38, %v2343_v32  ;;  %v2375_v55 = vadd.f32 %v2374_v40, %v2373_v37  ;;  %v2405_v49 = vadd.f32 %v2404_v23, %v2403_v25  ;;  %v2435_v36 = vadd.f32 %v2434_v47, %v2433_v57  ;;  %v2286_v53 = vpop.permute.xlu0 %2285 }
 0x9d7   : > { %v2464_v0 = vmul.f32 %v2462_v51, %v2286_v53  ;;  %v2529_v25 = vsel %vm986_vm3, %v2527_v17, 0.0  ;;  %v2558_v34 = vadd.f32 %v2556_v33, %v2550_v43  ;;  %v2559_v29 = vmul.f32 %v2557_v39, %v2306_v4  ;;  %v2694_v17 = vld [vmem:[#allocation14 + $0x8] sm:$0xff]  ;;  %v2985_v43 = vld [vmem:[%s4771_s24] ss:$0 sm:$0xff]  ;;  %s3686_s24 = sshll.u32 %s3779_s14, 4  ;;  %s3687_s24 = int_to_ptr.vmem [resolvable:$false] %s3686_s24 }
 0x9d8   : > { %2346 = vst.msk [vmem:[#allocation2] sm:$0x1] %vm1280_vm6, %v2345_v1  ;;  %v2376_v50 = vrot.slane %v2375_v55, 1  ;;  %v2406_v9 = vrot.slane %v2405_v49, 2  ;;  %v2436_v3 = vrot.slane %v2435_v36, 4  ;;  %s3688_s13 = scalar_lea.vmem %s3687_s24, 256  ;;  %p3689_p11 = scmp.lt.s32.totalorder %s4674_s22, %s3687_s24 }
 0x9d9   : > { %v2466_v15 = vsel %vm986_vm3, %v2464_v0, 0.0  ;;  %v2561_v30 = vsel %vm986_vm3, %v2559_v29, 0.0  ;;  %p3690_p12 = scmp.lt.s32.totalorder %s3688_s13, %s3682_s5 }
 0x9da   : > { %v2377_v18 = vadd.f32 %v2376_v50, %v2375_v55  ;;  %v2407_v45 = vadd.f32 %v2406_v9, %v2405_v49  ;;  %v2437_v20 = vadd.f32 %v2436_v3, %v2435_v36  ;;  %v2467_v51 = vadd.f32 %v2466_v15, %v2465_v59  ;;  %v2294_v19 = vpop.permute.xlu0 %2293  ;;  %v2974_v15 = vld [vmem:[#allocation12 + $0x1] ss:$0 sm:$0xff] }
 0x9db   : > { %v2496_v24 = vmul.f32 %v2494_v10, %v2294_v19  ;;  %p3691_p13 = por %p3690_p12, %p3689_p11 }
 0x9dc   : > { %2378 = vst.msk [vmem:[#allocation2 + $0x1] sm:$0x1] %vm1280_vm6, %v2377_v18  ;;  %v2408_v63 = vrot.slane %v2407_v45, 1  ;;  %v2438_v12 = vrot.slane %v2437_v20, 2  ;;  %v2468_v22 = vrot.slane %v2467_v51, 4 }
 0x9dd   : > { %v2498_v56 = vsel %vm986_vm3, %v2496_v24, 0.0  ;;  %p3692_p3 = pnand %p3691_p13, %p3685_p1 }
 0x9de   : > { %v2409_v27 = vadd.f32 %v2408_v63, %v2407_v45  ;;  %v2439_v42 = vadd.f32 %v2438_v12, %v2437_v20  ;;  %v2469_v60 = vadd.f32 %v2468_v22, %v2467_v51  ;;  %v2499_v28 = vadd.f32 %v2498_v56, %v2497_v62  ;;  %v2302_v2 = vpop.permute.xlu0 %2301  ;;  %v2591_v45 = vpop.permute.xlu1 %2590  ;;  %v2695_v63 = vld [vmem:[#allocation14 + $0x10] sm:$0xff] }
 0x9df   : > { %v2528_v61 = vmul.f32 %v2526_v14, %v2302_v2  ;;  %v2580_v14 = vmul.f32 %v2974_v15, %v4505_v5  ;;  %v3268_v12 = vpack.c.bf16 %v2694_v17, %v2693_v58  ;;  %v2696_v5 = vld [vmem:[#allocation14 + $0x18] sm:$0xff] }
 0x9e0   : > { %2410 = vst.msk [vmem:[#allocation2 + $0x2] sm:$0x1] %vm1280_vm6, %v2409_v27  ;;  %v2440_v35 = vrot.slane %v2439_v42, 1  ;;  %v2470_v32 = vrot.slane %v2469_v60, 2  ;;  %v2500_v37 = vrot.slane %v2499_v28, 4  ;;  %v3271_v22 = vpack.c.bf16 %v2696_v5, %v2695_v63 }
 0x9e1   : > { %v2530_v52 = vsel %vm986_vm3, %v2528_v61, 0.0  ;;  %3269 = vmatpush3.bf16.msra.mxu1 %v3268_v12 }
 0x9e2   : > { %v2441_v16 = vadd.f32 %v2440_v35, %v2439_v42  ;;  %v2471_v10 = vadd.f32 %v2470_v32, %v2469_v60  ;;  %v2501_v11 = vadd.f32 %v2500_v37, %v2499_v28  ;;  %v2531_v38 = vadd.f32 %v2530_v52, %v2529_v25  ;;  %v2310_v40 = vpop.permute.xlu0 %2309  ;;  %3270 = vmatprep.subr.bf16.mxu1 %v3775_v6 }
 0x9e3   : > { %v2560_v23 = vmul.f32 %v2558_v34, %v2310_v40 }
 0x9e4   : > { %2442 = vst.msk [vmem:[#allocation2 + $0x3] sm:$0x1] %vm1280_vm6, %v2441_v16  ;;  %v2472_v57 = vrot.slane %v2471_v10, 1  ;;  %v2502_v7 = vrot.slane %v2501_v11, 2  ;;  %v2532_v46 = vrot.slane %v2531_v38, 4 }
 0x9e5   : > { %v2562_v47 = vsel %vm986_vm3, %v2560_v23, 0.0  ;;  %3272 = vmatpush3.bf16.msra.mxu1 %v3271_v22 }
 0x9e6   : > { %v2473_v26 = vadd.f32 %v2472_v57, %v2471_v10  ;;  %v2503_v1 = vadd.f32 %v2502_v7, %v2501_v11  ;;  %v2533_v55 = vadd.f32 %v2532_v46, %v2531_v38  ;;  %v2563_v49 = vadd.f32 %v2562_v47, %v2561_v30 }
 0x9e8   : > { %2474 = vst.msk [vmem:[#allocation2 + $0x4] sm:$0x1] %vm1280_vm6, %v2473_v26  ;;  %v2504_v36 = vrot.slane %v2503_v1, 1  ;;  %v2534_v53 = vrot.slane %v2533_v55, 2  ;;  %v2564_v44 = vrot.slane %v2563_v49, 4 }
 0x9ea   : > { %v2505_v0 = vadd.f32 %v2504_v36, %v2503_v1  ;;  %v2535_v21 = vadd.f32 %v2534_v53, %v2533_v55  ;;  %v2565_v54 = vadd.f32 %v2564_v44, %v2563_v49 }
 0x9ec   : > { %2506 = vst.msk [vmem:[#allocation2 + $0x5] sm:$0x1] %vm1280_vm6, %v2505_v0  ;;  %v2536_v13 = vrot.slane %v2535_v21, 1  ;;  %v2566_v50 = vrot.slane %v2565_v54, 2 }
 0x9ee   : > { %v2537_v9 = vadd.f32 %v2536_v13, %v2535_v21  ;;  %v2567_v3 = vadd.f32 %v2566_v50, %v2565_v54 }
 0x9f0   : > { %2538 = vst.msk [vmem:[#allocation2 + $0x6] sm:$0x1] %vm1280_vm6, %v2537_v9  ;;  %v2568_v31 = vrot.slane %v2567_v3, 1 }
 0x9f2   : > { %v2569_v59 = vadd.f32 %v2568_v31, %v2567_v3 }
 0x9f4   : > { %2570 = vst.msk [vmem:[#allocation2 + $0x7] sm:$0x1] %vm1280_vm6, %v2569_v59 }
 0x9fb   : > { %v2571_v48 = vld [vmem:[#allocation2] sm:$0xff] }
 0x9fc   : > { %v2581_v18 = vadd.f32 %v2580_v14, %v2571_v48 }
 0x9fe   : > { %v2593_v20 = vmul.f32 %v2591_v45, %v2581_v18 }
 0xa00   : > { %3194 = vmatmul.mubr.msk.f32.vlgmr.msra.gmra.mrb[14].mxu0 %vm986_vm3, %v2593_v20 }
 0xad3   : > { %v2672_v51 = vpop.f32.mrb[14].mxu0 }
 0xad4   : > { %v2676_v19 = vadd.f32 %v2672_v51, %v4421_v41  ;;  %v3195_v8 = vpop.f32.mrb[15].mxu0 }
 0xad6   : > { %v2677_v24 = vmul.f32 %v2676_v19, %v2676_v19 }
 0xad8   : > { %v2678_v62 = vsel %vm545_vm0, %v2677_v24, 0.0 }
 0xad9   : > { %2679 = vadd.xlane.f32.xlu0 %v2678_v62 }
 0xb66   : > { %v2680_v39 = vpop.xlane.xlu0 %2679 }
 0xb67   : > { %v2681_v33 = vmul.f32 0.03125, %v2680_v39 }
 0xb69   : > { %v2682_v41 = vadd.f32 1e-05, %v2681_v33 }
 0xb6b   : > { %3482 = vrsqrt.f32 %v2682_v41 }
 0xb75   : > { %v3483_v56 = vpop.eup %3482 }
 0xb76   : > { %v2684_v27 = vmul.f32 %v3483_v56, %v2676_v19 }
 0xb78   : > { %v2692_v42 = vmul.f32 %v2985_v43, %v2684_v27 }
 0xb7a   : > { %3205 = vmatmul.mubr.msk.f32.vlgmr.msra.gmra.mrb[12].mxu1 %vm545_vm0, %v2692_v42 }
 0xc4d   : > { %v2766_v6 = vpop.f32.mrb[12].mxu1 }
 0xc4e   : > { %2770 = vst [vmem:[%s542_s21] sm:$0xff] %v2766_v6  ;;  %v3206_v60 = vpop.f32.mrb[13].mxu1 }
 0xc4f   : > { %3695 = shalt.err (!%p3692_p3)
}
 0xc50   : > { %s3696_s3 = scalar_lea.hbm %s4679_s0, 128  ;;  %s3700_s18 = scalar_lea.hbm %s4773_s23, 256 }
 0xc51   : > { %p3697_p7 = scmp.ne.s32.totalorder %s4679_s0, %s3696_s3  ;;  %p3701_p8 = scmp.lt.u32.totalorder %s4679_s0, %s4773_s23 }
 0xc52   : > { %p3702_p0 = scmp.lt.u32.totalorder %s3700_s18, %s3696_s3  ;;  %p3704_p6 = scmp.lt.u32.totalorder %s3696_s3, %s4679_s0 }
 0xc53   : > { %p3698_p9 = pnand %p3697_p7, %p4774_p5 }
 0xc54   : > { %p3703_p2 = por %p3702_p0, %p3701_p8 }
 0xc55   : > { %p3699_p4 = pneg %p3698_p9 }
 0xc56   : > { %p3705_p10 = por %p3704_p6, %p3703_p2 }
 0xc58   : > { %p3706_p1 = pnand %p3705_p10, %p3699_p4 }
 0xc5a   : > { %3709 = shalt.err (!%p3706_p1)
}
 0xc5b   : > { %3299 = dma.vmem_to_hbm [thread:$0]  (%p4774_p5), %s4674_s22, 128, %s4679_s0, %s2772_s30  }
 0xc5c PF: > { %s2797_s5 = sand.u32 1, %s3748_s25   ;;  %p4775_p11 = scmp.ne.s32.totalorder %s4758_s29, 0 }
 0xc5d   : > { %p4776_p12 = scmp.ge.s32.totalorder %s3760_s28, 2  ;;  %s2798_s24 = scalar_lea.sflag [#allocation5], %s2797_s5 }
 0xc5f   : > { %p3325_p13 = pnand %p4776_p12, %p4775_p11 }
 0xc61   : > { %3743 = dma.done.wait (!%p3325_p13), %s2798_s24, 128  }
 0xc62   : > { %3745 = vsyncadd (!%p3325_p13), %s2798_s24, 4294967168  ;;  %p29_p3 = scmp.ge.s32.totalorder %s4031_s16, 4   ;;  %s4777_s25 = smov %s3752_s26 }
 0xc63   : > { %s4778_s26 = smov %s3756_s27  ;;  %s4779_s27 = smov %s4042_s11 }
 0xc64   : > { %s4780_s28 = smov %s4031_s16  ;;  %31 = sbr.rel (!%p29_p3) target bundleno = 16 (0x10), region = 153 }
 0xc6b   :  { %2803 = vsyncpa [#allocation4], 1 }
 0xc6c   :  { %2805 = vsyncpa [#allocation4 + $0x1], 1 }
 0xc6d   :  { %2806 = vsyncpa [#allocation7], 1 }
 0xc6e   :  { %2807 = vsyncpa [#allocation10], 1 }
 0xc6f   :  { %2808 = vsyncpa [#allocation13], 1 }
 0xc70   :  { %2809 = vsyncpa [#allocation5], 1 }
 0xc71   :  { %2811 = vsyncpa [#allocation5 + $0x1], 1 }

</bundles_post_ra>
